<compile_context>
chip_gen: v7x
topology: tpu7x:2x2x1
jax: 0.10.0
libtpu: 0.0.40
codegen_flags: <defaults>
</compile_context>

<pallas_src>
import functools
import math

import jax
import jax.numpy as jnp
from jax import lax
from jax.experimental import pallas as pl
from jax.experimental.pallas import tpu as pltpu


def get_same_padding(in_size, kernel_size, stride):
    in_h, in_w = (in_size, in_size) if isinstance(in_size, int) else in_size
    k_h, k_w = (kernel_size, kernel_size) if isinstance(kernel_size, int) else kernel_size
    s_h, s_w = (stride, stride) if isinstance(stride, int) else stride
    out_h, out_w = math.ceil(in_h / s_h), math.ceil(in_w / s_w)
    pad_h = max((out_h - 1) * s_h + k_h - in_h, 0)
    pad_w = max((out_w - 1) * s_w + k_w - in_w, 0)
    return (pad_w // 2, pad_w - pad_w // 2, pad_h // 2, pad_h - pad_h // 2)


def fold_bn(gamma, beta, mean, var, eps):
    scale = gamma / jnp.sqrt(var + eps)
    shift = beta - mean * scale
    return scale, shift


_VMEM_LIMIT = 32 * 1024 * 1024  # explicit scoped-VMEM cap, safe on v5e/v6e/v7x


# ---------------------------------------------------------------------------
# Kernel A: fused expand-1x1(+BN+Swish) -> zero-pad (VMEM scratch) ->
#           depthwise kxk(+BN+Swish).  Also emits per-batch spatial means of the
#           depthwise output as an epilogue output for the SE block, so the wide
#           tensor is not re-read just to pool it.
# ---------------------------------------------------------------------------
def _fused_expand_dw_kernel(*refs, k, stride, pads, h, w, out_h, out_w, has_expand):
    if has_expand:
        (x_ref, we_ref, se_ref, be_ref,
         wd_ref, sd_ref, bd_ref, y_ref, pool_ref, ep_ref) = refs
    else:
        (x_ref, wd_ref, sd_ref, bd_ref, y_ref, pool_ref, ep_ref) = refs
    left, right, top, bottom = pads
    del right, bottom  # implied by scratch shape

    xv = x_ref[0].astype(jnp.float32)                       # (h*w, cin)
    cin = xv.shape[-1]
    if has_expand:
        e = jnp.dot(xv, we_ref[...], preferred_element_type=jnp.float32)
        e = e * se_ref[...] + be_ref[...]
        e = e * jax.nn.sigmoid(e)                            # Swish
        neck = e.shape[-1]
    else:
        e = xv
        neck = cin
    e = e.reshape(h, w, neck)

    # Zero-padded expanded activation staged entirely in VMEM (never hits HBM).
    ep_ref[...] = jnp.zeros(ep_ref.shape, jnp.float32)
    ep_ref[top:top + h, left:left + w, :] = e
    ep = ep_ref[...]

    # TODO(synk): for large spatial stages (e.g. 112x112) tile along H with a halo and
    # accumulate row-wise; for stride=2 a space-to-depth phase split would avoid
    # strided slices.  Not needed at these shapes.
    acc = jnp.zeros((out_h, out_w, neck), jnp.float32)
    for i in range(k):
        for j in range(k):
            if stride == 1:
                sub = ep[i:i + out_h, j:j + out_w, :]
            else:
                sub = lax.slice(ep, (i, j, 0),
                                (i + (out_h - 1) * stride + 1,
                                 j + (out_w - 1) * stride + 1, neck),
                                (stride, stride, 1))
            acc = acc + sub * wd_ref[i * k + j, :]

    yv = acc * sd_ref[0] + bd_ref[0]
    yv = yv * jax.nn.sigmoid(yv)                             # Swish
    y_ref[0] = yv.astype(y_ref.dtype)
    pool_ref[...] = jnp.mean(yv, axis=(0, 1)).reshape(1, 1, neck)


def fused_expand_depthwise(x, w_expand, scale_e, shift_e, w_dw, scale_d, shift_d, *,
                           kernel_size, stride, image_size, has_expand):
    n, h, w, cin = x.shape
    neck = w_dw.shape[-1]
    k = kernel_size
    left, right, top, bottom = get_same_padding(image_size, k, stride)
    hp, wp = h + top + bottom, w + left + right
    out_h = (hp - k) // stride + 1
    out_w = (wp - k) // stride + 1

    xf = x.reshape(n, h * w, cin)                            # rows flattened for the 1x1 matmul

    kern = functools.partial(_fused_expand_dw_kernel, k=k, stride=stride,
                             pads=(left, right, top, bottom),
                             h=h, w=w, out_h=out_h, out_w=out_w,
                             has_expand=has_expand)

    args = [xf]
    in_specs = [pl.BlockSpec((1, h * w, cin), lambda b: (b, 0, 0))]
    if has_expand:
        args += [w_expand, scale_e.reshape(1, neck), shift_e.reshape(1, neck)]
        in_specs += [
            pl.BlockSpec((cin, neck), lambda b: (0, 0)),
            pl.BlockSpec((1, neck), lambda b: (0, 0)),
            pl.BlockSpec((1, neck), lambda b: (0, 0)),
        ]
    args += [w_dw.reshape(k * k, neck),
             scale_d.reshape(1, neck), shift_d.reshape(1, neck)]
    in_specs += [
        pl.BlockSpec((k * k, neck), lambda b: (0, 0)),
        pl.BlockSpec((1, neck), lambda b: (0, 0)),
        pl.BlockSpec((1, neck), lambda b: (0, 0)),
    ]

    y, pooled = pl.pallas_call(
        kern,
        grid=(n,),
        in_specs=in_specs,
        out_specs=[
            pl.BlockSpec((1, out_h, out_w, neck), lambda b: (b, 0, 0, 0)),
            pl.BlockSpec((1, 1, neck), lambda b: (b, 0, 0)),
        ],
        out_shape=[
            jax.ShapeDtypeStruct((n, out_h, out_w, neck), x.dtype),
            jax.ShapeDtypeStruct((n, 1, neck), jnp.float32),
        ],
        scratch_shapes=[pltpu.VMEM((hp, wp, neck), jnp.float32)],
        compiler_params=pltpu.CompilerParams(
            dimension_semantics=("parallel",),
            vmem_limit_bytes=_VMEM_LIMIT),
    )(*args)
    return y, pooled


# ---------------------------------------------------------------------------
# Kernel B: fused SE gating (per-batch channel gate computed outside on the tiny
# pooled vector) + project 1x1 conv + folded BN + optional residual add.
# Grid: (batch, spatial-row tiles) -> both axes 'parallel' (megacore-friendly).
# ---------------------------------------------------------------------------
def _se_project_kernel(*refs, use_gate, add_res):
    idx = 0
    y_ref = refs[idx]; idx += 1
    g_ref = None
    if use_gate:
        g_ref = refs[idx]; idx += 1
    w_ref, s_ref, b_ref = refs[idx], refs[idx + 1], refs[idx + 2]; idx += 3
    res_ref = None
    if add_res:
        res_ref = refs[idx]; idx += 1
    o_ref = refs[idx]

    yv = y_ref[0].astype(jnp.float32)                        # (thw, neck)
    if use_gate:
        yv = yv * g_ref[0]                                   # (1, neck) gate broadcast
    out = jnp.dot(yv, w_ref[...], preferred_element_type=jnp.float32)
    out = out * s_ref[...] + b_ref[...]
    if add_res:
        out = out + res_ref[0].astype(jnp.float32)
    o_ref[0] = out.astype(o_ref.dtype)


def fused_se_project(y, gate, w_proj, scale, shift, *, residual=None, max_rows=2048):
    n, oh, ow, neck = y.shape
    cout = w_proj.shape[1]
    hw = oh * ow
    yf = y.reshape(n, hw, neck)

    thw = min(hw, max_rows)
    if thw < hw:
        thw = max(8, (thw // 8) * 8)                         # keep sublane-aligned tiles
    grid = (n, pl.cdiv(hw, thw))

    use_gate = gate is not None
    add_res = residual is not None

    args = [yf]
    in_specs = [pl.BlockSpec((1, thw, neck), lambda b, t: (b, t, 0))]
    if use_gate:
        args.append(gate)                                    # (N, 1, neck)
        in_specs.append(pl.BlockSpec((1, 1, neck), lambda b, t: (b, 0, 0)))
    args += [w_proj, scale.reshape(1, cout), shift.reshape(1, cout)]
    in_specs += [
        pl.BlockSpec((neck, cout), lambda b, t: (0, 0)),
        pl.BlockSpec((1, cout), lambda b, t: (0, 0)),
        pl.BlockSpec((1, cout), lambda b, t: (0, 0)),
    ]
    if add_res:
        args.append(residual.reshape(n, hw, cout))
        in_specs.append(pl.BlockSpec((1, thw, cout), lambda b, t: (b, t, 0)))

    out = pl.pallas_call(
        functools.partial(_se_project_kernel, use_gate=use_gate, add_res=add_res),
        grid=grid,
        in_specs=in_specs,
        out_specs=pl.BlockSpec((1, thw, cout), lambda b, t: (b, t, 0)),
        out_shape=jax.ShapeDtypeStruct((n, hw, cout), y.dtype),
        compiler_params=pltpu.CompilerParams(
            dimension_semantics=("parallel", "parallel"),
            vmem_limit_bytes=_VMEM_LIMIT),
    )(*args)
    return out.reshape(n, oh, ow, cout)


# ---------------------------------------------------------------------------
# Full InvertedResidual forward (eval mode).
# ---------------------------------------------------------------------------
def inverted_residual_forward(x_nchw, params, cfg):
    x = jnp.transpose(x_nchw, (0, 2, 3, 1))                  # NCHW -> NHWC
    inputs = x
    has_expand = cfg["expand_ratio"] > 1

    y, pooled = fused_expand_depthwise(
        x,
        params.get("w_expand"), params.get("scale_expand"), params.get("shift_expand"),
        params["w_dw"], params["scale_dw"], params["shift_dw"],
        kernel_size=cfg["kernel_size"], stride=cfg["stride"],
        image_size=cfg["image_size"], has_expand=has_expand)

    gate = None
    if cfg["se_ratio"] is not None and 0 < cfg["se_ratio"] <= 1:
        # Tiny FCs on the pooled (N, neck) vector -- negligible bytes, plain JAX.
        z = pooled.reshape(pooled.shape[0], -1)
        hsq = z @ params["w_se1"] + params["b_se1"]
        hsq = hsq * jax.nn.sigmoid(hsq)                      # Swish
        g = jax.nn.sigmoid(hsq @ params["w_se2"] + params["b_se2"])
        gate = g[:, None, :]                                 # (N, 1, neck)

    residual = None
    if cfg["id_skip"] and cfg["stride"] == 1 and cfg["in_channels"] == cfg["out_channels"]:
        # TODO(synk): drop_connect is a training-only stochastic-depth op; identity in eval.
        residual = inputs

    out = fused_se_project(y, gate, params["w_project"], params["scale_project"],
                           params["shift_project"], residual=residual)
    return jnp.transpose(out, (0, 3, 1, 2))                  # NHWC -> NCHW


# ---------------------------------------------------------------------------
# Pure-JAX reference (for correctness check of the Pallas kernels).
# ---------------------------------------------------------------------------
def ref_forward(x_nchw, params, cfg):
    swish = lambda t: t * jax.nn.sigmoid(t)
    x = jnp.transpose(x_nchw, (0, 2, 3, 1))
    inputs = x
    if cfg["expand_ratio"] > 1:
        x = jnp.einsum("nhwc,cd->nhwd", x, params["w_expand"])
        x = swish(x * params["scale_expand"] + params["shift_expand"])
    k, s = cfg["kernel_size"], cfg["stride"]
    left, right, top, bottom = get_same_padding(cfg["image_size"], k, s)
    c = x.shape[-1]
    dw = params["w_dw"].reshape(k, k, 1, c)
    x = lax.conv_general_dilated(x, dw, (s, s), [(top, bottom), (left, right)],
                                 dimension_numbers=("NHWC", "HWIO", "NHWC"),
                                 feature_group_count=c)
    x = swish(x * params["scale_dw"] + params["shift_dw"])
    if cfg["se_ratio"] is not None and 0 < cfg["se_ratio"] <= 1:
        z = jnp.mean(x, axis=(1, 2), keepdims=True)
        z = swish(jnp.einsum("nhwc,cd->nhwd", z, params["w_se1"]) + params["b_se1"])
        z = jax.nn.sigmoid(jnp.einsum("nhwc,cd->nhwd", z, params["w_se2"]) + params["b_se2"])
        x = x * z
    x = jnp.einsum("nhwc,cd->nhwd", x, params["w_project"])
    x = x * params["scale_project"] + params["shift_project"]
    if cfg["id_skip"] and cfg["stride"] == 1 and cfg["in_channels"] == cfg["out_channels"]:
        x = x + inputs
    return jnp.transpose(x, (0, 3, 1, 2))


if __name__ == "__main__":
    cfg = dict(in_channels=8, out_channels=8, kernel_size=3, expand_ratio=4,
               id_skip=True, stride=1, se_ratio=0.25, bn_eps=1e-3,
               image_size=16, drop_connect_rate=0.2)
    neck = int(cfg["in_channels"] * cfg["expand_ratio"])          # 32
    cse = int(cfg["in_channels"] * cfg["se_ratio"])               # 2

    key = jax.random.PRNGKey(0)
    keys = jax.random.split(key, 12)

    def bn_params(k, c):
        k1, k2, k3, k4 = jax.random.split(k, 4)
        gamma = jax.random.uniform(k1, (c,), jnp.float32, 0.8, 1.2)
        beta = 0.1 * jax.random.normal(k2, (c,), jnp.float32)
        mean = 0.1 * jax.random.normal(k3, (c,), jnp.float32)
        var = jax.random.uniform(k4, (c,), jnp.float32, 0.5, 1.5)
        return fold_bn(gamma, beta, mean, var, cfg["bn_eps"])

    params = {}
    params["w_expand"] = 0.2 * jax.random.normal(keys[0], (cfg["in_channels"], neck), jnp.float32)
    params["scale_expand"], params["shift_expand"] = bn_params(keys[1], neck)
    params["w_dw"] = 0.2 * jax.random.normal(
        keys[2], (cfg["kernel_size"], cfg["kernel_size"], neck), jnp.float32)
    params["scale_dw"], params["shift_dw"] = bn_params(keys[3], neck)
    params["w_se1"] = 0.2 * jax.random.normal(keys[4], (neck, cse), jnp.float32)
    params["b_se1"] = 0.1 * jax.random.normal(keys[5], (cse,), jnp.float32)
    params["w_se2"] = 0.2 * jax.random.normal(keys[6], (cse, neck), jnp.float32)
    params["b_se2"] = 0.1 * jax.random.normal(keys[7], (neck,), jnp.float32)
    params["w_project"] = 0.2 * jax.random.normal(keys[8], (neck, cfg["out_channels"]), jnp.float32)
    params["scale_project"], params["shift_project"] = bn_params(keys[9], cfg["out_channels"])

    x = jax.random.normal(
        keys[10], (2, cfg["in_channels"], cfg["image_size"], cfg["image_size"]), jnp.float32)

    out = jax.block_until_ready(inverted_residual_forward(x, params, cfg))
    ref = jax.block_until_ready(ref_forward(x, params, cfg))

    assert out.shape == (2, cfg["out_channels"], cfg["image_size"], cfg["image_size"])
    assert jnp.allclose(out, ref, rtol=1e-2, atol=1e-2), float(jnp.max(jnp.abs(out - ref)))
    print("KERNEL_OK")
</pallas_src>

<mosaic_0001>
module attributes {stable_mosaic.version = 11 : i64} {
  func.func @_fused_expand_dw_kernel(%arg0: i32, %arg1: memref<1x256x8xf32, #tpu.memory_space<vmem>>, %arg2: memref<8x32xf32, #tpu.memory_space<vmem>>, %arg3: memref<1x32xf32, #tpu.memory_space<vmem>>, %arg4: memref<1x32xf32, #tpu.memory_space<vmem>>, %arg5: memref<9x32xf32, #tpu.memory_space<vmem>>, %arg6: memref<1x32xf32, #tpu.memory_space<vmem>>, %arg7: memref<1x32xf32, #tpu.memory_space<vmem>>, %arg8: memref<1x16x16x32xf32, #tpu.memory_space<vmem>>, %arg9: memref<1x1x32xf32, #tpu.memory_space<vmem>>, %arg10: memref<18x18x32xf32, #tpu.memory_space<vmem>>) attributes {dimension_semantics = [#tpu.dimension_semantics<parallel>], iteration_bounds = array<i64: 2>, scalar_prefetch = 0 : i64, scratch_operands = 1 : i64, tpu.core_type = #tpu.core_type<tc>, window_params = [{transform_indices = @transform_0, window_bounds = array<i64: 1, 256, 8>}, {pipeline_mode = #tpu.pipeline_mode<synchronous>, transform_indices = @transform_1, window_bounds = array<i64: 8, 32>}, {pipeline_mode = #tpu.pipeline_mode<synchronous>, transform_indices = @transform_2, window_bounds = array<i64: 1, 32>}, {pipeline_mode = #tpu.pipeline_mode<synchronous>, transform_indices = @transform_3, window_bounds = array<i64: 1, 32>}, {pipeline_mode = #tpu.pipeline_mode<synchronous>, transform_indices = @transform_4, window_bounds = array<i64: 9, 32>}, {pipeline_mode = #tpu.pipeline_mode<synchronous>, transform_indices = @transform_5, window_bounds = array<i64: 1, 32>}, {pipeline_mode = #tpu.pipeline_mode<synchronous>, transform_indices = @transform_6, window_bounds = array<i64: 1, 32>}, {transform_indices = @transform_7, window_bounds = array<i64: 1, 16, 16, 32>}, {transform_indices = @transform_8, window_bounds = array<i64: 1, 1, 32>}]} {
    %c0 = arith.constant 0 : index
    %c0_0 = arith.constant 0 : index
    %c0_1 = arith.constant 0 : index
    %0 = vector.load %arg1[%c0, %c0_0, %c0_1] : memref<1x256x8xf32, #tpu.memory_space<vmem>>, vector<1x256x8xf32>
    %1 = vector.shape_cast %0 : vector<1x256x8xf32> to vector<256x8xf32>
    %c0_2 = arith.constant 0 : index
    %c0_3 = arith.constant 0 : index
    %2 = vector.load %arg2[%c0_2, %c0_3] : memref<8x32xf32, #tpu.memory_space<vmem>>, vector<8x32xf32>
    %cst = arith.constant dense<0.000000e+00> : vector<256x32xf32>
    %3 = tpu.matmul %1, %2, %cst {dimension_numbers = #tpu.dot_dimension_numbers<[1], [0], [0], [1], [0, 0, 1, 1], [], []>} : vector<256x8xf32>, vector<8x32xf32>, vector<256x32xf32> -> vector<256x32xf32>
    %c0_4 = arith.constant 0 : index
    %c0_5 = arith.constant 0 : index
    %4 = vector.load %arg3[%c0_4, %c0_5] : memref<1x32xf32, #tpu.memory_space<vmem>>, vector<1x32xf32>
    %5 = vector.broadcast %4 : vector<1x32xf32> to vector<256x32xf32>
    %6 = arith.mulf %3, %5 : vector<256x32xf32>
    %c0_6 = arith.constant 0 : index
    %c0_7 = arith.constant 0 : index
    %7 = vector.load %arg4[%c0_6, %c0_7] : memref<1x32xf32, #tpu.memory_space<vmem>>, vector<1x32xf32>
    %8 = vector.broadcast %7 : vector<1x32xf32> to vector<256x32xf32>
    %9 = arith.addf %6, %8 : vector<256x32xf32>
    %10 = arith.negf %9 : vector<256x32xf32>
    %11 = math.exp %10 : vector<256x32xf32>
    %cst_8 = arith.constant 1.000000e+00 : f32
    %12 = vector.broadcast %cst_8 : f32 to vector<256x32xf32>
    %13 = arith.addf %12, %11 : vector<256x32xf32>
    %14 = arith.divf %12, %13 : vector<256x32xf32>
    %15 = arith.mulf %9, %14 : vector<256x32xf32>
    %16 = vector.shape_cast %15 : vector<256x32xf32> to vector<16x16x32xf32>
    %cst_9 = arith.constant 0.000000e+00 : f32
    %17 = vector.broadcast %cst_9 : f32 to vector<18x18x32xf32>
    %c0_10 = arith.constant 0 : index
    %c0_11 = arith.constant 0 : index
    %c0_12 = arith.constant 0 : index
    %18 = vector.load %arg10[%c0_10, %c0_11, %c0_12] : memref<18x18x32xf32, #tpu.memory_space<vmem>>, vector<18x18x32xf32>
    tpu.vector_store %arg10[%c0_10, %c0_11, %c0_12], %17 {strides = array<i32>} : memref<18x18x32xf32, #tpu.memory_space<vmem>>, vector<18x18x32xf32>,
    %c1 = arith.constant 1 : index
    %c1_13 = arith.constant 1 : index
    %c0_14 = arith.constant 0 : index
    %19 = vector.load %arg10[%c1, %c1_13, %c0_14] : memref<18x18x32xf32, #tpu.memory_space<vmem>>, vector<16x16x32xf32>
    tpu.vector_store %arg10[%c1, %c1_13, %c0_14], %16 {strides = array<i32>} : memref<18x18x32xf32, #tpu.memory_space<vmem>>, vector<16x16x32xf32>,
    %c0_15 = arith.constant 0 : index
    %c0_16 = arith.constant 0 : index
    %c0_17 = arith.constant 0 : index
    %20 = vector.load %arg10[%c0_15, %c0_16, %c0_17] : memref<18x18x32xf32, #tpu.memory_space<vmem>>, vector<18x18x32xf32>
    %cst_18 = arith.constant 0.000000e+00 : f32
    %21 = vector.broadcast %cst_18 : f32 to vector<16x16x32xf32>
    %22 = vector.extract_strided_slice %20 {offsets = [0, 0, 0], sizes = [16, 16, 32], strides = [1, 1, 1]} : vector<18x18x32xf32> to vector<16x16x32xf32>
    %c0_19 = arith.constant 0 : index
    %c0_20 = arith.constant 0 : index
    %23 = vector.load %arg5[%c0_19, %c0_20] : memref<9x32xf32, #tpu.memory_space<vmem>>, vector<1x32xf32>
    %24 = vector.shape_cast %23 : vector<1x32xf32> to vector<32xf32>
    %25 = vector.shape_cast %24 : vector<32xf32> to vector<1x1x32xf32>
    %26 = vector.broadcast %25 : vector<1x1x32xf32> to vector<16x16x32xf32>
    %27 = arith.mulf %22, %26 : vector<16x16x32xf32>
    %28 = arith.addf %21, %27 : vector<16x16x32xf32>
    %29 = vector.extract_strided_slice %20 {offsets = [0, 1, 0], sizes = [16, 16, 32], strides = [1, 1, 1]} : vector<18x18x32xf32> to vector<16x16x32xf32>
    %c1_21 = arith.constant 1 : index
    %c0_22 = arith.constant 0 : index
    %30 = vector.load %arg5[%c1_21, %c0_22] : memref<9x32xf32, #tpu.memory_space<vmem>>, vector<1x32xf32>
    %31 = vector.shape_cast %30 : vector<1x32xf32> to vector<32xf32>
    %32 = vector.shape_cast %31 : vector<32xf32> to vector<1x1x32xf32>
    %33 = vector.broadcast %32 : vector<1x1x32xf32> to vector<16x16x32xf32>
    %34 = arith.mulf %29, %33 : vector<16x16x32xf32>
    %35 = arith.addf %28, %34 : vector<16x16x32xf32>
    %36 = vector.extract_strided_slice %20 {offsets = [0, 2, 0], sizes = [16, 16, 32], strides = [1, 1, 1]} : vector<18x18x32xf32> to vector<16x16x32xf32>
    %c2 = arith.constant 2 : index
    %c0_23 = arith.constant 0 : index
    %37 = vector.load %arg5[%c2, %c0_23] : memref<9x32xf32, #tpu.memory_space<vmem>>, vector<1x32xf32>
    %38 = vector.shape_cast %37 : vector<1x32xf32> to vector<32xf32>
    %39 = vector.shape_cast %38 : vector<32xf32> to vector<1x1x32xf32>
    %40 = vector.broadcast %39 : vector<1x1x32xf32> to vector<16x16x32xf32>
    %41 = arith.mulf %36, %40 : vector<16x16x32xf32>
    %42 = arith.addf %35, %41 : vector<16x16x32xf32>
    %43 = vector.extract_strided_slice %20 {offsets = [1, 0, 0], sizes = [16, 16, 32], strides = [1, 1, 1]} : vector<18x18x32xf32> to vector<16x16x32xf32>
    %c3 = arith.constant 3 : index
    %c0_24 = arith.constant 0 : index
    %44 = vector.load %arg5[%c3, %c0_24] : memref<9x32xf32, #tpu.memory_space<vmem>>, vector<1x32xf32>
    %45 = vector.shape_cast %44 : vector<1x32xf32> to vector<32xf32>
    %46 = vector.shape_cast %45 : vector<32xf32> to vector<1x1x32xf32>
    %47 = vector.broadcast %46 : vector<1x1x32xf32> to vector<16x16x32xf32>
    %48 = arith.mulf %43, %47 : vector<16x16x32xf32>
    %49 = arith.addf %42, %48 : vector<16x16x32xf32>
    %50 = vector.extract_strided_slice %20 {offsets = [1, 1, 0], sizes = [16, 16, 32], strides = [1, 1, 1]} : vector<18x18x32xf32> to vector<16x16x32xf32>
    %c4 = arith.constant 4 : index
    %c0_25 = arith.constant 0 : index
    %51 = vector.load %arg5[%c4, %c0_25] : memref<9x32xf32, #tpu.memory_space<vmem>>, vector<1x32xf32>
    %52 = vector.shape_cast %51 : vector<1x32xf32> to vector<32xf32>
    %53 = vector.shape_cast %52 : vector<32xf32> to vector<1x1x32xf32>
    %54 = vector.broadcast %53 : vector<1x1x32xf32> to vector<16x16x32xf32>
    %55 = arith.mulf %50, %54 : vector<16x16x32xf32>
    %56 = arith.addf %49, %55 : vector<16x16x32xf32>
    %57 = vector.extract_strided_slice %20 {offsets = [1, 2, 0], sizes = [16, 16, 32], strides = [1, 1, 1]} : vector<18x18x32xf32> to vector<16x16x32xf32>
    %c5 = arith.constant 5 : index
    %c0_26 = arith.constant 0 : index
    %58 = vector.load %arg5[%c5, %c0_26] : memref<9x32xf32, #tpu.memory_space<vmem>>, vector<1x32xf32>
    %59 = vector.shape_cast %58 : vector<1x32xf32> to vector<32xf32>
    %60 = vector.shape_cast %59 : vector<32xf32> to vector<1x1x32xf32>
    %61 = vector.broadcast %60 : vector<1x1x32xf32> to vector<16x16x32xf32>
    %62 = arith.mulf %57, %61 : vector<16x16x32xf32>
    %63 = arith.addf %56, %62 : vector<16x16x32xf32>
    %64 = vector.extract_strided_slice %20 {offsets = [2, 0, 0], sizes = [16, 16, 32], strides = [1, 1, 1]} : vector<18x18x32xf32> to vector<16x16x32xf32>
    %c6 = arith.constant 6 : index
    %c0_27 = arith.constant 0 : index
    %65 = vector.load %arg5[%c6, %c0_27] : memref<9x32xf32, #tpu.memory_space<vmem>>, vector<1x32xf32>
    %66 = vector.shape_cast %65 : vector<1x32xf32> to vector<32xf32>
    %67 = vector.shape_cast %66 : vector<32xf32> to vector<1x1x32xf32>
    %68 = vector.broadcast %67 : vector<1x1x32xf32> to vector<16x16x32xf32>
    %69 = arith.mulf %64, %68 : vector<16x16x32xf32>
    %70 = arith.addf %63, %69 : vector<16x16x32xf32>
    %71 = vector.extract_strided_slice %20 {offsets = [2, 1, 0], sizes = [16, 16, 32], strides = [1, 1, 1]} : vector<18x18x32xf32> to vector<16x16x32xf32>
    %c7 = arith.constant 7 : index
    %c0_28 = arith.constant 0 : index
    %72 = vector.load %arg5[%c7, %c0_28] : memref<9x32xf32, #tpu.memory_space<vmem>>, vector<1x32xf32>
    %73 = vector.shape_cast %72 : vector<1x32xf32> to vector<32xf32>
    %74 = vector.shape_cast %73 : vector<32xf32> to vector<1x1x32xf32>
    %75 = vector.broadcast %74 : vector<1x1x32xf32> to vector<16x16x32xf32>
    %76 = arith.mulf %71, %75 : vector<16x16x32xf32>
    %77 = arith.addf %70, %76 : vector<16x16x32xf32>
    %78 = vector.extract_strided_slice %20 {offsets = [2, 2, 0], sizes = [16, 16, 32], strides = [1, 1, 1]} : vector<18x18x32xf32> to vector<16x16x32xf32>
    %c8 = arith.constant 8 : index
    %c0_29 = arith.constant 0 : index
    %79 = vector.load %arg5[%c8, %c0_29] : memref<9x32xf32, #tpu.memory_space<vmem>>, vector<1x32xf32>
    %80 = vector.shape_cast %79 : vector<1x32xf32> to vector<32xf32>
    %81 = vector.shape_cast %80 : vector<32xf32> to vector<1x1x32xf32>
    %82 = vector.broadcast %81 : vector<1x1x32xf32> to vector<16x16x32xf32>
    %83 = arith.mulf %78, %82 : vector<16x16x32xf32>
    %84 = arith.addf %77, %83 : vector<16x16x32xf32>
    %c0_30 = arith.constant 0 : index
    %c0_31 = arith.constant 0 : index
    %85 = vector.load %arg6[%c0_30, %c0_31] : memref<1x32xf32, #tpu.memory_space<vmem>>, vector<1x32xf32>
    %86 = vector.shape_cast %85 : vector<1x32xf32> to vector<32xf32>
    %87 = vector.shape_cast %86 : vector<32xf32> to vector<1x1x32xf32>
    %88 = vector.broadcast %87 : vector<1x1x32xf32> to vector<16x16x32xf32>
    %89 = arith.mulf %84, %88 : vector<16x16x32xf32>
    %c0_32 = arith.constant 0 : index
    %c0_33 = arith.constant 0 : index
    %90 = vector.load %arg7[%c0_32, %c0_33] : memref<1x32xf32, #tpu.memory_space<vmem>>, vector<1x32xf32>
    %91 = vector.shape_cast %90 : vector<1x32xf32> to vector<32xf32>
    %92 = vector.shape_cast %91 : vector<32xf32> to vector<1x1x32xf32>
    %93 = vector.broadcast %92 : vector<1x1x32xf32> to vector<16x16x32xf32>
    %94 = arith.addf %89, %93 : vector<16x16x32xf32>
    %95 = arith.negf %94 : vector<16x16x32xf32>
    %96 = math.exp %95 : vector<16x16x32xf32>
    %cst_34 = arith.constant 1.000000e+00 : f32
    %97 = vector.broadcast %cst_34 : f32 to vector<16x16x32xf32>
    %98 = arith.addf %97, %96 : vector<16x16x32xf32>
    %99 = arith.divf %97, %98 : vector<16x16x32xf32>
    %100 = arith.mulf %94, %99 : vector<16x16x32xf32>
    %c0_35 = arith.constant 0 : index
    %c0_36 = arith.constant 0 : index
    %c0_37 = arith.constant 0 : index
    %c0_38 = arith.constant 0 : index
    %101 = vector.load %arg8[%c0_35, %c0_36, %c0_37, %c0_38] : memref<1x16x16x32xf32, #tpu.memory_space<vmem>>, vector<1x16x16x32xf32>
    %102 = vector.shape_cast %101 : vector<1x16x16x32xf32> to vector<16x16x32xf32>
    %103 = vector.shape_cast %100 : vector<16x16x32xf32> to vector<1x16x16x32xf32>
    tpu.vector_store %arg8[%c0_35, %c0_36, %c0_37, %c0_38], %103 {strides = array<i32>} : memref<1x16x16x32xf32, #tpu.memory_space<vmem>>, vector<1x16x16x32xf32>,
    %cst_39 = arith.constant dense<0.000000e+00> : vector<32xf32>
    %104 = vector.multi_reduction <add>, %100, %cst_39 [0, 1] : vector<16x16x32xf32> to vector<32xf32>
    %cst_40 = arith.constant 2.560000e+02 : f32
    %105 = vector.broadcast %cst_40 : f32 to vector<32xf32>
    %106 = arith.divf %104, %105 : vector<32xf32>
    %107 = vector.shape_cast %106 : vector<32xf32> to vector<1x1x32xf32>
    %c0_41 = arith.constant 0 : index
    %c0_42 = arith.constant 0 : index
    %c0_43 = arith.constant 0 : index
    %108 = vector.load %arg9[%c0_41, %c0_42, %c0_43] : memref<1x1x32xf32, #tpu.memory_space<vmem>>, vector<1x1x32xf32>
    tpu.vector_store %arg9[%c0_41, %c0_42, %c0_43], %107 {strides = array<i32>} : memref<1x1x32xf32, #tpu.memory_space<vmem>>, vector<1x1x32xf32>,
    return
  }
  func.func @transform_0(%arg0: i32) -> (i32, i32, i32) {
    %c0_i32 = arith.constant 0 : i32
    %c0_i32_0 = arith.constant 0 : i32
    %c0_i32_1 = arith.constant 0 : i32
    return %arg0, %c0_i32, %c0_i32_0 : i32, i32, i32
  }
  func.func @transform_1(%arg0: i32) -> (i32, i32) {
    %c0_i32 = arith.constant 0 : i32
    %c0_i32_0 = arith.constant 0 : i32
    %c0_i32_1 = arith.constant 0 : i32
    return %c0_i32, %c0_i32_0 : i32, i32
  }
  func.func @transform_2(%arg0: i32) -> (i32, i32) {
    %c0_i32 = arith.constant 0 : i32
    %c0_i32_0 = arith.constant 0 : i32
    %c0_i32_1 = arith.constant 0 : i32
    return %c0_i32, %c0_i32_0 : i32, i32
  }
  func.func @transform_3(%arg0: i32) -> (i32, i32) {
    %c0_i32 = arith.constant 0 : i32
    %c0_i32_0 = arith.constant 0 : i32
    %c0_i32_1 = arith.constant 0 : i32
    return %c0_i32, %c0_i32_0 : i32, i32
  }
  func.func @transform_4(%arg0: i32) -> (i32, i32) {
    %c0_i32 = arith.constant 0 : i32
    %c0_i32_0 = arith.constant 0 : i32
    %c0_i32_1 = arith.constant 0 : i32
    return %c0_i32, %c0_i32_0 : i32, i32
  }
  func.func @transform_5(%arg0: i32) -> (i32, i32) {
    %c0_i32 = arith.constant 0 : i32
    %c0_i32_0 = arith.constant 0 : i32
    %c0_i32_1 = arith.constant 0 : i32
    return %c0_i32, %c0_i32_0 : i32, i32
  }
  func.func @transform_6(%arg0: i32) -> (i32, i32) {
    %c0_i32 = arith.constant 0 : i32
    %c0_i32_0 = arith.constant 0 : i32
    %c0_i32_1 = arith.constant 0 : i32
    return %c0_i32, %c0_i32_0 : i32, i32
  }
  func.func @transform_7(%arg0: i32) -> (i32, i32, i32, i32) {
    %c0_i32 = arith.constant 0 : i32
    %c0_i32_0 = arith.constant 0 : i32
    %c0_i32_1 = arith.constant 0 : i32
    %c0_i32_2 = arith.constant 0 : i32
    return %arg0, %c0_i32, %c0_i32_0, %c0_i32_1 : i32, i32, i32, i32
  }
  func.func @transform_8(%arg0: i32) -> (i32, i32, i32) {
    %c0_i32 = arith.constant 0 : i32
    %c0_i32_0 = arith.constant 0 : i32
    %c0_i32_1 = arith.constant 0 : i32
    return %arg0, %c0_i32, %c0_i32_0 : i32, i32, i32
  }
}

</mosaic_0001>

<bundles_post_ra>
// kernel: tpu_custom_call.1
= control target key start
LH: loop header
LB: loop body
LE: loop exit
PB: predicated region body
PF: predicated region fallthrough
CT: control target
= control target key end

     0   :  { %14 = vsyncpa [#allocation4], 0  ;;  %s6983_s0 = inlined_call_operand.vmem [shape: f32[2,256,8], index: 0, kind: input, shape index: {}]   ;;  %s6984_s1 = inlined_call_operand.vmem [shape: f32[8,32], index: 1, kind: input, shape index: {}]   ;;  %s6985_s2 = inlined_call_operand.vmem [shape: f32[1,32], index: 2, kind: input, shape index: {}]   ;;  %s6986_s3 = inlined_call_operand.vmem [shape: f32[1,32], index: 3, kind: input, shape index: {}]   ;;  %s6987_s4 = inlined_call_operand.vmem [shape: f32[9,32], index: 4, kind: input, shape index: {}]   ;;  %s6988_s5 = inlined_call_operand.vmem [shape: f32[1,32], index: 5, kind: input, shape index: {}]   ;;  %s6989_s6 = inlined_call_operand.vmem [shape: f32[1,32], index: 6, kind: input, shape index: {}]   ;;  %s6990_s7 = inlined_call_operand.hbm [shape: f32[2,16,16,32], index: 7, kind: output, shape index: {0}]   ;;  %s6991_s8 = inlined_call_operand.hbm [shape: f32[2,1,32], index: 8, kind: output, shape index: {1}]  }
   0x1   :  { %16 = vsyncpa [#allocation4 + $0x1], 0 }
   0x2   :  { %17 = vsyncpa [#allocation6], 0 }
   0x3   :  { %19 = vsyncpa [#allocation6 + $0x1], 0  ;;  %s4004_s27 = smov 0   ;;  %s4006_s28 = smov 0  }
   0x4   :  { %s4008_s29 = smov 0   ;;  %s4010_s30 = smov 0  }
   0x5 LB: > { %s4025_s9 = sadd.s32 4294967295, %s3952_s30   ;;  %s3321_s10 = sadd.s32 4294967294, %s3952_s30   ;;  %s3952_s30 = sphi %s4010_s30, %s7333_s30   ;;  %s3948_s29 = sphi %s4008_s29, %s7332_s29   ;;  %s3944_s28 = sphi %s4006_s28, %s7331_s28   ;;  %s3940_s27 = sphi %s4004_s27, %s7330_s27  }
   0x6   : > { %s4029_s11 = sadd.s32 1, %s3952_s30   ;;  %s184_s12 = sadd.s32 1, %s3948_s29 }
   0x7   : > { %s181_s13 = ssub.s32 %s3952_s30, %s4029_s11  ;;  %p194_p0 = scmp.ne.s32.totalorder %s3948_s29, %s3944_s28 }
   0x8   : > { %p182_p1 = scmp.eq.s32.totalorder %s181_s13, 0  ;;  %p195_p2 = scmp.eq.s32.totalorder %s4025_s9, 1 }
   0x9   : > { %p200_p3 = scmp.ne.s32.totalorder %s3944_s28, %s3940_s27  ;;  %p201_p4 = scmp.eq.s32.totalorder %s3321_s10, 1 }
   0xa   : > { %s4040_s14 = scalar_select %p182_p1, %s3948_s29, %s184_s12  }
   0xb   : > { %p4042_p5 = por %p195_p2, %p194_p0  ;;  %p4046_p6 = por %p201_p4, %p200_p3 }
   0xc   : > { %p3324_p7 = scmp.ge.s32.totalorder %s3952_s30, 1  ;;  %p271_p8 = scmp.lt.s32.totalorder %s3952_s30, 3 }
   0xe   : > { %p272_p9 = pnand %p3324_p7, %p271_p8 }
  0x10   : > { %275 = sbr.rel (%p272_p9) target bundleno = 740 (0x2e4), region = 48 }
  0x17   : > { %v346_v0 = vld [vmem:[%s6984_s1] sm:$0xff]  ;;  %p309_p10 = scmp.lt.s32.totalorder %s4025_s9, 1  ;;  %vm347_vm0 = vcmask 64512   ;;  %vm971_vm1 = vcmask 261120   ;;  %vm974_vm2 = vcmask 254976   ;;  %v3954_v33 = vmov 0.0  }
  0x18   : > { %3478 = vmatprep.subr.mxu0 %v346_v0  ;;  %3528 = vmatprep.subr.mxu1 %v346_v0  ;;  %977 = vst.msk [vmem:[#allocation2 + $0x20] sm:$0xff] %vm971_vm1, %v3954_v33  ;;  %972 = vst.msk [vmem:[#allocation2] sm:$0xff] %vm971_vm1, %v3954_v33  ;;  %v4183_v34 = vld [vmem:[%s6985_s2] ss:$0 sm:$0xff]  ;;  %vm1284_vm3 = vcmask 1046528   ;;  %vm1530_vm4 = vcmask 1045504  }
  0x19   : > { %3479 = vmatpush3.msra.mxu0 %v346_v0  ;;  %3529 = vmatpush3.msra.mxu1 %v346_v0  ;;  %s310_s19 = scalar_select %p309_p10, %s4025_s9, 1  ;;  %978 = vst.msk [vmem:[#allocation2 + $0x28] sm:$0x3] %vm974_vm2, %v3954_v33  ;;  %975 = vst.msk [vmem:[#allocation2 + $0x10] sm:$0x3] %vm974_vm2, %v3954_v33 }
  0x1a   : > { %973 = vst.msk [vmem:[#allocation2 + $0x8] sm:$0xff] %vm971_vm1, %v3954_v33  ;;  %976 = vst.msk [vmem:[#allocation2 + $0x18] sm:$0xff] %vm971_vm1, %v3954_v33  ;;  %v4188_v36 = vld [vmem:[%s6986_s3] ss:$0 sm:$0xff]  ;;  %s4857_s24 = sand.u32 1, %s3944_s28   ;;  %s3955_s13 = smov [#allocation3]  }
  0x1b   : > { %s3443_s20 = sshll.u32 %s310_s19, 8  ;;  %979 = vst.msk [vmem:[#allocation2 + $0x30] sm:$0xff] %vm971_vm1, %v3954_v33  ;;  %980 = vst.msk [vmem:[#allocation2 + $0x38] sm:$0xff] %vm971_vm1, %v3954_v33  ;;  %s3325_s25 = sshll.u32 %s4857_s24, 8 }
  0x1c   : > { %s4060_s23 = scalar_lea.vmem %s6983_s0, %s3443_s20  ;;  %981 = vst.msk [vmem:[#allocation2 + $0x40] sm:$0x3] %vm974_vm2, %v3954_v33  ;;  %984 = vst.msk [vmem:[#allocation2 + $0x58] sm:$0x3] %vm974_vm2, %v3954_v33  ;;  %s4948_s26 = scalar_lea.vmem [#allocation3], %s3325_s25 }
  0x1d   : > { %v314_v1 = vld [vmem:[%s4060_s23] sm:$0xff]  ;;  %v315_v3 = vld [vmem:[%s4060_s23 + $0x8] sm:$0xff]  ;;  %v316_v5 = vld [vmem:[%s4060_s23 + $0x10] sm:$0xff]  ;;  %982 = vst.msk [vmem:[#allocation2 + $0x48] sm:$0xff] %vm971_vm1, %v3954_v33  ;;  %s3444_s20 = sshll.u32 %s4025_s9, 12  ;;  %s3218_s21 = sshll.u32 %s4948_s26, 4  ;;  %s6887_s21 = int_to_ptr.vmem [resolvable:$true] %s3218_s21 }
  0x1e   : > { %v330_v2 = vld [vmem:[%s4060_s23 + $0x80] sm:$0xff]  ;;  %3480 = vmatprep.mubr.msk.f32.mxu0 %vm347_vm0, %v314_v1  ;;  %v331_v4 = vld [vmem:[%s4060_s23 + $0x88] sm:$0xff]  ;;  %v332_v6 = vld [vmem:[%s4060_s23 + $0x90] sm:$0xff]  ;;  %983 = vst.msk [vmem:[#allocation2 + $0x50] sm:$0xff] %vm971_vm1, %v3954_v33  ;;  %s6885_s25 = scalar_lea.hbm %s6990_s7, %s3444_s20  ;;  %s3201_s10 = scalar_lea.sflag [#allocation4], %s4857_s24 }
  0x1f   : > { %3504 = vmatprep.mubr.msk.f32.mxu1 %vm347_vm0, %v330_v2  ;;  %3481 = vmatmul.mubr.msk.f32.vlgmr.msra.gmra.mrb[0].mxu0 %vm347_vm0, %v315_v3  ;;  %v317_v7 = vld [vmem:[%s4060_s23 + $0x18] sm:$0xff]  ;;  %v318_v9 = vld [vmem:[%s4060_s23 + $0x20] sm:$0xff]  ;;  %v319_v11 = vld [vmem:[%s4060_s23 + $0x28] sm:$0xff]  ;;  %985 = vst.msk [vmem:[#allocation2 + $0x60] sm:$0xff] %vm971_vm1, %v3954_v33  ;;  %s3858_s12 = scalar_lea.vmem %s6887_s21, 4096  ;;  %s3862_s17 = sshll.u32 %s3955_s13, 4  ;;  %s3863_s17 = int_to_ptr.vmem [resolvable:$false] %s3862_s17 }
  0x20   : > { %3505 = vmatmul.mubr.msk.f32.vlgmr.msra.gmra.mrb[0].mxu1 %vm347_vm0, %v331_v4  ;;  %3483 = vmatprep.mubr.msk.f32.mxu0 %vm347_vm0, %v316_v5  ;;  %v333_v8 = vld [vmem:[%s4060_s23 + $0x98] sm:$0xff]  ;;  %v334_v10 = vld [vmem:[%s4060_s23 + $0xa0] sm:$0xff]  ;;  %v335_v12 = vld [vmem:[%s4060_s23 + $0xa8] sm:$0xff]  ;;  %986 = vst.msk [vmem:[#allocation2 + $0x68] sm:$0xff] %vm971_vm1, %v3954_v33  ;;  %p3859_p11 = scmp.ne.s32.totalorder %s6887_s21, %s3858_s12  ;;  %s3864_s18 = scalar_lea.vmem %s3863_s17, 8192 }
  0x21   : > { %3507 = vmatprep.mubr.msk.f32.mxu1 %vm347_vm0, %v332_v6  ;;  %v320_v13 = vld [vmem:[%s4060_s23 + $0x30] sm:$0xff]  ;;  %v321_v15 = vld [vmem:[%s4060_s23 + $0x38] sm:$0xff]  ;;  %v322_v17 = vld [vmem:[%s4060_s23 + $0x40] sm:$0xff]  ;;  %987 = vst.msk [vmem:[#allocation2 + $0x70] sm:$0x3] %vm974_vm2, %v3954_v33  ;;  %p3865_p0 = scmp.lt.s32.totalorder %s6887_s21, %s3863_s17  ;;  %p3866_p1 = scmp.lt.s32.totalorder %s3864_s18, %s3858_s12 }
  0x22   : > { %v336_v14 = vld [vmem:[%s4060_s23 + $0xb0] sm:$0xff]  ;;  %v337_v16 = vld [vmem:[%s4060_s23 + $0xb8] sm:$0xff]  ;;  %v338_v18 = vld [vmem:[%s4060_s23 + $0xc0] sm:$0xff]  ;;  %988 = vst.msk [vmem:[#allocation2 + $0x78] sm:$0xff] %vm971_vm1, %v3954_v33  ;;  %p3860_p12 = pnand %p3859_p11, %p4042_p5 }
  0x23   : > { %3484 = vmatmul.mubr.msk.f32.gmra.mrb[2].mxu0 %vm347_vm0, %v317_v7  ;;  %v323_v19 = vld [vmem:[%s4060_s23 + $0x48] sm:$0xff]  ;;  %v324_v21 = vld [vmem:[%s4060_s23 + $0x50] sm:$0xff]  ;;  %v325_v23 = vld [vmem:[%s4060_s23 + $0x58] sm:$0xff]  ;;  %989 = vst.msk [vmem:[#allocation2 + $0x80] sm:$0xff] %vm971_vm1, %v3954_v33  ;;  %p3867_p2 = por %p3866_p1, %p3865_p0 }
  0x24   : > { %3508 = vmatmul.mubr.msk.f32.gmra.mrb[2].mxu1 %vm347_vm0, %v333_v8  ;;  %3486 = vmatprep.mubr.msk.f32.mxu0 %vm347_vm0, %v318_v9  ;;  %v339_v20 = vld [vmem:[%s4060_s23 + $0xc8] sm:$0xff]  ;;  %v340_v22 = vld [vmem:[%s4060_s23 + $0xd0] sm:$0xff]  ;;  %v341_v24 = vld [vmem:[%s4060_s23 + $0xd8] sm:$0xff]  ;;  %990 = vst.msk [vmem:[#allocation2 + $0x88] sm:$0x3] %vm974_vm2, %v3954_v33  ;;  %p3861_p13 = pneg %p3860_p12 }
  0x25   : > { %3510 = vmatprep.mubr.msk.f32.mxu1 %vm347_vm0, %v334_v10  ;;  %v326_v25 = vld [vmem:[%s4060_s23 + $0x60] sm:$0xff]  ;;  %v327_v27 = vld [vmem:[%s4060_s23 + $0x68] sm:$0xff]  ;;  %v328_v29 = vld [vmem:[%s4060_s23 + $0x70] sm:$0xff]  ;;  %991 = vst.msk [vmem:[#allocation2 + $0x90] sm:$0xff] %vm971_vm1, %v3954_v33 }
  0x26   : > { %v342_v26 = vld [vmem:[%s4060_s23 + $0xe0] sm:$0xff]  ;;  %v343_v28 = vld [vmem:[%s4060_s23 + $0xe8] sm:$0xff]  ;;  %v344_v30 = vld [vmem:[%s4060_s23 + $0xf0] sm:$0xff]  ;;  %992 = vst.msk [vmem:[#allocation2 + $0x98] sm:$0xff] %vm971_vm1, %v3954_v33  ;;  %p3868_p3 = pnand %p3867_p2, %p3861_p13 }
  0x27   : > { %3487 = vmatmul.mubr.msk.f32.gmra.mrb[4].mxu0 %vm347_vm0, %v319_v11  ;;  %v329_v31 = vld [vmem:[%s4060_s23 + $0x78] sm:$0xff]  ;;  %993 = vst.msk [vmem:[#allocation2 + $0xa0] sm:$0x3] %vm974_vm2, %v3954_v33  ;;  %996 = vst.msk [vmem:[#allocation2 + $0xb8] sm:$0x3] %vm974_vm2, %v3954_v33 }
  0x28   : > { %3511 = vmatmul.mubr.msk.f32.gmra.mrb[4].mxu1 %vm347_vm0, %v335_v12  ;;  %3489 = vmatprep.mubr.msk.f32.mxu0 %vm347_vm0, %v320_v13  ;;  %v345_v32 = vld [vmem:[%s4060_s23 + $0xf8] sm:$0xff]  ;;  %994 = vst.msk [vmem:[#allocation2 + $0xa8] sm:$0xff] %vm971_vm1, %v3954_v33  ;;  %995 = vst.msk [vmem:[#allocation2 + $0xb0] sm:$0xff] %vm971_vm1, %v3954_v33 }
  0x29   : > { %3513 = vmatprep.mubr.msk.f32.mxu1 %vm347_vm0, %v336_v14  ;;  %997 = vst.msk [vmem:[#allocation2 + $0xc0] sm:$0xff] %vm971_vm1, %v3954_v33  ;;  %998 = vst.msk [vmem:[#allocation2 + $0xc8] sm:$0xff] %vm971_vm1, %v3954_v33 }
  0x2a   : > { %999 = vst.msk [vmem:[#allocation2 + $0xd0] sm:$0x3] %vm974_vm2, %v3954_v33  ;;  %1002 = vst.msk [vmem:[#allocation2 + $0xe8] sm:$0x3] %vm974_vm2, %v3954_v33 }
  0x2b   : > { %3490 = vmatmul.mubr.msk.f32.gmra.mrb[6].mxu0 %vm347_vm0, %v321_v15  ;;  %1000 = vst.msk [vmem:[#allocation2 + $0xd8] sm:$0xff] %vm971_vm1, %v3954_v33  ;;  %1001 = vst.msk [vmem:[#allocation2 + $0xe0] sm:$0xff] %vm971_vm1, %v3954_v33 }
  0x2c   : > { %3514 = vmatmul.mubr.msk.f32.gmra.mrb[6].mxu1 %vm347_vm0, %v337_v16  ;;  %3492 = vmatprep.mubr.msk.f32.mxu0 %vm347_vm0, %v322_v17  ;;  %1003 = vst.msk [vmem:[#allocation2 + $0xf0] sm:$0xff] %vm971_vm1, %v3954_v33  ;;  %1004 = vst.msk [vmem:[#allocation2 + $0xf8] sm:$0xff] %vm971_vm1, %v3954_v33 }
  0x2d   : > { %3516 = vmatprep.mubr.msk.f32.mxu1 %vm347_vm0, %v338_v18  ;;  %1005 = vst.msk [vmem:[#allocation2 + $0x100] sm:$0x3] %vm974_vm2, %v3954_v33  ;;  %1008 = vst.msk [vmem:[#allocation2 + $0x118] sm:$0x3] %vm974_vm2, %v3954_v33 }
  0x2e   : > { %1006 = vst.msk [vmem:[#allocation2 + $0x108] sm:$0xff] %vm971_vm1, %v3954_v33  ;;  %1007 = vst.msk [vmem:[#allocation2 + $0x110] sm:$0xff] %vm971_vm1, %v3954_v33 }
  0x2f   : > { %3493 = vmatmul.mubr.msk.f32.gmra.mrb[8].mxu0 %vm347_vm0, %v323_v19  ;;  %1009 = vst.msk [vmem:[#allocation2 + $0x120] sm:$0xff] %vm971_vm1, %v3954_v33  ;;  %1010 = vst.msk [vmem:[#allocation2 + $0x128] sm:$0xff] %vm971_vm1, %v3954_v33 }
  0x30   : > { %3517 = vmatmul.mubr.msk.f32.gmra.mrb[8].mxu1 %vm347_vm0, %v339_v20  ;;  %3495 = vmatprep.mubr.msk.f32.mxu0 %vm347_vm0, %v324_v21  ;;  %1011 = vst.msk [vmem:[#allocation2 + $0x130] sm:$0x3] %vm974_vm2, %v3954_v33  ;;  %1014 = vst.msk [vmem:[#allocation2 + $0x148] sm:$0x3] %vm974_vm2, %v3954_v33 }
  0x31   : > { %3519 = vmatprep.mubr.msk.f32.mxu1 %vm347_vm0, %v340_v22  ;;  %1012 = vst.msk [vmem:[#allocation2 + $0x138] sm:$0xff] %vm971_vm1, %v3954_v33  ;;  %1013 = vst.msk [vmem:[#allocation2 + $0x140] sm:$0xff] %vm971_vm1, %v3954_v33 }
  0x32   : > { %1015 = vst.msk [vmem:[#allocation2 + $0x150] sm:$0xff] %vm971_vm1, %v3954_v33  ;;  %1016 = vst.msk [vmem:[#allocation2 + $0x158] sm:$0xff] %vm971_vm1, %v3954_v33 }
  0x33   : > { %3496 = vmatmul.mubr.msk.f32.gmra.mrb[10].mxu0 %vm347_vm0, %v325_v23  ;;  %1017 = vst.msk [vmem:[#allocation2 + $0x160] sm:$0x3] %vm974_vm2, %v3954_v33  ;;  %1020 = vst.msk [vmem:[#allocation2 + $0x178] sm:$0x3] %vm974_vm2, %v3954_v33 }
  0x34   : > { %3520 = vmatmul.mubr.msk.f32.gmra.mrb[10].mxu1 %vm347_vm0, %v341_v24  ;;  %3498 = vmatprep.mubr.msk.f32.mxu0 %vm347_vm0, %v326_v25  ;;  %1018 = vst.msk [vmem:[#allocation2 + $0x168] sm:$0xff] %vm971_vm1, %v3954_v33  ;;  %1019 = vst.msk [vmem:[#allocation2 + $0x170] sm:$0xff] %vm971_vm1, %v3954_v33 }
  0x35   : > { %3522 = vmatprep.mubr.msk.f32.mxu1 %vm347_vm0, %v342_v26  ;;  %1021 = vst.msk [vmem:[#allocation2 + $0x180] sm:$0xff] %vm971_vm1, %v3954_v33  ;;  %1022 = vst.msk [vmem:[#allocation2 + $0x188] sm:$0xff] %vm971_vm1, %v3954_v33 }
  0x36   : > { %1023 = vst.msk [vmem:[#allocation2 + $0x190] sm:$0x3] %vm974_vm2, %v3954_v33  ;;  %1026 = vst.msk [vmem:[#allocation2 + $0x1a8] sm:$0x3] %vm974_vm2, %v3954_v33 }
  0x37   : > { %3499 = vmatmul.mubr.msk.f32.gmra.mrb[12].mxu0 %vm347_vm0, %v327_v27  ;;  %1024 = vst.msk [vmem:[#allocation2 + $0x198] sm:$0xff] %vm971_vm1, %v3954_v33  ;;  %1025 = vst.msk [vmem:[#allocation2 + $0x1a0] sm:$0xff] %vm971_vm1, %v3954_v33 }
  0x38   : > { %3523 = vmatmul.mubr.msk.f32.gmra.mrb[12].mxu1 %vm347_vm0, %v343_v28  ;;  %3501 = vmatprep.mubr.msk.f32.mxu0 %vm347_vm0, %v328_v29 }
  0x39   : > { %3525 = vmatprep.mubr.msk.f32.mxu1 %vm347_vm0, %v344_v30 }
  0x3b   : > { %3502 = vmatmul.mubr.msk.f32.gmra.mrb[14].mxu0 %vm347_vm0, %v329_v31 }
  0x3c   : > { %3526 = vmatmul.mubr.msk.f32.gmra.mrb[14].mxu1 %vm347_vm0, %v345_v32 }
  0xf2   : > { %v3482_v35 = vpop.f32.mrb[0].mxu0 }
  0xf3   : > { %v3506_v37 = vpop.f32.mrb[0].mxu1  ;;  %v677_v38 = vmul.f32 %v3482_v35, %v4183_v34  ;;  %v510_v40 = vpop.f32.mrb[1].mxu0 }
  0xf4   : > { %v693_v39 = vmul.f32 %v3506_v37, %v4183_v34  ;;  %v590_v41 = vpop.f32.mrb[1].mxu1  ;;  %v676_v42 = vmul.f32 %v4183_v34, %v510_v40  ;;  %v4255_v37 = vld [vmem:[%s6987_s4 + $0x1] ss:$0 sm:$0xff] }
  0xf5   : > { %v692_v43 = vmul.f32 %v4183_v34, %v590_v41  ;;  %v4195_v44 = vadd.f32 %v4188_v36, %v677_v38  ;;  %v1060_v38 = vld [vmem:[#allocation2] sm:$0xff] }
  0xf6   : > { %v4198_v45 = vadd.f32 %v4188_v36, %v693_v39  ;;  %v4201_v46 = vadd.f32 %v4188_v36, %v676_v42  ;;  %v3485_v48 = vpop.f32.mrb[2].mxu0  ;;  %v1061_v39 = vld [vmem:[#allocation2 + $0x8] sm:$0xff]  ;;  %v1062_v42 = vld [vmem:[#allocation2 + $0x10] sm:$0x3] }
  0xf7   : > { %v4204_v47 = vadd.f32 %v4188_v36, %v692_v43  ;;  %v3509_v49 = vpop.f32.mrb[2].mxu1  ;;  %v3363_v50 = vmul.f32 -1.442695, %v4195_v44  ;;  %v679_v52 = vmul.f32 %v3485_v48, %v4183_v34  ;;  %v520_v54 = vpop.f32.mrb[3].mxu0 }
  0xf8   : > { %v3379_v51 = vmul.f32 -1.442695, %v4198_v45  ;;  %v695_v53 = vmul.f32 %v3509_v49, %v4183_v34  ;;  %v600_v55 = vpop.f32.mrb[3].mxu1  ;;  %v3362_v56 = vmul.f32 -1.442695, %v4201_v46  ;;  %v678_v58 = vmul.f32 %v4183_v34, %v520_v54 }
  0xf9   : > { %v3378_v57 = vmul.f32 -1.442695, %v4204_v47  ;;  %v694_v59 = vmul.f32 %v4183_v34, %v600_v55  ;;  %3577 = vpow2.f32 %v3363_v50  ;;  %v4215_v60 = vadd.f32 %v4188_v36, %v679_v52 }
  0xfa   : > { %v4218_v61 = vadd.f32 %v4188_v36, %v695_v53  ;;  %3579 = vpow2.f32 %v3379_v51  ;;  %v4221_v62 = vadd.f32 %v4188_v36, %v678_v58  ;;  %v3488_v0 = vpop.f32.mrb[4].mxu0  ;;  %v4260_v51 = vld [vmem:[%s6987_s4] ss:$0 sm:$0xff]  ;;  %v1188_v52 = vmul.f32 %v4255_v37, %v1060_v38 }
  0xfb   : > { %v4224_v63 = vadd.f32 %v4188_v36, %v694_v59  ;;  %v3512_v1 = vpop.f32.mrb[4].mxu1  ;;  %3581 = vpow2.f32 %v3362_v56  ;;  %v3365_v2 = vmul.f32 -1.442695, %v4215_v60  ;;  %v681_v4 = vmul.f32 %v3488_v0, %v4183_v34  ;;  %v530_v5 = vpop.f32.mrb[5].mxu0 }
  0xfc   : > { %v3381_v3 = vmul.f32 -1.442695, %v4218_v61  ;;  %v610_v6 = vpop.f32.mrb[5].mxu1  ;;  %3583 = vpow2.f32 %v3378_v57  ;;  %v3364_v7 = vmul.f32 -1.442695, %v4221_v62  ;;  %v697_v9 = vmul.f32 %v3512_v1, %v4183_v34 }
  0xfd   : > { %v3380_v8 = vmul.f32 -1.442695, %v4224_v63  ;;  %3585 = vpow2.f32 %v3365_v2  ;;  %v4233_v10 = vadd.f32 %v4188_v36, %v681_v4  ;;  %v680_v11 = vmul.f32 %v4183_v34, %v530_v5  ;;  %v4268_v1 = vld [vmem:[%s6987_s4 + $0x2] ss:$0 sm:$0xff] }
  0xfe   : > { %v696_v12 = vmul.f32 %v4183_v34, %v610_v6  ;;  %3587 = vpow2.f32 %v3381_v3  ;;  %v4238_v13 = vadd.f32 %v4188_v36, %v697_v9  ;;  %v3491_v14 = vpop.f32.mrb[6].mxu0  ;;  %v1189_v53 = vmul.f32 %v4255_v37, %v1061_v39 }
  0xff   : > { %v3515_v15 = vpop.f32.mrb[6].mxu1  ;;  %3589 = vpow2.f32 %v3364_v7  ;;  %v3367_v16 = vmul.f32 -1.442695, %v4233_v10  ;;  %v4242_v17 = vadd.f32 %v4188_v36, %v680_v11  ;;  %v540_v19 = vpop.f32.mrb[7].mxu0  ;;  %v1190_v57 = vmul.f32 %v4255_v37, %v1062_v42 }
 0x100   : > { %v4245_v18 = vadd.f32 %v4188_v36, %v696_v12  ;;  %v4247_v20 = vpop.f32.mrb[7].mxu1  ;;  %3591 = vpow2.f32 %v3380_v8  ;;  %v3383_v21 = vmul.f32 -1.442695, %v4238_v13  ;;  %v1119_v2 = vmul.f32 %v4260_v51, %v1060_v38 }
 0x101   : > { %3593 = vpow2.f32 %v3367_v16  ;;  %v3366_v22 = vmul.f32 -1.442695, %v4242_v17  ;;  %v683_v3 = vmul.f32 %v3491_v14, %v4183_v34  ;;  %v1285_v5 = vrot.slane %v1188_v52, 1 }
 0x102   : > { %v3382_v23 = vmul.f32 -1.442695, %v4245_v18  ;;  %3595 = vpow2.f32 %v3383_v21  ;;  %v3494_v31 = vpop.f32.mrb[8].mxu0  ;;  %v1286_v6 = vrot.slane %v1189_v53, 1  ;;  %v699_v7 = vmul.f32 %v3515_v15, %v4183_v34 }
 0x103   : > { %v3578_v24 = vpop.eup %3577  ;;  %3597 = vpow2.f32 %v3366_v22  ;;  %v3518_v55 = vpop.f32.mrb[8].mxu1  ;;  %v1120_v9 = vmul.f32 %v4260_v51, %v1061_v39  ;;  %v1288_v11 = vrot.slane %v1190_v57, 1  ;;  %v682_v12 = vmul.f32 %v4183_v34, %v540_v19 }
 0x104   : > { %v3580_v25 = vpop.eup %3579  ;;  %v844_v26 = vadd.f32 1.0, %v3578_v24  ;;  %3599 = vpow2.f32 %v3382_v23  ;;  %v1434_v22 = vmul.f32 %v4268_v1, %v1060_v38  ;;  %v4278_v14 = vmul.f32 %v4268_v1, %v1061_v39 }
 0x105   : > { %v3582_v27 = vpop.eup %3581  ;;  %v860_v28 = vadd.f32 1.0, %v3580_v25  ;;  %v698_v23 = vmul.f32 %v4183_v34, %v4247_v20  ;;  %v1436_v25 = vmul.f32 %v4268_v1, %v1062_v42  ;;  %v685_v19 = vmul.f32 %v3494_v31, %v4183_v34 }
 0x106   : > { %v3584_v29 = vpop.eup %3583  ;;  %3601 = vrcp.f32 %v844_v26  ;;  %v843_v30 = vadd.f32 1.0, %v3582_v27  ;;  %v4285_v26 = vadd.f32 %v4188_v36, %v683_v3  ;;  %v701_v20 = vmul.f32 %v3518_v55, %v4183_v34 }
 0x107   : > { %v3586_v32 = vpop.eup %3585  ;;  %3603 = vrcp.f32 %v860_v28  ;;  %v859_v33 = vadd.f32 1.0, %v3584_v29  ;;  %v1287_v28 = vsel %vm1284_vm3, %v1285_v5, %v1286_v6  ;;  %v4292_v29 = vadd.f32 %v4188_v36, %v699_v7 }
 0x108   : > { %v3588_v35 = vpop.eup %3587  ;;  %3605 = vrcp.f32 %v843_v30  ;;  %v846_v40 = vadd.f32 1.0, %v3586_v32  ;;  %7046 = vst [vmem:[#allocation9_spill] sm:$0xff] %v4285_v26  ;;  %v1289_v30 = vsel %vm1284_vm3, %v1286_v6, %v1288_v11  ;;  %v3369_v42 = vmul.f32 -1.442695, %v4285_v26  ;;  %v4335_v6 = vld [vmem:[%s6987_s4 + $0x4] ss:$0 sm:$0xff] }
 0x109   : > { %v3590_v41 = vpop.eup %3589  ;;  %3607 = vrcp.f32 %v859_v33  ;;  %v862_v43 = vadd.f32 1.0, %v3588_v35  ;;  %7047 = vst [vmem:[#allocation10_spill] sm:$0xff] %v4292_v29  ;;  %v4299_v33 = vadd.f32 %v4188_v36, %v682_v12  ;;  %v3385_v52 = vmul.f32 -1.442695, %v4292_v29 }
 0x10a   : > { %v3592_v48 = vpop.eup %3591  ;;  %3609 = vrcp.f32 %v846_v40  ;;  %v845_v49 = vadd.f32 1.0, %v3590_v41  ;;  %v4304_v40 = vadd.f32 %v4188_v36, %v698_v23  ;;  %v4317_v53 = vadd.f32 %v4188_v36, %v701_v20 }
 0x10b   : > { %v3594_v50 = vpop.eup %3593  ;;  %3611 = vrcp.f32 %v862_v43  ;;  %v861_v54 = vadd.f32 1.0, %v3592_v48  ;;  %7048 = vst [vmem:[#allocation11_spill] sm:$0xff] %v4299_v33  ;;  %v4310_v43 = vadd.f32 %v4188_v36, %v685_v19  ;;  %v550_v48 = vpop.f32.mrb[9].mxu0  ;;  %v1398_v3 = vadd.f32 %v1289_v30, %v1120_v9 }
 0x10c   : > { %v3596_v56 = vpop.eup %3595  ;;  %3613 = vrcp.f32 %v845_v49  ;;  %v848_v58 = vadd.f32 1.0, %v3594_v50  ;;  %7049 = vst [vmem:[#allocation12_spill] sm:$0xff] %v4304_v40  ;;  %v1532_v50 = vrot.slane %v4278_v14, 2  ;;  %7051 = vst [vmem:[#allocation14_spill] sm:$0xff] %v4317_v53 }
 0x10d   : > { %3615 = vrcp.f32 %v861_v54  ;;  %v864_v59 = vadd.f32 1.0, %v3596_v56  ;;  %v3598_v0 = vpop.eup %3597  ;;  %7050 = vst [vmem:[#allocation13_spill] sm:$0xff] %v4310_v43  ;;  %v3368_v56 = vmul.f32 -1.442695, %v4299_v33 }
 0x10e   : > { %3617 = vrcp.f32 %v848_v58  ;;  %v3600_v4 = vpop.eup %3599  ;;  %v847_v31 = vadd.f32 1.0, %v3598_v0  ;;  %v1397_v58 = vadd.f32 %v1287_v28, %v1119_v2  ;;  %v3387_v2 = vmul.f32 -1.442695, %v4317_v53 }
 0x10f   : > { %3619 = vrcp.f32 %v864_v59  ;;  %v863_v39 = vadd.f32 1.0, %v3600_v4  ;;  %v3384_v59 = vmul.f32 -1.442695, %v4304_v40 }
 0x110   : > { %v3602_v8 = vpop.eup %3601  ;;  %3621 = vrcp.f32 %v847_v31 }
 0x111   : > { %v3604_v16 = vpop.eup %3603  ;;  %v940_v21 = vmul.f32 %v3602_v8, %v4195_v44  ;;  %3623 = vrcp.f32 %v863_v39  ;;  %v4343_v8 = vld [vmem:[%s6987_s4 + $0x5] ss:$0 sm:$0xff]  ;;  %v4394_v39 = vld [vmem:[%s6987_s4 + $0x8] ss:$0 sm:$0xff] }
 0x112   : > { %v3606_v24 = vpop.eup %3605  ;;  %v956_v15 = vmul.f32 %v3604_v16, %v4198_v45  ;;  %3625 = vpow2.f32 %v3369_v42 }
 0x113   : > { %v3608_v27 = vpop.eup %3607  ;;  %1029 = vst.msk [vmem:[#allocation2 + $0x21] sm:$0xff] %vm971_vm1, %v940_v21  ;;  %v939_v44 = vmul.f32 %v3606_v24, %v4201_v46  ;;  %v1531_v46 = vrot.slane %v1434_v22, 2  ;;  %3627 = vpow2.f32 %v3385_v52 }
 0x114   : > { %v3610_v45 = vpop.eup %3609  ;;  %1045 = vst.msk [vmem:[#allocation2 + $0xe1] sm:$0xff] %vm971_vm1, %v956_v15  ;;  %v955_v32 = vmul.f32 %v3608_v27, %v4204_v47  ;;  %3629 = vpow2.f32 %v3368_v56 }
 0x115   : > { %v3612_v35 = vpop.eup %3611  ;;  %1028 = vst.msk [vmem:[#allocation2 + $0x19] sm:$0xff] %vm971_vm1, %v939_v44  ;;  %v942_v38 = vmul.f32 %v3610_v45, %v4215_v60  ;;  %v1533_v5 = vsel %vm1530_vm4, %v1531_v46, %v1532_v50  ;;  %3631 = vpow2.f32 %v3384_v59 }
 0x116   : > { %v3614_v41 = vpop.eup %3613  ;;  %1044 = vst.msk [vmem:[#allocation2 + $0xd9] sm:$0xff] %vm971_vm1, %v955_v32  ;;  %v958_v47 = vmul.f32 %v3612_v35, %v4218_v61  ;;  %v1534_v61 = vrot.slane %v1436_v25, 2  ;;  %v1643_v12 = vadd.f32 %v1533_v5, %v1397_v58  ;;  %v4379_v32 = vld [vmem:[%s6987_s4 + $0x3] ss:$0 sm:$0xff] }
 0x117   : > { %v3616_v49 = vpop.eup %3615  ;;  %1031 = vst.msk [vmem:[#allocation2 + $0x39] sm:$0xff] %vm971_vm1, %v942_v38  ;;  %v941_v60 = vmul.f32 %v3614_v41, %v4221_v62  ;;  %v4389_v38 = vld [vmem:[%s6987_s4 + $0x7] ss:$0 sm:$0xff] }
 0x118   : > { %v3618_v54 = vpop.eup %3617  ;;  %1047 = vst.msk [vmem:[#allocation2 + $0xf9] sm:$0xff] %vm971_vm1, %v958_v47  ;;  %v957_v55 = vmul.f32 %v3616_v49, %v4224_v63  ;;  %v3371_v63 = vmul.f32 -1.442695, %v4310_v43  ;;  %v1535_v7 = vsel %vm1530_vm4, %v1532_v50, %v1534_v61 }
 0x119   : > { %v3620_v57 = vpop.eup %3619  ;;  %1030 = vst.msk [vmem:[#allocation2 + $0x31] sm:$0xff] %vm971_vm1, %v941_v60  ;;  %v944_v62 = vmul.f32 %v3618_v54, %v4233_v10  ;;  %v684_v10 = vmul.f32 %v4183_v34, %v550_v48  ;;  %v1644_v21 = vadd.f32 %v1535_v7, %v1398_v3 }
 0x11a   : > { %v1065_v0 = vld [vmem:[#allocation2 + $0x28] sm:$0x3]  ;;  %1046 = vst.msk [vmem:[#allocation2 + $0xf1] sm:$0xff] %vm971_vm1, %v957_v55  ;;  %v960_v4 = vmul.f32 %v3620_v57, %v4238_v13  ;;  %3633 = vpow2.f32 %v3371_v63  ;;  %v4370_v44 = vpop.eup %3621 }
 0x11b   : > { %1033 = vst.msk [vmem:[#allocation2 + $0x51] sm:$0xff] %vm971_vm1, %v944_v62  ;;  %v1193_v13 = vmul.f32 %v4255_v37, %v1065_v0  ;;  %v1089_v11 = vld [vmem:[#allocation2 + $0xe8] sm:$0x3]  ;;  %v1439_v16 = vmul.f32 %v4268_v1, %v1065_v0  ;;  %3635 = vpow2.f32 %v3387_v2  ;;  %v4351_v22 = vadd.f32 %v4188_v36, %v684_v10  ;;  %v4381_v31 = vpop.eup %3623 }
 0x11c   : > { %1049 = vst.msk [vmem:[#allocation2 + $0x111] sm:$0xff] %vm971_vm1, %v960_v4  ;;  %v4345_v9 = vld [vmem:[#allocation2 + $0x18] sm:$0xff]  ;;  %v4347_v34 = vld [vmem:[#allocation2 + $0x20] sm:$0xff]  ;;  %v1751_v14 = vmul.f32 %v4335_v6, %v1065_v0  ;;  %v4355_v23 = vmul.f32 %v4343_v8, %v1065_v0  ;;  %v4362_v19 = vmul.f32 %v4255_v37, %v1089_v11  ;;  %v4365_v27 = vmul.f32 %v4268_v1, %v1089_v11  ;;  %v4400_v42 = vpop.eup %3625 }
 0x11d   : > { %7052 = vst [vmem:[#allocation15_spill] sm:$0xff] %v4351_v22  ;;  %v1191_v24 = vmul.f32 %v4255_v37, %v4345_v9  ;;  %v1192_v15 = vmul.f32 %v4255_v37, %v4347_v34  ;;  %v1293_v25 = vrot.slane %v1193_v13, 1  ;;  %v4368_v36 = vmul.f32 %v4335_v6, %v1089_v11  ;;  %v4409_v52 = vpop.eup %3627 }
 0x11e   : > { %v1437_v45 = vmul.f32 %v4268_v1, %v4345_v9  ;;  %v1438_v30 = vmul.f32 %v4268_v1, %v4347_v34  ;;  %v1539_v35 = vrot.slane %v1439_v16, 2  ;;  %v4384_v46 = vmul.f32 %v4343_v8, %v1089_v11  ;;  %v4417_v57 = vpop.eup %3629 }
 0x11f   : > { %v1290_v28 = vrot.slane %v1191_v24, 1  ;;  %v1291_v20 = vrot.slane %v1192_v15, 1  ;;  %v1749_v41 = vmul.f32 %v4335_v6, %v4345_v9  ;;  %v1750_v47 = vmul.f32 %v4335_v6, %v4347_v34  ;;  %v4421_v3 = vpop.eup %3631  ;;  %v4435_v24 = vld [vmem:[#allocation2 + $0xe0] sm:$0xff] }
 0x120   : > { %v1848_v48 = vrot.slane %v1751_v14, 1  ;;  %v4404_v50 = vmul.f32 %v4389_v38, %v1089_v11  ;;  %v4407_v60 = vmul.f32 %v4394_v39, %v1089_v11  ;;  %v1680_v55 = vmul.f32 %v4379_v32, %v4345_v9  ;;  %7053 = vst [vmem:[#allocation16_spill] sm:$0xff] %v4421_v3  ;;  %v4433_v14 = vld [vmem:[#allocation2 + $0xd8] sm:$0xff] }
 0x121   : > { %v1681_v56 = vmul.f32 %v4379_v32, %v4347_v34  ;;  %v1292_v58 = vsel %vm1284_vm3, %v1290_v28, %v1291_v20  ;;  %v1294_v62 = vsel %vm1284_vm3, %v1291_v20, %v1293_v25  ;;  %v1536_v59 = vrot.slane %v1437_v45, 2  ;;  %v4634_v40 = vld [vmem:[#allocation2 + $0xf8] sm:$0xff] }
 0x122   : > { %v1537_v0 = vrot.slane %v1438_v30, 2  ;;  %v1121_v4 = vmul.f32 %v4260_v51, %v4345_v9  ;;  %v1122_v63 = vmul.f32 %v4260_v51, %v4347_v34  ;;  %v1845_v5 = vrot.slane %v1749_v41, 1 }
 0x123   : > { %v1846_v2 = vrot.slane %v1750_v47, 1  ;;  %v1888_v7 = vrot.slane %v4368_v36, 1  ;;  %v2133_v13 = vrot.slane %v4384_v46, 2  ;;  %v2442_v11 = vrot.slane %v4404_v50, 1 }
 0x124   : > { %v4427_v10 = vpop.eup %3633  ;;  %v2687_v16 = vrot.slane %v4407_v60, 2  ;;  %v1399_v25 = vadd.f32 %v1292_v58, %v1121_v4  ;;  %v1400_v28 = vadd.f32 %v1294_v62, %v1122_v63  ;;  %v1712_v20 = vadd.f32 %v1680_v55, %v1643_v12  ;;  %v4459_v55 = vpop.f32.mrb[9].mxu1 }
 0x125   : > { %7054 = vst [vmem:[#allocation17_spill] sm:$0xff] %v4427_v10  ;;  %v4437_v15 = vpop.eup %3635  ;;  %v1713_v45 = vadd.f32 %v1681_v56, %v1644_v21  ;;  %v1538_v30 = vsel %vm1530_vm4, %v1536_v59, %v1537_v0  ;;  %v1540_v36 = vsel %vm1530_vm4, %v1537_v0, %v1539_v35  ;;  %v1994_v46 = vmul.f32 %v4343_v8, %v4345_v9  ;;  %v4606_v43 = vpop.f32.mrb[10].mxu1 }
 0x126   : > { %7055 = vst [vmem:[#allocation18_spill] sm:$0xff] %v4437_v15  ;;  %v1995_v41 = vmul.f32 %v4343_v8, %v4347_v34  ;;  %v1847_v47 = vsel %vm1284_vm3, %v1845_v5, %v1846_v2  ;;  %v1849_v50 = vsel %vm1284_vm3, %v1846_v2, %v1848_v48  ;;  %v1215_v60 = vmul.f32 %v4255_v37, %v4433_v14 }
 0x127   : > { %v1216_v12 = vmul.f32 %v4255_v37, %v4435_v24  ;;  %v1137_v21 = vmul.f32 %v4260_v51, %v4433_v14  ;;  %v1138_v35 = vmul.f32 %v4260_v51, %v4435_v24  ;;  %v1773_v9 = vmul.f32 %v4335_v6, %v4433_v14  ;;  %7056 = vst [vmem:[#allocation19_spill] sm:$0xff] %v4459_v55 }
 0x128   : > { %v1774_v34 = vmul.f32 %v4335_v6, %v4435_v24  ;;  %v4461_v48 = vadd.f32 %v1538_v30, %v1399_v25  ;;  %v4463_v56 = vadd.f32 %v1540_v36, %v1400_v28  ;;  %v2018_v58 = vmul.f32 %v4343_v8, %v4433_v14  ;;  %7073 = vst [vmem:[#allocation34_spill] sm:$0xff] %v4606_v43 }
 0x129   : > { %v2019_v62 = vmul.f32 %v4343_v8, %v4435_v24  ;;  %v1957_v59 = vadd.f32 %v1847_v47, %v1712_v20  ;;  %v1958_v0 = vadd.f32 %v1849_v50, %v1713_v45  ;;  %v1885_v4 = vrot.slane %v1773_v9, 1  ;;  %v1068_v9 = vld [vmem:[#allocation2 + $0x40] sm:$0x3] }
 0x12a   : > { %v1886_v63 = vrot.slane %v1774_v34, 1  ;;  %v1330_v5 = vrot.slane %v1215_v60, 1  ;;  %v1331_v2 = vrot.slane %v1216_v12, 1  ;;  %v2130_v61 = vrot.slane %v2018_v58, 2 }
 0x12b   : > { %v2131_v49 = vrot.slane %v2019_v62, 2  ;;  %v2329_v28 = vmul.f32 %v4389_v38, %v4433_v14  ;;  %v2330_v30 = vmul.f32 %v4389_v38, %v4435_v24  ;;  %v2574_v36 = vmul.f32 %v4394_v39, %v4433_v14 }
 0x12c   : > { %v4470_v54 = vsel %vm1284_vm3, %v1885_v4, %v1886_v63  ;;  %v4473_v25 = vsel %vm1284_vm3, %v1886_v63, %v1888_v7  ;;  %v2575_v47 = vmul.f32 %v4394_v39, %v4435_v24  ;;  %v2090_v7 = vrot.slane %v1994_v46, 2  ;;  %v4510_v63 = vld [vmem:[%s6987_s4 + $0x6] ss:$0 sm:$0xff] }
 0x12d   : > { %7057 = vst [vmem:[#allocation20_spill] sm:$0xff] %v4470_v54  ;;  %7058 = vst [vmem:[#allocation21_spill] sm:$0xff] %v4473_v25  ;;  %v4480_v20 = vsel %vm1530_vm4, %v2130_v61, %v2131_v49  ;;  %v4483_v45 = vsel %vm1530_vm4, %v2131_v49, %v2133_v13  ;;  %v2091_v50 = vrot.slane %v1995_v41, 2  ;;  %v2439_v60 = vrot.slane %v2329_v28, 1 }
 0x12e   : > { %7059 = vst [vmem:[#allocation22_spill] sm:$0xff] %v4480_v20  ;;  %7060 = vst [vmem:[#allocation23_spill] sm:$0xff] %v4483_v45  ;;  %v2440_v12 = vrot.slane %v2330_v30, 1  ;;  %v4491_v34 = vmul.f32 %v4268_v1, %v4433_v14  ;;  %v4495_v61 = vmul.f32 %v4268_v1, %v4435_v24  ;;  %v2684_v49 = vrot.slane %v2574_v36, 2 }
 0x12f   : > { %v2685_v13 = vrot.slane %v2575_v47, 2  ;;  %v1332_v58 = vsel %vm1284_vm3, %v1330_v5, %v1331_v2  ;;  %v7061_v62 = vrot.slane %v4362_v19, 1  ;;  %7064 = vst [vmem:[#allocation26_spill] sm:$0xff] %v4510_v63  ;;  %v1196_v19 = vmul.f32 %v4255_v37, %v1068_v9 }
 0x130   : > { %v4502_v41 = vsel %vm1284_vm3, %v2439_v60, %v2440_v12  ;;  %v4505_v4 = vsel %vm1284_vm3, %v2440_v12, %v2442_v11  ;;  %v2092_v30 = vsel %vm1530_vm4, %v2090_v7, %v2091_v50  ;;  %v7067_v11 = vrot.slane %v4355_v23, 2  ;;  %v4538_v7 = vld [vmem:[#allocation2 + $0x38] sm:$0xff] }
 0x131   : > { %v1334_v46 = vsel %vm1284_vm3, %v1331_v2, %v7061_v62  ;;  %7062 = vst [vmem:[#allocation24_spill] sm:$0xff] %v4502_v41  ;;  %7063 = vst [vmem:[#allocation25_spill] sm:$0xff] %v4505_v4  ;;  %v4513_v28 = vsel %vm1530_vm4, %v2684_v49, %v2685_v13  ;;  %v4516_v5 = vsel %vm1530_vm4, %v2685_v13, %v2687_v16  ;;  %v4536_v62 = vld [vmem:[#allocation2 + $0x30] sm:$0xff] }
 0x132   : > { %7065 = vst [vmem:[#allocation27_spill] sm:$0xff] %v4513_v28  ;;  %7066 = vst [vmem:[#allocation28_spill] sm:$0xff] %v4516_v5  ;;  %v4520_v2 = vmul.f32 %v4268_v1, %v1068_v9  ;;  %v2094_v36 = vsel %vm1530_vm4, %v2091_v50, %v7067_v11  ;;  %v4528_v47 = vmul.f32 %v4379_v32, %v4433_v14 }
 0x133   : > { %v4532_v60 = vmul.f32 %v4379_v32, %v4435_v24  ;;  %v2202_v16 = vadd.f32 %v2092_v30, %v1957_v59  ;;  %v2203_v12 = vadd.f32 %v2094_v36, %v1958_v0  ;;  %v4540_v23 = vadd.f32 %v1332_v58, %v1137_v21  ;;  %v1092_v0 = vld [vmem:[#allocation2 + $0x100] sm:$0x3] }
 0x134   : > { %7068 = vst [vmem:[#allocation29_spill] sm:$0xff] %v4528_v47  ;;  %v4542_v50 = vadd.f32 %v1334_v46, %v1138_v35  ;;  %v4546_v11 = vmul.f32 %v4510_v63, %v4433_v14  ;;  %v4550_v59 = vmul.f32 %v4510_v63, %v4435_v24  ;;  %v1298_v30 = vrot.slane %v1196_v19, 1  ;;  %v4567_v46 = vpop.f32.mrb[10].mxu0 }
 0x135   : > { %7069 = vst [vmem:[#allocation30_spill] sm:$0xff] %v4532_v60  ;;  %v4554_v49 = vmul.f32 %v4335_v6, %v1068_v9  ;;  %v4557_v21 = vmul.f32 %v4343_v8, %v1068_v9  ;;  %v2310_v35 = vmul.f32 %v4389_v38, %v1068_v9  ;;  %v4561_v58 = vmul.f32 %v4394_v39, %v1068_v9 }
 0x136   : > { %7070 = vst [vmem:[#allocation31_spill] sm:$0xff] %v4546_v11  ;;  %7071 = vst [vmem:[#allocation32_spill] sm:$0xff] %v4550_v59  ;;  %v1194_v14 = vmul.f32 %v4255_v37, %v4536_v62  ;;  %v1195_v24 = vmul.f32 %v4255_v37, %v4538_v7  ;;  %v4570_v19 = vmul.f32 %v4255_v37, %v1092_v0 }
 0x137   : > { %7072 = vst [vmem:[#allocation33_spill] sm:$0xff] %v4567_v46  ;;  %v4573_v36 = vmul.f32 %v4268_v1, %v1092_v0  ;;  %v4576_v13 = vmul.f32 %v4335_v6, %v1092_v0  ;;  %v4579_v9 = vmul.f32 %v4343_v8, %v1092_v0  ;;  %v4582_v5 = vmul.f32 %v4389_v38, %v1092_v0 }
 0x138   : > { %v4585_v28 = vmul.f32 %v4394_v39, %v1092_v0  ;;  %v1295_v4 = vrot.slane %v1194_v14, 1  ;;  %v1296_v41 = vrot.slane %v1195_v24, 1  ;;  %v1853_v59 = vrot.slane %v4554_v49, 1  ;;  %v4632_v14 = vld [vmem:[#allocation2 + $0xf0] sm:$0xff] }
 0x139   : > { %v1123_v45 = vmul.f32 %v4260_v51, %v4536_v62  ;;  %v1124_v20 = vmul.f32 %v4260_v51, %v4538_v7  ;;  %v2407_v25 = vrot.slane %v2310_v35, 1  ;;  %v2652_v54 = vrot.slane %v4561_v58, 2 }
 0x13a   : > { %v1297_v60 = vsel %vm1284_vm3, %v1295_v4, %v1296_v41  ;;  %v1299_v0 = vsel %vm1284_vm3, %v1296_v41, %v1298_v30  ;;  %v1752_v41 = vmul.f32 %v4335_v6, %v4536_v62  ;;  %v1753_v4 = vmul.f32 %v4335_v6, %v4538_v7 }
 0x13b   : > { %v4598_v49 = vadd.f32 %v1297_v60, %v1123_v45  ;;  %v4600_v11 = vadd.f32 %v1299_v0, %v1124_v20  ;;  %v2239_v20 = vmul.f32 %v4510_v63, %v4536_v62  ;;  %v2240_v45 = vmul.f32 %v4510_v63, %v4538_v7 }
 0x13c   : > { %v4618_v60 = vmul.f32 %v4268_v1, %v4536_v62  ;;  %v4622_v30 = vmul.f32 %v4268_v1, %v4538_v7  ;;  %v2308_v0 = vmul.f32 %v4389_v38, %v4536_v62  ;;  %v2309_v53 = vmul.f32 %v4389_v38, %v4538_v7 }
 0x13d   : > { %v2271_v24 = vadd.f32 %v2239_v20, %v2202_v16  ;;  %v2272_v58 = vadd.f32 %v2240_v45, %v2203_v12  ;;  %v2553_v47 = vmul.f32 %v4394_v39, %v4536_v62  ;;  %v2554_v35 = vmul.f32 %v4394_v39, %v4538_v7 }
 0x13e   : > { %v1682_v33 = vmul.f32 %v4379_v32, %v4536_v62  ;;  %v1683_v43 = vmul.f32 %v4379_v32, %v4538_v7  ;;  %v2404_v46 = vrot.slane %v2308_v0, 1  ;;  %v2405_v55 = vrot.slane %v2309_v53, 1 }
 0x13f   : > { %v1850_v16 = vrot.slane %v1752_v41, 1  ;;  %v1851_v12 = vrot.slane %v1753_v4, 1  ;;  %v2649_v20 = vrot.slane %v2553_v47, 2  ;;  %v2650_v45 = vrot.slane %v2554_v35, 2 }
 0x140   : > { %v2406_v29 = vsel %vm1284_vm3, %v2404_v46, %v2405_v55  ;;  %v2408_v26 = vsel %vm1284_vm3, %v2405_v55, %v2407_v25  ;;  %v1218_v22 = vmul.f32 %v4255_v37, %v4632_v14  ;;  %v1219_v15 = vmul.f32 %v4255_v37, %v4634_v40  ;;  %v4655_v25 = vld [vmem:[%s6988_s5] ss:$0 sm:$0xff] }
 0x141   : > { %v1714_v10 = vadd.f32 %v1682_v33, %v4461_v48  ;;  %v1715_v3 = vadd.f32 %v1683_v43, %v4463_v56  ;;  %v2516_v0 = vadd.f32 %v2406_v29, %v2271_v24  ;;  %v2517_v53 = vadd.f32 %v2408_v26, %v2272_v58 }
 0x142   : > { %v2651_v46 = vsel %vm1530_vm4, %v2649_v20, %v2650_v45  ;;  %v2653_v55 = vsel %vm1530_vm4, %v2650_v45, %v2652_v54  ;;  %v4659_v33 = vmul.f32 %v4343_v8, %v4536_v62  ;;  %v4663_v26 = vmul.f32 %v4343_v8, %v4538_v7  ;;  %v4670_v54 = vld [vmem:[%s6989_s6] ss:$0 sm:$0xff]  ;;  %v4678_v20 = vpop.f32.mrb[11].mxu0 }
 0x143   : > { %v2761_v29 = vadd.f32 %v2651_v46, %v2516_v0  ;;  %v2762_v43 = vadd.f32 %v2653_v55, %v2517_v53  ;;  %v1852_v48 = vsel %vm1284_vm3, %v1850_v16, %v1851_v12  ;;  %v1854_v56 = vsel %vm1284_vm3, %v1851_v12, %v1853_v59  ;;  %7074 = vst [vmem:[#allocation35_spill] sm:$0xff] %v4678_v20 }
 0x144   : > { %v1335_v24 = vrot.slane %v1218_v22, 1  ;;  %v1336_v35 = vrot.slane %v1219_v15, 1  ;;  %v4672_v58 = vadd.f32 %v1852_v48, %v1714_v10  ;;  %v4674_v62 = vadd.f32 %v1854_v56, %v1715_v3 }
 0x145   : > { %v2800_v7 = vmul.f32 %v4655_v25, %v2761_v29  ;;  %v2801_v4 = vmul.f32 %v4655_v25, %v2762_v43  ;;  %v1139_v59 = vmul.f32 %v4260_v51, %v4632_v14  ;;  %v1140_v16 = vmul.f32 %v4260_v51, %v4634_v40 }
 0x146   : > { %v7075_v12 = vrot.slane %v4495_v61, 2  ;;  %v7076_v22 = vrot.slane %v4491_v34, 2  ;;  %v7077_v3 = vrot.slane %v4365_v27, 2  ;;  %v1776_v46 = vmul.f32 %v4335_v6, %v4632_v14 }
 0x147   : > { %v4695_v0 = vadd.f32 %v4670_v54, %v2800_v7  ;;  %v4698_v53 = vadd.f32 %v4670_v54, %v2801_v4  ;;  %v1777_v34 = vmul.f32 %v4335_v6, %v4634_v40  ;;  %v1337_v55 = vsel %vm1284_vm3, %v1335_v24, %v1336_v35 }
 0x148   : > { %v1578_v10 = vsel %vm1530_vm4, %v7076_v22, %v7075_v12  ;;  %v7078_v15 = vmov %v7075_v12  ;;  %v7079_v27 = vrot.slane %v4570_v19, 1  ;;  %v4710_v29 = vmul.f32 %v4268_v1, %v4632_v14 }
 0x149   : > { %v1580_v45 = vsel %vm1530_vm4, %v7078_v15, %v7077_v3  ;;  %v4714_v43 = vmul.f32 %v4268_v1, %v4634_v40  ;;  %v3405_v48 = vmul.f32 -1.442695, %v4695_v0  ;;  %v3406_v56 = vmul.f32 -1.442695, %v4698_v53 }
 0x14a   : > { %v1339_v61 = vsel %vm1284_vm3, %v1336_v35, %v7079_v27  ;;  %v1661_v7 = vadd.f32 %v1578_v10, %v4540_v23  ;;  %v1698_v24 = vmul.f32 %v4379_v32, %v4632_v14  ;;  %v1662_v19 = vadd.f32 %v1580_v45, %v4542_v50 }
 0x14b   : > { %v1699_v35 = vmul.f32 %v4379_v32, %v4634_v40  ;;  %v2332_v4 = vmul.f32 %v4389_v38, %v4632_v14  ;;  %v2333_v12 = vmul.f32 %v4389_v38, %v4634_v40  ;;  %3637 = vpow2.f32 %v3405_v48 }
 0x14c   : > { %v1890_v22 = vrot.slane %v1776_v46, 1  ;;  %v1891_v3 = vrot.slane %v1777_v34, 1  ;;  %v2577_v23 = vmul.f32 %v4394_v39, %v4632_v14  ;;  %3639 = vpow2.f32 %v3406_v56 }
 0x14d   : > { %v2444_v10 = vrot.slane %v2332_v4, 1  ;;  %v2445_v15 = vrot.slane %v2333_v12, 1  ;;  %v2578_v50 = vmul.f32 %v4394_v39, %v4634_v40  ;;  %v1730_v45 = vadd.f32 %v1698_v24, %v1661_v7 }
 0x14e   : > { %v4734_v27 = vmul.f32 %v4343_v8, %v4632_v14  ;;  %v4738_v41 = vmul.f32 %v4343_v8, %v4634_v40  ;;  %v2689_v46 = vrot.slane %v2577_v23, 2  ;;  %v1731_v34 = vadd.f32 %v1699_v35, %v1662_v19 }
 0x14f   : > { %v4741_v48 = vsel %vm1284_vm3, %v2444_v10, %v2445_v15  ;;  %v7081_v56 = vrot.slane %v4582_v5, 1  ;;  %v2690_v12 = vrot.slane %v2578_v50, 2  ;;  %v1892_v47 = vsel %vm1284_vm3, %v1890_v22, %v1891_v3  ;;  %v1071_v50 = vld [vmem:[#allocation2 + $0x58] sm:$0x3] }
 0x150   : > { %7080 = vst [vmem:[#allocation36_spill] sm:$0xff] %v4741_v48  ;;  %v7083_v20 = vrot.slane %v4576_v13, 1  ;;  %v4754_v19 = vadd.f32 %v1337_v55, %v1139_v59  ;;  %v4756_v35 = vadd.f32 %v1339_v61, %v1140_v16  ;;  %v7085_v10 = vrot.slane %v4585_v28, 2  ;;  %v1095_v61 = vld [vmem:[#allocation2 + $0x118] sm:$0x3] }
 0x151   : > { %v4746_v4 = vsel %vm1284_vm3, %v2445_v15, %v7081_v56  ;;  %v4759_v5 = vsel %vm1530_vm4, %v2689_v46, %v2690_v12  ;;  %v1581_v56 = vrot.slane %v4710_v29, 2  ;;  %v1582_v22 = vrot.slane %v4714_v43, 2 }
 0x152   : > { %7082 = vst [vmem:[#allocation37_spill] sm:$0xff] %v4746_v4  ;;  %v1894_v23 = vsel %vm1284_vm3, %v1891_v3, %v7083_v20  ;;  %7084 = vst [vmem:[#allocation38_spill] sm:$0xff] %v4759_v5  ;;  %v4764_v15 = vsel %vm1530_vm4, %v2690_v12, %v7085_v10  ;;  %v2135_v13 = vrot.slane %v4734_v27, 2  ;;  %v2136_v20 = vrot.slane %v4738_v41, 2  ;;  %v4780_v3 = vpop.f32.mrb[11].mxu1 }
 0x153   : > { %7086 = vst [vmem:[#allocation39_spill] sm:$0xff] %v4764_v15  ;;  %v1975_v59 = vadd.f32 %v1892_v47, %v1730_v45  ;;  %v4770_v16 = vadd.f32 %v1894_v23, %v1731_v34  ;;  %v4774_v55 = vmul.f32 %v4510_v63, %v4632_v14  ;;  %v4778_v28 = vmul.f32 %v4510_v63, %v4634_v40 }
 0x154   : > { %v4783_v29 = vmul.f32 %v4255_v37, %v1071_v50  ;;  %v4786_v43 = vmul.f32 %v4268_v1, %v1071_v50  ;;  %v4789_v41 = vmul.f32 %v4335_v6, %v1071_v50  ;;  %v943_v14 = vmul.f32 %v4370_v44, %v4242_v17 }
 0x155   : > { %7087 = vst [vmem:[#allocation40_spill] sm:$0xff] %v4774_v55  ;;  %7088 = vst [vmem:[#allocation41_spill] sm:$0xff] %v4778_v28  ;;  %v4794_v47 = vmul.f32 %v4343_v8, %v1071_v50  ;;  %v4797_v40 = vmul.f32 %v4389_v38, %v1071_v50  ;;  %v4800_v45 = vmul.f32 %v4394_v39, %v1071_v50  ;;  %v7089_v27 = vrot.slane %v4622_v30, 2  ;;  %v3638_v12 = vpop.eup %3637 }
 0x156   : > { %v7090_v46 = vrot.slane %v4618_v60, 2  ;;  %v4808_v23 = vmul.f32 %v4255_v37, %v1095_v61  ;;  %v4811_v17 = vmul.f32 %v4268_v1, %v1095_v61  ;;  %1032 = vst.msk [vmem:[#allocation2 + $0x49] sm:$0xff] %vm971_vm1, %v943_v14  ;;  %v7091_v44 = vrot.slane %v4520_v2, 2  ;;  %v3640_v60 = vpop.eup %3639 }
 0x157   : > { %v7092_v10 = vmov %v7089_v27  ;;  %v4826_v24 = vmul.f32 %v4343_v8, %v1095_v61  ;;  %v2968_v14 = vadd.f32 1.0, %v3640_v60  ;;  %v1303_v2 = vrot.slane %v4783_v29, 1 }
 0x158   : > { %v1543_v34 = vsel %vm1530_vm4, %v7090_v46, %v7089_v27  ;;  %v1545_v50 = vsel %vm1530_vm4, %v7092_v10, %v7091_v44  ;;  %v2967_v27 = vadd.f32 1.0, %v3638_v12  ;;  %v4823_v46 = vmul.f32 %v4335_v6, %v1095_v61 }
 0x159   : > { %v4820_v7 = vadd.f32 %v1543_v34, %v4598_v49  ;;  %v4829_v15 = vadd.f32 %v1545_v50, %v4600_v11  ;;  %v4833_v30 = vmul.f32 %v4389_v38, %v1095_v61  ;;  %v959_v49 = vmul.f32 %v4381_v31, %v4245_v18 }
 0x15a   : > { %3641 = vrcp.f32 %v2967_v27  ;;  %v4840_v44 = vmul.f32 %v4394_v39, %v1095_v61  ;;  %v1583_v27 = vsel %vm1530_vm4, %v1581_v56, %v1582_v22  ;;  %v2137_v12 = vsel %vm1530_vm4, %v2135_v13, %v2136_v20 }
 0x15b   : > { %3643 = vrcp.f32 %v2968_v14  ;;  %1048 = vst.msk [vmem:[#allocation2 + $0x109] sm:$0xff] %vm971_vm1, %v959_v49  ;;  %v7093_v14 = vrot.slane %v4573_v36, 2  ;;  %v7094_v60 = vrot.slane %v4663_v26, 2  ;;  %v7095_v61 = vrot.slane %v4659_v33, 2 }
 0x15c   : > { %v7096_v36 = vrot.slane %v4557_v21, 2  ;;  %v4885_v26 = vadd.f32 %v1583_v27, %v4754_v19  ;;  %v4902_v19 = vadd.f32 1.0, %v4417_v57 }
 0x15d   : > { %v1585_v11 = vsel %vm1530_vm4, %v1582_v22, %v7093_v14  ;;  %v4860_v31 = vld [vmem:[#allocation2 + $0x48] sm:$0xff]  ;;  %v4862_v50 = vld [vmem:[#allocation2 + $0x50] sm:$0xff]  ;;  %v2097_v56 = vsel %vm1530_vm4, %v7095_v61, %v7094_v60  ;;  %v7097_v22 = vmov %v7094_v60  ;;  %v7098_v14 = vrot.slane %v4579_v9, 2 }
 0x15e   : > { %v2099_v13 = vsel %vm1530_vm4, %v7097_v22, %v7096_v36  ;;  %v1197_v34 = vmul.f32 %v4255_v37, %v4860_v31  ;;  %v1198_v18 = vmul.f32 %v4255_v37, %v4862_v50  ;;  %v2204_v33 = vadd.f32 %v2097_v56, %v4672_v58  ;;  %v7101_v56 = vld [vmem:[#allocation18_spill] sm:$0xff] }
 0x15f   : > { %v2139_v49 = vsel %vm1530_vm4, %v2136_v20, %v7098_v14  ;;  %v850_v60 = vadd.f32 1.0, %v4400_v42  ;;  %v2205_v21 = vadd.f32 %v2099_v13, %v4674_v62  ;;  %v4888_v61 = vadd.f32 %v1585_v11, %v4756_v35  ;;  %v7099_v35 = vld [vmem:[#allocation16_spill] sm:$0xff] }
 0x160   : > { %v4890_v9 = vadd.f32 %v2137_v12, %v1975_v59  ;;  %v1300_v20 = vrot.slane %v1197_v34, 1  ;;  %v1301_v36 = vrot.slane %v1198_v18, 1  ;;  %v4894_v22 = vadd.f32 %v2139_v49, %v4770_v16  ;;  %v4907_v12 = vpop.f32.mrb[12].mxu0 }
 0x161   : > { %v866_v58 = vadd.f32 1.0, %v4409_v52  ;;  %v1125_v42 = vmul.f32 %v4260_v51, %v4860_v31  ;;  %v1126_v62 = vmul.f32 %v4260_v51, %v4862_v50  ;;  %v4905_v59 = vadd.f32 1.0, %v7099_v35  ;;  %v7100_v52 = vld [vmem:[#allocation17_spill] sm:$0xff] }
 0x162   : > { %v1302_v34 = vsel %vm1284_vm3, %v1300_v20, %v1301_v36  ;;  %v1304_v16 = vsel %vm1284_vm3, %v1301_v36, %v1303_v2  ;;  %3645 = vrcp.f32 %v850_v60  ;;  %v4912_v11 = vadd.f32 1.0, %v7100_v52  ;;  %v7104_v60 = vld [vmem:[#allocation15_spill] sm:$0xff] }
 0x163   : > { %v4914_v27 = vadd.f32 %v1302_v34, %v1125_v42  ;;  %v4916_v49 = vadd.f32 %v1304_v16, %v1126_v62  ;;  %v4920_v57 = vmul.f32 %v4268_v1, %v4860_v31  ;;  %v4923_v13 = vadd.f32 1.0, %v7101_v56  ;;  %v4946_v34 = vld [vmem:[#allocation2 + $0x108] sm:$0xff] }
 0x164   : > { %v3642_v18 = vpop.eup %3641  ;;  %v4930_v2 = vmul.f32 %v4268_v1, %v4862_v50  ;;  %3647 = vrcp.f32 %v866_v58  ;;  %v4933_v36 = vmul.f32 -1.442695, %v7104_v60  ;;  %v1684_v62 = vmul.f32 %v4379_v32, %v4860_v31 }
 0x165   : > { %7102 = vst [vmem:[#allocation16_spill] sm:$0xff] %v4923_v13  ;;  %v3644_v14 = vpop.eup %3643  ;;  %v4926_v20 = vmul.f32 %v3642_v18, %v4695_v0  ;;  %v1685_v35 = vmul.f32 %v4379_v32, %v4862_v50  ;;  %v4944_v0 = vmul.f32 %v4335_v6, %v4860_v31  ;;  %v2241_v58 = vmul.f32 %v4510_v63, %v4860_v31  ;;  %v4963_v18 = vld [vmem:[#allocation2 + $0x110] sm:$0xff] }
 0x166   : > { %7105 = vst [vmem:[#allocation18_spill] sm:$0xff] %v4933_v36  ;;  %v4936_v42 = vmul.f32 %v3644_v14, %v4698_v53  ;;  %v4955_v53 = vmul.f32 %v4335_v6, %v4862_v50  ;;  %v2242_v16 = vmul.f32 %v4510_v63, %v4862_v50  ;;  %v2311_v52 = vmul.f32 %v4389_v38, %v4860_v31 }
 0x167   : > { %7103 = vst [vmem:[#allocation17_spill] sm:$0xff] %v4926_v20  ;;  %3095 = vst.msk [vmem:[%s4948_s26] sm:$0xff] %vm971_vm1, %v4926_v20  ;;  %v2312_v14 = vmul.f32 %v4389_v38, %v4862_v50  ;;  %v2556_v10 = vmul.f32 %v4394_v39, %v4860_v31  ;;  %v2557_v29 = vmul.f32 %v4394_v39, %v4862_v50 }
 0x168   : > { %7106 = vst [vmem:[#allocation42_spill] sm:$0xff] %v4936_v42  ;;  %3096 = vst.msk [vmem:[%s4948_s26 + $0x8] sm:$0xff] %vm971_vm1, %v4936_v42  ;;  %v2273_v5 = vadd.f32 %v2241_v58, %v2204_v33  ;;  %v2274_v4 = vadd.f32 %v2242_v16, %v2205_v21  ;;  %v2409_v48 = vrot.slane %v2311_v52, 1  ;;  %v1221_v28 = vmul.f32 %v4255_v37, %v4946_v34 }
 0x169   : > { %v2410_v55 = vrot.slane %v2312_v14, 1  ;;  %v2654_v20 = vrot.slane %v2556_v10, 2  ;;  %v2655_v42 = vrot.slane %v2557_v29, 2  ;;  %v1222_v56 = vmul.f32 %v4255_v37, %v4963_v18 }
 0x16a   : > { %v4981_v36 = vadd.f32 %v1684_v62, %v4820_v7  ;;  %v4984_v13 = vadd.f32 %v1685_v35, %v4829_v15  ;;  %v1340_v33 = vrot.slane %v1221_v28, 1  ;;  %v7107_v58 = vrot.slane %v4797_v40, 1  ;;  %v7111_v28 = vld [vmem:[#allocation10_spill] sm:$0xff] }
 0x16b   : > { %v2411_v21 = vsel %vm1284_vm3, %v2409_v48, %v2410_v55  ;;  %v1141_v29 = vmul.f32 %v4260_v51, %v4946_v34  ;;  %v1142_v37 = vmul.f32 %v4260_v51, %v4963_v18  ;;  %v1341_v15 = vrot.slane %v1222_v56, 1 }
 0x16c   : > { %v2413_v16 = vsel %vm1284_vm3, %v2410_v55, %v7107_v58  ;;  %v3646_v10 = vpop.eup %3645  ;;  %v2518_v62 = vadd.f32 %v2411_v21, %v2273_v5  ;;  %v2656_v48 = vsel %vm1530_vm4, %v2654_v20, %v2655_v42  ;;  %v7108_v40 = vrot.slane %v4800_v45, 2 }
 0x16d   : > { %v2519_v52 = vadd.f32 %v2413_v16, %v2274_v4  ;;  %v1467_v35 = vmul.f32 %v4268_v1, %v4946_v34  ;;  %v1342_v60 = vsel %vm1284_vm3, %v1340_v33, %v1341_v15  ;;  %v7109_v5 = vrot.slane %v4808_v23, 1 }
 0x16e   : > { %v2658_v55 = vsel %vm1530_vm4, %v2655_v42, %v7108_v40  ;;  %v3648_v14 = vpop.eup %3647  ;;  %v2763_v58 = vadd.f32 %v2656_v48, %v2518_v62  ;;  %v1419_v56 = vadd.f32 %v1342_v60, %v1141_v29  ;;  %v1468_v20 = vmul.f32 %v4268_v1, %v4963_v18 }
 0x16f   : > { %v2764_v51 = vadd.f32 %v2658_v55, %v2519_v52  ;;  %v1344_v4 = vsel %vm1284_vm3, %v1341_v15, %v7109_v5  ;;  %v1779_v45 = vmul.f32 %v4335_v6, %v4946_v34  ;;  %v5012_v42 = vmul.f32 %v4343_v8, %v4860_v31 }
 0x170   : > { %v1420_v21 = vadd.f32 %v1344_v4, %v1142_v37  ;;  %v2802_v16 = vmul.f32 %v4655_v25, %v2763_v58  ;;  %v1780_v23 = vmul.f32 %v4335_v6, %v4963_v18  ;;  %v5020_v60 = vmul.f32 %v4343_v8, %v4862_v50 }
 0x171   : > { %v2803_v33 = vmul.f32 %v4655_v25, %v2764_v51  ;;  %v1700_v1 = vmul.f32 %v4379_v32, %v4946_v34  ;;  %v2257_v29 = vmul.f32 %v4510_v63, %v4946_v34  ;;  %v2258_v31 = vmul.f32 %v4510_v63, %v4963_v18 }
 0x172   : > { %v5029_v37 = vadd.f32 %v4670_v54, %v2802_v16  ;;  %v1586_v52 = vrot.slane %v1467_v35, 2  ;;  %v2335_v50 = vmul.f32 %v4389_v38, %v4946_v34  ;;  %v1587_v15 = vrot.slane %v1468_v20, 2 }
 0x173   : > { %v5032_v62 = vadd.f32 %v4670_v54, %v2803_v33  ;;  %v1701_v48 = vmul.f32 %v4379_v32, %v4963_v18  ;;  %v1895_v40 = vrot.slane %v1779_v45, 1  ;;  %v5040_v55 = vmul.f32 %v4343_v8, %v4946_v34  ;;  %v7110_v33 = vld [vmem:[#allocation9_spill] sm:$0xff] }
 0x174   : > { %v3407_v58 = vmul.f32 -1.442695, %v5029_v37  ;;  %v1896_v5 = vrot.slane %v1780_v23, 1  ;;  %v2289_v4 = vadd.f32 %v2257_v29, %v4890_v9  ;;  %v2290_v35 = vadd.f32 %v2258_v31, %v4894_v22 }
 0x175   : > { %v3408_v51 = vmul.f32 -1.442695, %v5032_v62  ;;  %v2336_v20 = vmul.f32 %v4389_v38, %v4963_v18  ;;  %v2449_v16 = vrot.slane %v2335_v50, 1  ;;  %v2580_v32 = vmul.f32 %v4394_v39, %v4946_v34 }
 0x176   : > { %3649 = vpow2.f32 %v3407_v58  ;;  %v2581_v45 = vmul.f32 %v4394_v39, %v4963_v18  ;;  %v946_v7 = vmul.f32 %v3646_v10, %v7110_v33  ;;  %v962_v63 = vmul.f32 %v3648_v14, %v7111_v28 }
 0x177   : > { %3651 = vpow2.f32 %v3408_v51  ;;  %v2450_v23 = vrot.slane %v2336_v20, 1  ;;  %v2694_v9 = vrot.slane %v2580_v32, 2  ;;  %v7112_v22 = vrot.slane %v4930_v2, 2 }
 0x178   : > { %v7113_v29 = vrot.slane %v4920_v57, 2  ;;  %v2025_v34 = vmul.f32 %v4343_v8, %v4963_v18  ;;  %v2695_v50 = vrot.slane %v2581_v45, 2  ;;  %1035 = vst.msk [vmem:[#allocation2 + $0x69] sm:$0xff] %vm971_vm1, %v946_v7  ;;  %1051 = vst.msk [vmem:[#allocation2 + $0x129] sm:$0xff] %vm971_vm1, %v962_v63  ;;  %v7114_v10 = vrot.slane %v4786_v43, 2 }
 0x179   : > { %v7115_v28 = vmov %v7112_v22  ;;  %v2451_v57 = vsel %vm1284_vm3, %v2449_v16, %v2450_v23  ;;  %v7116_v51 = vrot.slane %v4833_v30, 1  ;;  %3653 = vrcp.f32 %v4902_v19 }
 0x17a   : > { %v1548_v31 = vsel %vm1530_vm4, %v7113_v29, %v7112_v22  ;;  %v1550_v14 = vsel %vm1530_vm4, %v7115_v28, %v7114_v10  ;;  %v2534_v63 = vadd.f32 %v2451_v57, %v2289_v4  ;;  %v2696_v2 = vsel %vm1530_vm4, %v2694_v9, %v2695_v50 }
 0x17b   : > { %v5069_v58 = vadd.f32 %v1548_v31, %v4914_v27  ;;  %v2453_v18 = vsel %vm1284_vm3, %v2450_v23, %v7116_v51  ;;  %v5077_v7 = vadd.f32 %v1550_v14, %v4916_v49  ;;  %v7117_v20 = vrot.slane %v4840_v44, 2 }
 0x17c   : > { %v2535_v43 = vadd.f32 %v2453_v18, %v2290_v35  ;;  %v7118_v32 = vrot.slane %v4955_v53, 1  ;;  %v7119_v16 = vrot.slane %v4944_v0, 1  ;;  %v1732_v45 = vadd.f32 %v1700_v1, %v4885_v26  ;;  %v5100_v26 = vpop.f32.mrb[12].mxu1  ;;  %v5136_v18 = vld [vmem:[%s6985_s2] ss:$0 sm:$0xff] }
 0x17d   : > { %v2698_v27 = vsel %vm1530_vm4, %v2695_v50, %v7117_v20  ;;  %3655 = vrcp.f32 %v4905_v59  ;;  %v1588_v19 = vsel %vm1530_vm4, %v1586_v52, %v1587_v15  ;;  %v1733_v49 = vadd.f32 %v1701_v48, %v4888_v61  ;;  %7125 = vst [vmem:[#allocation9_spill] sm:$0xff] %v5136_v18 }
 0x17e   : > { %v1857_v30 = vsel %vm1284_vm3, %v7119_v16, %v7118_v32  ;;  %v2779_v4 = vadd.f32 %v2696_v2, %v2534_v63  ;;  %v2780_v35 = vadd.f32 %v2698_v27, %v2535_v43  ;;  %v7120_v44 = vrot.slane %v4811_v17, 2  ;;  %v7126_v63 = vld [vmem:[#allocation19_spill] sm:$0xff]  ;;  %v7127_v2 = vld [vmem:[#allocation33_spill] sm:$0xff]  ;;  %v7129_v16 = vld [vmem:[#allocation34_spill] sm:$0xff] }
 0x17f   : > { %v2140_v23 = vrot.slane %v5040_v55, 2  ;;  %v2141_v9 = vrot.slane %v2025_v34, 2  ;;  %v5096_v0 = vadd.f32 %v1588_v19, %v1419_v56  ;;  %v1897_v59 = vsel %vm1284_vm3, %v1895_v40, %v1896_v5  ;;  %v1074_v57 = vld [vmem:[#allocation2 + $0x70] sm:$0x3] }
 0x180   : > { %v1590_v33 = vsel %vm1530_vm4, %v1587_v15, %v7120_v44  ;;  %v7121_v1 = vrot.slane %v4823_v46, 1  ;;  %v2818_v52 = vmul.f32 %v4655_v25, %v2779_v4  ;;  %v2819_v17 = vmul.f32 %v4655_v25, %v2780_v35  ;;  %v5108_v15 = vpop.f32.mrb[13].mxu0  ;;  %v3650_v46 = vpop.eup %3649  ;;  %v1098_v19 = vld [vmem:[#allocation2 + $0x130] sm:$0x3] }
 0x181   : > { %v5098_v22 = vadd.f32 %v1590_v33, %v1420_v21  ;;  %v7122_v48 = vrot.slane %v4789_v41, 1  ;;  %v7123_v56 = vmov %v7118_v32  ;;  %v2100_v55 = vrot.slane %v5012_v42, 2  ;;  %v3652_v53 = vpop.eup %3651  ;;  %v5166_v33 = vld [vmem:[%s6987_s4 + $0x2] ss:$0 sm:$0xff] }
 0x182   : > { %v1899_v61 = vsel %vm1284_vm3, %v1896_v5, %v7121_v1  ;;  %v2101_v40 = vrot.slane %v5020_v60, 2  ;;  %3657 = vrcp.f32 %v4912_v11  ;;  %v1961_v5 = vadd.f32 %v1857_v30, %v4981_v36 }
 0x183   : > { %v1859_v21 = vsel %vm1284_vm3, %v7123_v56, %v7122_v48  ;;  %v5121_v31 = vadd.f32 %v4670_v54, %v2818_v52  ;;  %v5124_v41 = vadd.f32 %v4670_v54, %v2819_v17  ;;  %v2969_v34 = vadd.f32 1.0, %v3650_v46  ;;  %v3654_v14 = vpop.eup %3653  ;;  %v5186_v52 = vld [vmem:[%s6986_s3] ss:$0 sm:$0xff]  ;;  %v7132_v56 = vld [vmem:[#allocation11_spill] sm:$0xff] }
 0x184   : > { %v1962_v29 = vadd.f32 %v1859_v21, %v4984_v13  ;;  %v1977_v50 = vadd.f32 %v1897_v59, %v1732_v45  ;;  %v1978_v10 = vadd.f32 %v1899_v61, %v1733_v49  ;;  %v2142_v42 = vsel %vm1530_vm4, %v2140_v23, %v2141_v9  ;;  %7130 = vst [vmem:[#allocation10_spill] sm:$0xff] %v5186_v52 }
 0x185   : > { %v2970_v60 = vadd.f32 1.0, %v3652_v53  ;;  %v3423_v11 = vmul.f32 -1.442695, %v5121_v31  ;;  %v3424_v28 = vmul.f32 -1.442695, %v5124_v41  ;;  %v7124_v36 = vrot.slane %v4826_v24, 2 }
 0x186   : > { %3659 = vrcp.f32 %v2969_v34  ;;  %v2102_v51 = vsel %vm1530_vm4, %v2100_v55, %v2101_v40  ;;  %v700_v43 = vmul.f32 %v5136_v18, %v7126_v63  ;;  %v687_v20 = vmul.f32 %v5136_v18, %v7127_v2  ;;  %v7133_v55 = vld [vmem:[#allocation12_spill] sm:$0xff] }
 0x187   : > { %v2144_v13 = vsel %vm1530_vm4, %v2141_v9, %v7124_v36  ;;  %3661 = vrcp.f32 %v2970_v60  ;;  %v7128_v24 = vrot.slane %v4794_v47, 2  ;;  %v5145_v32 = vadd.f32 %v2102_v51, %v1961_v5  ;;  %v3656_v45 = vpop.eup %3655  ;;  %v5158_v47 = vld [vmem:[%s6987_s4 + $0x1] ss:$0 sm:$0xff]  ;;  %v5202_v5 = vld [vmem:[%s6987_s4 + $0x4] ss:$0 sm:$0xff] }
 0x188   : > { %v703_v30 = vmul.f32 %v5136_v18, %v7129_v16  ;;  %3663 = vpow2.f32 %v3423_v11  ;;  %v5151_v4 = vadd.f32 %v2142_v42, %v1977_v50  ;;  %v5153_v35 = vadd.f32 %v2144_v13, %v1978_v10  ;;  %v7136_v11 = vld [vmem:[#allocation13_spill] sm:$0xff] }
 0x189   : > { %v2104_v27 = vsel %vm1530_vm4, %v2101_v40, %v7128_v24  ;;  %3665 = vpow2.f32 %v3424_v28  ;;  %v5161_v44 = vmul.f32 %v5158_v47, %v1074_v57  ;;  %v5169_v23 = vmul.f32 %v5166_v33, %v1074_v57 }
 0x18a   : > { %v5149_v49 = vadd.f32 %v2104_v27, %v1962_v29  ;;  %v5172_v9 = vmul.f32 %v4335_v6, %v1074_v57  ;;  %v5175_v59 = vmul.f32 %v4343_v8, %v1074_v57  ;;  %v5178_v1 = vmul.f32 %v4389_v38, %v1074_v57 }
 0x18b   : > { %v5181_v61 = vmul.f32 %v4394_v39, %v1074_v57  ;;  %v5189_v17 = vadd.f32 %v5186_v52, %v700_v43  ;;  %v5192_v6 = vmul.f32 %v5158_v47, %v1098_v19  ;;  %v5195_v48 = vmul.f32 %v5166_v33, %v1098_v19  ;;  %v7137_v57 = vld [vmem:[#allocation35_spill] sm:$0xff] }
 0x18c   : > { %v945_v21 = vmul.f32 %v3654_v14, %v7132_v56  ;;  %v961_v40 = vmul.f32 %v3656_v45, %v7133_v55  ;;  %v3658_v46 = vpop.eup %3657  ;;  %v5205_v29 = vmul.f32 %v5202_v5, %v1098_v19  ;;  %v5208_v53 = vmul.f32 %v4343_v8, %v1098_v19  ;;  %v650_v8 = vpop.f32.mrb[13].mxu1  ;;  %v5360_v14 = vld [vmem:[%s6987_s4 + $0x7] ss:$0 sm:$0xff] }
 0x18d   : > { %7131 = vst [vmem:[#allocation19_spill] sm:$0xff] %v5189_v17  ;;  %v5211_v34 = vadd.f32 %v5186_v52, %v687_v20  ;;  %v5214_v50 = vadd.f32 %v5186_v52, %v703_v30  ;;  %v1308_v10 = vrot.slane %v5161_v44, 1  ;;  %v948_v28 = vmul.f32 %v3658_v46, %v7136_v11  ;;  %v7140_v11 = vld [vmem:[#allocation16_spill] sm:$0xff] }
 0x18e   : > { %1034 = vst.msk [vmem:[#allocation2 + $0x61] sm:$0xff] %vm971_vm1, %v945_v21  ;;  %1050 = vst.msk [vmem:[#allocation2 + $0x121] sm:$0xff] %vm971_vm1, %v961_v40  ;;  %v686_v51 = vmul.f32 %v5136_v18, %v7137_v57  ;;  %v5230_v2 = vmul.f32 %v4389_v38, %v1098_v19  ;;  %v702_v20 = vmul.f32 %v5136_v18, %v4780_v3  ;;  %v3386_v30 = vmul.f32 -1.442695, %v5189_v17 }
 0x18f   : > { %7134 = vst [vmem:[#allocation33_spill] sm:$0xff] %v5211_v34  ;;  %7135 = vst [vmem:[#allocation34_spill] sm:$0xff] %v5214_v50  ;;  %v689_v45 = vmul.f32 %v5136_v18, %v4907_v12  ;;  %v5244_v21 = vmul.f32 %v4394_v39, %v1098_v19  ;;  %v705_v3 = vmul.f32 %v5136_v18, %v5100_v26  ;;  %3667 = vrcp.f32 %v7140_v11  ;;  %v7142_v26 = vld [vmem:[#allocation18_spill] sm:$0xff] }
 0x190   : > { %1037 = vst.msk [vmem:[#allocation2 + $0x81] sm:$0xff] %vm971_vm1, %v948_v28  ;;  %v3660_v24 = vpop.eup %3659  ;;  %v688_v55 = vmul.f32 %v5136_v18, %v5108_v15  ;;  %v5255_v12 = vadd.f32 %v5186_v52, %v686_v51  ;;  %3669 = vpow2.f32 %v7142_v26  ;;  %v3373_v15 = vmul.f32 -1.442695, %v5211_v34 }
 0x191   : > { %v3662_v56 = vpop.eup %3661  ;;  %v5241_v38 = vmul.f32 %v3660_v24, %v5029_v37  ;;  %v704_v37 = vmul.f32 %v5136_v18, %v650_v8  ;;  %v5264_v19 = vadd.f32 %v5186_v52, %v702_v20  ;;  %3671 = vpow2.f32 %v3386_v30 }
 0x192   : > { %v3664_v40 = vpop.eup %3663  ;;  %v5251_v46 = vmul.f32 %v3662_v56, %v5032_v62  ;;  %7141 = vst [vmem:[#allocation13_spill] sm:$0xff] %v5255_v12  ;;  %v3503_v62 = vpop.f32.mrb[14].mxu0  ;;  %v3389_v24 = vmul.f32 -1.442695, %v5214_v50  ;;  %v5275_v56 = vadd.f32 %v5186_v52, %v689_v45  ;;  %v5283_v11 = vadd.f32 %v5186_v52, %v688_v55 }
 0x193   : > { %7138 = vst [vmem:[#allocation11_spill] sm:$0xff] %v5241_v38  ;;  %v3666_v28 = vpop.eup %3665  ;;  %3097 = vst.msk [vmem:[%s4948_s26 + $0x10] sm:$0xff] %vm971_vm1, %v5241_v38  ;;  %v2985_v39 = vadd.f32 1.0, %v3664_v40  ;;  %v5280_v40 = vadd.f32 %v5186_v52, %v705_v3  ;;  %v3372_v30 = vmul.f32 -1.442695, %v5255_v12  ;;  %v5289_v26 = vadd.f32 %v5186_v52, %v704_v37  ;;  %v5319_v27 = vpop.f32.mrb[15].mxu0 }
 0x194   : > { %7139 = vst [vmem:[#allocation12_spill] sm:$0xff] %v5251_v46  ;;  %7143 = vst [vmem:[#allocation35_spill] sm:$0xff] %v5264_v19  ;;  %v2986_v57 = vadd.f32 1.0, %v3666_v28  ;;  %v3388_v36 = vmul.f32 -1.442695, %v5264_v19  ;;  %v5326_v60 = vmul.f32 %v5136_v18, %v3503_v62 }
 0x195   : > { %3098 = vst.msk [vmem:[%s4948_s26 + $0x18] sm:$0xff] %vm971_vm1, %v5251_v46  ;;  %v5269_v51 = vld [vmem:[#allocation2 + $0x60] sm:$0xff]  ;;  %v5271_v8 = vld [vmem:[#allocation2 + $0x68] sm:$0xff]  ;;  %7144 = vst [vmem:[#allocation16_spill] sm:$0xff] %v5275_v56  ;;  %3673 = vrcp.f32 %v2985_v39  ;;  %v5295_v55 = vmul.f32 -1.442695, %v5275_v56 }
 0x196   : > { %v1200_v20 = vmul.f32 %v5158_v47, %v5269_v51  ;;  %7145 = vst [vmem:[#allocation18_spill] sm:$0xff] %v5280_v40  ;;  %7146 = vst [vmem:[#allocation43_spill] sm:$0xff] %v5283_v11  ;;  %3675 = vrcp.f32 %v2986_v57  ;;  %v1201_v28 = vmul.f32 %v5158_v47, %v5271_v8  ;;  %v5300_v57 = vld [vmem:[%s6987_s4] ss:$0 sm:$0xff]  ;;  %v5317_v42 = vmul.f32 -1.442695, %v5289_v26 }
 0x197   : > { %7147 = vst [vmem:[#allocation44_spill] sm:$0xff] %v5289_v26  ;;  %3677 = vpow2.f32 %v3373_v15  ;;  %7148 = vst [vmem:[#allocation45_spill] sm:$0xff] %v5295_v55  ;;  %v1127_v37 = vmul.f32 %v5300_v57, %v5269_v51  ;;  %v1128_v15 = vmul.f32 %v5300_v57, %v5271_v8  ;;  %v5332_v44 = vmul.f32 %v5166_v33, %v5269_v51  ;;  %v5347_v62 = vld [vmem:[#allocation2 + $0x120] sm:$0xff]  ;;  %v5379_v56 = vld [vmem:[#allocation2 + $0x128] sm:$0xff] }
 0x198   : > { %v1305_v39 = vrot.slane %v1200_v20, 1  ;;  %v1306_v16 = vrot.slane %v1201_v28, 1  ;;  %3679 = vpow2.f32 %v3389_v24  ;;  %7149 = vst [vmem:[#allocation46_spill] sm:$0xff] %v5300_v57  ;;  %v5307_v20 = vmul.f32 -1.442695, %v5280_v40  ;;  %7152 = vst [vmem:[#allocation49_spill] sm:$0xff] %v5317_v42 }
 0x199   : > { %v5310_v28 = vmul.f32 -1.442695, %v5283_v11  ;;  %3681 = vpow2.f32 %v3372_v30  ;;  %7153 = vst [vmem:[#allocation50_spill] sm:$0xff] %v5319_v27  ;;  %7154 = vst [vmem:[#allocation51_spill] sm:$0xff] %v5326_v60  ;;  %v5328_v63 = vpop.eup %3667  ;;  %v2314_v13 = vmul.f32 %v5360_v14, %v5269_v51  ;;  %v1759_v38 = vmul.f32 %v5202_v5, %v5271_v8 }
 0x19a   : > { %7150 = vst [vmem:[#allocation47_spill] sm:$0xff] %v5307_v20  ;;  %v1307_v24 = vsel %vm1284_vm3, %v1305_v39, %v1306_v16  ;;  %v1309_v43 = vsel %vm1284_vm3, %v1306_v16, %v1308_v10  ;;  %3683 = vpow2.f32 %v3388_v36  ;;  %v5336_v10 = vmul.f32 %v5166_v33, %v5271_v8  ;;  %v5341_v16 = vld [vmem:[%s6987_s4 + $0x3] ss:$0 sm:$0xff]  ;;  %v5349_v30 = vpop.eup %3669 }
 0x19b   : > { %7151 = vst [vmem:[#allocation48_spill] sm:$0xff] %v5310_v28  ;;  %v5321_v3 = vadd.f32 %v1307_v24, %v1127_v37  ;;  %v5323_v45 = vadd.f32 %v1309_v43, %v1128_v15  ;;  %7155 = vst [vmem:[#allocation52_spill] sm:$0xff] %v5341_v16  ;;  %v1686_v36 = vmul.f32 %v5341_v16, %v5269_v51  ;;  %v7156_v37 = vld [vmem:[#allocation26_spill] sm:$0xff]  ;;  %v5364_v46 = vpop.eup %3671  ;;  %v2414_v34 = vrot.slane %v2314_v13, 1 }
 0x19c   : > { %v1687_v43 = vmul.f32 %v5341_v16, %v5271_v8  ;;  %v1758_v39 = vmul.f32 %v5202_v5, %v5269_v51  ;;  %v2243_v15 = vmul.f32 %v7156_v37, %v5269_v51  ;;  %v2244_v24 = vmul.f32 %v7156_v37, %v5271_v8  ;;  %v5373_v37 = vld [vmem:[%s6987_s4 + $0x8] ss:$0 sm:$0xff] }
 0x19d   : > { %v2315_v26 = vmul.f32 %v5360_v14, %v5271_v8  ;;  %v2559_v11 = vmul.f32 %v5373_v37, %v5269_v51  ;;  %v2560_v40 = vmul.f32 %v5373_v37, %v5271_v8  ;;  %v1224_v42 = vmul.f32 %v5158_v47, %v5347_v62 }
 0x19e   : > { %v2275_v12 = vadd.f32 %v2243_v15, %v5145_v32  ;;  %v2276_v50 = vadd.f32 %v2244_v24, %v5149_v49  ;;  %v1860_v32 = vrot.slane %v1758_v39, 1  ;;  %v1225_v49 = vmul.f32 %v5158_v47, %v5379_v56 }
 0x19f   : > { %v3674_v19 = vpop.eup %3673  ;;  %v2415_v55 = vrot.slane %v2315_v26, 1  ;;  %v2659_v52 = vrot.slane %v2559_v11, 2  ;;  %v2660_v60 = vrot.slane %v2560_v40, 2  ;;  %v1345_v13 = vrot.slane %v1224_v42, 1  ;;  %v5414_v42 = vld [vmem:[%s6987_s4 + $0x5] ss:$0 sm:$0xff] }
 0x1a0   : > { %v3676_v28 = vpop.eup %3675  ;;  %v5386_v20 = vmul.f32 %v3674_v19, %v5121_v31  ;;  %v7159_v19 = vrot.slane %v5178_v1, 1  ;;  %v1144_v11 = vmul.f32 %v5300_v57, %v5379_v56  ;;  %v1861_v39 = vrot.slane %v1759_v38, 1 }
 0x1a1   : > { %v5388_v17 = vpop.eup %3677  ;;  %v5391_v18 = vmul.f32 %v3676_v28, %v5124_v41  ;;  %v2416_v31 = vsel %vm1284_vm3, %v2414_v34, %v2415_v55  ;;  %v1143_v41 = vmul.f32 %v5300_v57, %v5347_v62  ;;  %v5418_v34 = vmul.f32 %v5414_v42, %v5269_v51 }
 0x1a2   : > { %7157 = vst [vmem:[#allocation26_spill] sm:$0xff] %v5386_v20  ;;  %v5395_v15 = vpop.eup %3679  ;;  %3113 = vst.msk [vmem:[%s4948_s26 + $0x90] sm:$0xff] %vm971_vm1, %v5386_v20  ;;  %v2418_v40 = vsel %vm1284_vm3, %v2415_v55, %v7159_v19  ;;  %v2520_v1 = vadd.f32 %v2416_v31, %v2275_v12  ;;  %v1346_v55 = vrot.slane %v1225_v49, 1  ;;  %v5424_v24 = vmul.f32 %v5414_v42, %v5271_v8 }
 0x1a3   : > { %7158 = vst [vmem:[#allocation53_spill] sm:$0xff] %v5391_v18  ;;  %3114 = vst.msk [vmem:[%s4948_s26 + $0x98] sm:$0xff] %vm971_vm1, %v5391_v18  ;;  %v2521_v26 = vadd.f32 %v2418_v40, %v2276_v50  ;;  %v5420_v28 = vpop.eup %3681  ;;  %v2661_v19 = vsel %vm1530_vm4, %v2659_v52, %v2660_v60  ;;  %v7160_v18 = vrot.slane %v5181_v61, 2  ;;  %v7161_v12 = vrot.slane %v5192_v6, 1 }
 0x1a4   : > { %v5430_v57 = vpop.eup %3683  ;;  %v2765_v51 = vadd.f32 %v2661_v19, %v2520_v1  ;;  %v1347_v50 = vsel %vm1284_vm3, %v1345_v13, %v1346_v55  ;;  %v1718_v49 = vadd.f32 %v1686_v36, %v5069_v58  ;;  %v1719_v8 = vadd.f32 %v1687_v43, %v5077_v7  ;;  %v5454_v36 = vld [vmem:[%s6987_s4 + $0x6] ss:$0 sm:$0xff] }
 0x1a5   : > { %v2663_v20 = vsel %vm1530_vm4, %v2660_v60, %v7160_v18  ;;  %v1349_v38 = vsel %vm1284_vm3, %v1346_v55, %v7161_v12  ;;  %v5438_v31 = vadd.f32 %v1347_v50, %v1143_v41  ;;  %v1551_v18 = vrot.slane %v5332_v44, 2  ;;  %7163 = vst [vmem:[#allocation54_spill] sm:$0xff] %v5454_v36 }
 0x1a6   : > { %v2766_v27 = vadd.f32 %v2663_v20, %v2521_v26  ;;  %v5440_v52 = vadd.f32 %v1349_v38, %v1144_v11  ;;  %v1552_v61 = vrot.slane %v5336_v10, 2  ;;  %v2804_v60 = vmul.f32 %v4655_v25, %v2765_v51 }
 0x1a7   : > { %v1862_v6 = vsel %vm1284_vm3, %v1860_v32, %v1861_v39  ;;  %v7162_v13 = vrot.slane %v5172_v9, 1  ;;  %v2259_v44 = vmul.f32 %v5454_v36, %v5347_v62  ;;  %v2260_v9 = vmul.f32 %v5454_v36, %v5379_v56 }
 0x1a8   : > { %v2805_v20 = vmul.f32 %v4655_v25, %v2766_v27  ;;  %v5460_v27 = vadd.f32 %v4670_v54, %v2804_v60  ;;  %v5467_v32 = vadd.f32 %v1862_v6, %v1718_v49  ;;  %v5473_v41 = vmul.f32 %v5166_v33, %v5347_v62 }
 0x1a9   : > { %v1864_v58 = vsel %vm1284_vm3, %v1861_v39, %v7162_v13  ;;  %v2338_v11 = vmul.f32 %v5360_v14, %v5347_v62  ;;  %v1471_v55 = vmul.f32 %v5166_v33, %v5379_v56  ;;  %v1782_v39 = vmul.f32 %v5202_v5, %v5347_v62 }
 0x1aa   : > { %v5463_v43 = vadd.f32 %v4670_v54, %v2805_v20  ;;  %v5469_v40 = vadd.f32 %v1864_v58, %v1719_v8  ;;  %v3409_v1 = vmul.f32 -1.442695, %v5460_v27  ;;  %v1783_v19 = vmul.f32 %v5202_v5, %v5379_v56 }
 0x1ab   : > { %v2291_v51 = vadd.f32 %v2259_v44, %v5151_v4  ;;  %v2292_v50 = vadd.f32 %v2260_v9, %v5153_v35  ;;  %v2339_v12 = vmul.f32 %v5360_v14, %v5379_v56  ;;  %v2454_v38 = vrot.slane %v2338_v11, 1 }
 0x1ac   : > { %v3410_v26 = vmul.f32 -1.442695, %v5463_v43  ;;  %3685 = vpow2.f32 %v3409_v1  ;;  %v2583_v49 = vmul.f32 %v5373_v37, %v5347_v62  ;;  %v2584_v8 = vmul.f32 %v5373_v37, %v5379_v56 }
 0x1ad   : > { %v1702_v60 = vmul.f32 %v5341_v16, %v5347_v62  ;;  %v1703_v4 = vmul.f32 %v5341_v16, %v5379_v56  ;;  %v2455_v20 = vrot.slane %v2339_v12, 1  ;;  %v1591_v35 = vrot.slane %v5473_v41, 2 }
 0x1ae   : > { %3687 = vpow2.f32 %v3410_v26  ;;  %v1592_v6 = vrot.slane %v1471_v55, 2  ;;  %v2699_v13 = vrot.slane %v2583_v49, 2  ;;  %v2700_v58 = vrot.slane %v2584_v8, 2  ;;  %v7166_v49 = vld [vmem:[#allocation14_spill] sm:$0xff] }
 0x1af   : > { %v1900_v44 = vrot.slane %v1782_v39, 1  ;;  %v1901_v9 = vrot.slane %v1783_v19, 1  ;;  %v2456_v11 = vsel %vm1284_vm3, %v2454_v38, %v2455_v20  ;;  %v7164_v1 = vrot.slane %v5230_v2, 1  ;;  %v5512_v19 = vpop.f32.mrb[14].mxu1  ;;  %v1077_v38 = vld [vmem:[#allocation2 + $0x88] sm:$0x3] }
 0x1b0   : > { %v2536_v7 = vadd.f32 %v2456_v11, %v2291_v51  ;;  %v2701_v36 = vsel %vm1530_vm4, %v2699_v13, %v2700_v58  ;;  %v7165_v16 = vrot.slane %v5244_v21, 2  ;;  %v1734_v41 = vadd.f32 %v1702_v60, %v5096_v0 }
 0x1b1   : > { %v2458_v26 = vsel %vm1284_vm3, %v2455_v20, %v7164_v1  ;;  %v1735_v55 = vadd.f32 %v1703_v4, %v5098_v22  ;;  %v2027_v39 = vmul.f32 %v5414_v42, %v5347_v62  ;;  %v2028_v2 = vmul.f32 %v5414_v42, %v5379_v56 }
 0x1b2   : > { %v2537_v10 = vadd.f32 %v2458_v26, %v2292_v50  ;;  %v2703_v12 = vsel %vm1530_vm4, %v2700_v58, %v7165_v16  ;;  %v2781_v51 = vadd.f32 %v2701_v36, %v2536_v7  ;;  %v964_v21 = vmul.f32 %v5328_v63, %v7166_v49  ;;  %v660_v49 = vpop.f32.mrb[15].mxu1 }
 0x1b3   : > { %v851_v16 = vadd.f32 1.0, %v5349_v30  ;;  %v1902_v0 = vsel %vm1284_vm3, %v1900_v44, %v1901_v9  ;;  %v7167_v22 = vrot.slane %v5205_v29, 1  ;;  %v1553_v62 = vsel %vm1530_vm4, %v1551_v18, %v1552_v61 }
 0x1b4   : > { %v2782_v50 = vadd.f32 %v2703_v12, %v2537_v10  ;;  %v7168_v56 = vrot.slane %v5169_v23, 2  ;;  %v2820_v7 = vmul.f32 %v4655_v25, %v2781_v51  ;;  %1053 = vst.msk [vmem:[#allocation2 + $0x141] sm:$0xff] %vm971_vm1, %v964_v21  ;;  %v5529_v63 = vadd.f32 %v1553_v62, %v5321_v3 }
 0x1b5   : > { %v1904_v8 = vsel %vm1284_vm3, %v1901_v9, %v7167_v22  ;;  %3689 = vrcp.f32 %v851_v16  ;;  %v5532_v29 = vmul.f32 %v5158_v47, %v1077_v38  ;;  %v5535_v30 = vmul.f32 %v5166_v33, %v1077_v38 }
 0x1b6   : > { %v1555_v60 = vsel %vm1530_vm4, %v1552_v61, %v7168_v56  ;;  %v2821_v36 = vmul.f32 %v4655_v25, %v2782_v50  ;;  %v867_v18 = vadd.f32 1.0, %v5364_v46  ;;  %v3686_v61 = vpop.eup %3685  ;;  %v5542_v25 = vadd.f32 %v4670_v54, %v2820_v7 }
 0x1b7   : > { %v5538_v23 = vadd.f32 %v1555_v60, %v5323_v45  ;;  %v5548_v3 = vmul.f32 %v5202_v5, %v1077_v38  ;;  %v5551_v4 = vmul.f32 %v5414_v42, %v1077_v38  ;;  %v2971_v13 = vadd.f32 1.0, %v3686_v61 }
 0x1b8   : > { %v5545_v10 = vadd.f32 %v4670_v54, %v2821_v36  ;;  %v3688_v20 = vpop.eup %3687  ;;  %3691 = vrcp.f32 %v867_v18  ;;  %v1593_v45 = vsel %vm1530_vm4, %v1591_v35, %v1592_v6  ;;  %v7169_v46 = vrot.slane %v5195_v48, 2 }
 0x1b9   : > { %v2972_v44 = vadd.f32 1.0, %v3688_v20  ;;  %v3425_v9 = vmul.f32 -1.442695, %v5542_v25  ;;  %v5560_v11 = vadd.f32 %v1593_v45, %v5438_v31  ;;  %3693 = vrcp.f32 %v2971_v13 }
 0x1ba   : > { %v1595_v58 = vsel %vm1530_vm4, %v1592_v6, %v7169_v46  ;;  %v3426_v54 = vmul.f32 -1.442695, %v5545_v10  ;;  %v2145_v1 = vrot.slane %v2027_v39, 2  ;;  %v2146_v26 = vrot.slane %v2028_v2, 2  ;;  %v7177_v46 = vld [vmem:[#allocation9_spill] sm:$0xff]  ;;  %v7195_v2 = vld [vmem:[#allocation52_spill] sm:$0xff] }
 0x1bb   : > { %v5563_v12 = vadd.f32 %v1595_v58, %v5440_v52  ;;  %3695 = vrcp.f32 %v2972_v44  ;;  %v5566_v35 = vmul.f32 %v5360_v14, %v1077_v38  ;;  %v5569_v48 = vmul.f32 %v5373_v37, %v1077_v38  ;;  %v1101_v22 = vld [vmem:[#allocation2 + $0x148] sm:$0x3] }
 0x1bc   : > { %v854_v6 = vadd.f32 1.0, %v5388_v17  ;;  %v1979_v51 = vadd.f32 %v1902_v0, %v1734_v41  ;;  %v1980_v50 = vadd.f32 %v1904_v8, %v1735_v55  ;;  %3697 = vpow2.f32 %v3425_v9  ;;  %v7179_v9 = vld [vmem:[#allocation51_spill] sm:$0xff] }
 0x1bd   : > { %v1313_v31 = vrot.slane %v5532_v29, 1  ;;  %3699 = vpow2.f32 %v3426_v54  ;;  %v2147_v21 = vsel %vm1530_vm4, %v2145_v1, %v2146_v26  ;;  %v7170_v38 = vrot.slane %v5208_v53, 2  ;;  %v7173_v53 = vld [vmem:[#allocation15_spill] sm:$0xff]  ;;  %v7180_v54 = vld [vmem:[#allocation10_spill] sm:$0xff] }
 0x1be   : > { %3701 = vrcp.f32 %v854_v6  ;;  %v870_v17 = vadd.f32 1.0, %v5395_v15  ;;  %v7171_v8 = vrot.slane %v5424_v24, 2  ;;  %v7172_v62 = vrot.slane %v5418_v34, 2 }
 0x1bf   : > { %v2149_v16 = vsel %vm1530_vm4, %v2146_v26, %v7170_v38  ;;  %v3690_v41 = vpop.eup %3689  ;;  %v853_v60 = vadd.f32 1.0, %v5420_v28  ;;  %v7174_v36 = vrot.slane %v5175_v59, 2  ;;  %v869_v20 = vadd.f32 1.0, %v5430_v57  ;;  %v7176_v28 = vld [vmem:[#allocation50_spill] sm:$0xff]  ;;  %v7178_v57 = vld [vmem:[#allocation19_spill] sm:$0xff] }
 0x1c0   : > { %v2107_v56 = vsel %vm1530_vm4, %v7172_v62, %v7171_v8  ;;  %v947_v7 = vmul.f32 %v3690_v41, %v7173_v53  ;;  %v7175_v15 = vmov %v7171_v8  ;;  %v5602_v34 = vadd.f32 %v2147_v21, %v1979_v51 }
 0x1c1   : > { %v2109_v18 = vsel %vm1530_vm4, %v7175_v15, %v7174_v36  ;;  %v5596_v61 = vadd.f32 %v2107_v56, %v5467_v32  ;;  %v5604_v45 = vadd.f32 %v2149_v16, %v1980_v50  ;;  %v690_v58 = vmul.f32 %v7177_v46, %v7176_v28  ;;  %v7189_v28 = vld [vmem:[#allocation49_spill] sm:$0xff] }
 0x1c2   : > { %v5600_v13 = vadd.f32 %v2109_v18, %v5469_v40  ;;  %v3692_v59 = vpop.eup %3691  ;;  %v5609_v24 = vmul.f32 %v5158_v47, %v1101_v22  ;;  %v5612_v44 = vmul.f32 %v5166_v33, %v1101_v22  ;;  %v5615_v32 = vmul.f32 %v5202_v5, %v1101_v22  ;;  %1036 = vst.msk [vmem:[#allocation2 + $0x79] sm:$0xff] %vm971_vm1, %v947_v7  ;;  %v7187_v7 = vld [vmem:[#allocation48_spill] sm:$0xff] }
 0x1c3   : > { %3703 = vrcp.f32 %v870_v17  ;;  %v963_v40 = vmul.f32 %v3692_v59, %v7178_v57  ;;  %v5621_v1 = vadd.f32 %v7180_v54, %v7179_v9  ;;  %v707_v26 = vmul.f32 %v7177_v46, %v5512_v19  ;;  %v3694_v6 = vpop.eup %3693  ;;  %v7183_v17 = vld [vmem:[#allocation45_spill] sm:$0xff] }
 0x1c4   : > { %3705 = vrcp.f32 %v853_v60  ;;  %v5626_v51 = vmul.f32 %v5414_v42, %v1101_v22  ;;  %v5629_v50 = vmul.f32 %v5360_v14, %v1101_v22  ;;  %v5632_v21 = vmul.f32 %v5373_v37, %v1101_v22  ;;  %v7190_v59 = vld [vmem:[#allocation33_spill] sm:$0xff] }
 0x1c5   : > { %7181 = vst [vmem:[#allocation14_spill] sm:$0xff] %v5621_v1  ;;  %3707 = vrcp.f32 %v869_v20  ;;  %v3696_v38 = vpop.eup %3695  ;;  %v5635_v16 = vmul.f32 %v3694_v6, %v5460_v27  ;;  %1052 = vst.msk [vmem:[#allocation2 + $0x139] sm:$0xff] %vm971_vm1, %v963_v40  ;;  %v5640_v19 = vadd.f32 %v7180_v54, %v690_v58  ;;  %v706_v41 = vmul.f32 %v7177_v46, %v660_v49  ;;  %v7186_v27 = vld [vmem:[#allocation47_spill] sm:$0xff] }
 0x1c6   : > { %3709 = vpow2.f32 %v7183_v17  ;;  %v3698_v8 = vpop.eup %3697  ;;  %v5644_v62 = vmul.f32 %v3696_v38, %v5463_v43  ;;  %v3377_v36 = vmul.f32 -1.442695, %v5621_v1  ;;  %v5655_v49 = vadd.f32 %v7180_v54, %v707_v26 }
 0x1c7   : > { %7182 = vst [vmem:[#allocation15_spill] sm:$0xff] %v5635_v16  ;;  %7184 = vst [vmem:[#allocation50_spill] sm:$0xff] %v5640_v19  ;;  %3711 = vpow2.f32 %v7186_v27  ;;  %v3700_v60 = vpop.eup %3699  ;;  %v2987_v53 = vadd.f32 1.0, %v3698_v8  ;;  %v3376_v40 = vmul.f32 -1.442695, %v5640_v19  ;;  %v5666_v9 = vadd.f32 %v7180_v54, %v706_v41 }
 0x1c8   : > { %7185 = vst [vmem:[#allocation9_spill] sm:$0xff] %v5644_v62  ;;  %3099 = vst.msk [vmem:[%s4948_s26 + $0x20] sm:$0xff] %vm971_vm1, %v5635_v16  ;;  %3713 = vpow2.f32 %v7187_v7  ;;  %v3702_v43 = vpop.eup %3701  ;;  %v2988_v15 = vadd.f32 1.0, %v3700_v60  ;;  %v5677_v27 = vmul.f32 -1.442695, %v5655_v49 }
 0x1c9   : > { %7188 = vst [vmem:[#allocation19_spill] sm:$0xff] %v5655_v49  ;;  %3100 = vst.msk [vmem:[%s4948_s26 + $0x28] sm:$0xff] %vm971_vm1, %v5644_v62  ;;  %3715 = vpow2.f32 %v7189_v28  ;;  %v1075_v46 = vld [vmem:[#allocation2 + $0x78] sm:$0xff]  ;;  %v1076_v58 = vld [vmem:[#allocation2 + $0x80] sm:$0xff]  ;;  %v950_v57 = vmul.f32 %v3702_v43, %v7190_v59 }
 0x1ca   : > { %3717 = vrcp.f32 %v2987_v53  ;;  %7191 = vst [vmem:[#allocation51_spill] sm:$0xff] %v5666_v9  ;;  %v1203_v38 = vmul.f32 %v5158_v47, %v1075_v46  ;;  %v1204_v17 = vmul.f32 %v5158_v47, %v1076_v58  ;;  %v5673_v8 = vmul.f32 %v5166_v33, %v1075_v46  ;;  %7192 = vst [vmem:[#allocation10_spill] sm:$0xff] %v5677_v27 }
 0x1cb   : > { %3719 = vrcp.f32 %v2988_v15  ;;  %1039 = vst.msk [vmem:[#allocation2 + $0x99] sm:$0xff] %vm971_vm1, %v950_v57  ;;  %v5682_v60 = vmul.f32 %v5166_v33, %v1076_v58  ;;  %v1761_v53 = vmul.f32 %v5202_v5, %v1075_v46  ;;  %v1762_v7 = vmul.f32 %v5202_v5, %v1076_v58  ;;  %v7193_v15 = vld [vmem:[#allocation46_spill] sm:$0xff] }
 0x1cc   : > { %3721 = vpow2.f32 %v3377_v36  ;;  %v1310_v41 = vrot.slane %v1203_v38, 1  ;;  %v1129_v28 = vmul.f32 %v7193_v15, %v1075_v46  ;;  %v1311_v59 = vrot.slane %v1204_v17, 1  ;;  %v5736_v62 = vld [vmem:[#allocation2 + $0x140] sm:$0xff] }
 0x1cd   : > { %v5679_v54 = vpop.eup %3703  ;;  %3723 = vpow2.f32 %v3376_v40  ;;  %v5690_v36 = vmul.f32 -1.442695, %v5666_v9  ;;  %v1130_v38 = vmul.f32 %v7193_v15, %v1076_v58  ;;  %v1688_v20 = vmul.f32 %v7195_v2, %v1075_v46 }
 0x1ce   : > { %v5686_v43 = vpop.eup %3705  ;;  %v1865_v56 = vrot.slane %v1761_v53, 1  ;;  %v1866_v39 = vrot.slane %v1762_v7, 1  ;;  %v1312_v26 = vsel %vm1284_vm3, %v1310_v41, %v1311_v59  ;;  %v1314_v17 = vsel %vm1284_vm3, %v1311_v59, %v1313_v31  ;;  %v7196_v59 = vld [vmem:[#allocation54_spill] sm:$0xff] }
 0x1cf   : > { %7194 = vst [vmem:[#allocation45_spill] sm:$0xff] %v5690_v36  ;;  %v5692_v57 = vpop.eup %3707  ;;  %v1689_v18 = vmul.f32 %v7195_v2, %v1076_v58  ;;  %v5706_v0 = vadd.f32 %v1312_v26, %v1129_v28  ;;  %v5708_v55 = vadd.f32 %v1314_v17, %v1130_v38  ;;  %v1720_v7 = vadd.f32 %v1688_v20, %v5529_v63  ;;  %v5728_v17 = vld [vmem:[#allocation2 + $0x138] sm:$0xff] }
 0x1d0   : > { %v5696_v6 = vpop.eup %3709  ;;  %v5716_v31 = vmul.f32 %v5414_v42, %v1075_v46  ;;  %v5719_v41 = vmul.f32 %v5414_v42, %v1076_v58  ;;  %v2245_v40 = vmul.f32 %v7196_v59, %v1075_v46  ;;  %v1867_v28 = vsel %vm1284_vm3, %v1865_v56, %v1866_v39 }
 0x1d1   : > { %v5704_v22 = vpop.eup %3711  ;;  %v1721_v29 = vadd.f32 %v1689_v18, %v5538_v23  ;;  %v2246_v38 = vmul.f32 %v7196_v59, %v1076_v58  ;;  %v2317_v63 = vmul.f32 %v5360_v14, %v1075_v46  ;;  %v2318_v20 = vmul.f32 %v5360_v14, %v1076_v58 }
 0x1d2   : > { %v5712_v52 = vpop.eup %3713  ;;  %v7197_v18 = vrot.slane %v5548_v3, 1  ;;  %v2277_v9 = vadd.f32 %v2245_v40, %v5596_v61  ;;  %v2562_v49 = vmul.f32 %v5373_v37, %v1075_v46  ;;  %v2563_v56 = vmul.f32 %v5373_v37, %v1076_v58 }
 0x1d3   : > { %v5722_v26 = vpop.eup %3715  ;;  %v2278_v1 = vadd.f32 %v2246_v38, %v5600_v13  ;;  %v2419_v36 = vrot.slane %v2317_v63, 1  ;;  %v2420_v3 = vrot.slane %v2318_v20, 1  ;;  %v1227_v58 = vmul.f32 %v5158_v47, %v5728_v17 }
 0x1d4   : > { %v3718_v23 = vpop.eup %3717  ;;  %v1869_v53 = vsel %vm1284_vm3, %v1866_v39, %v7197_v18  ;;  %v2664_v61 = vrot.slane %v2562_v49, 2  ;;  %v2665_v46 = vrot.slane %v2563_v56, 2  ;;  %v5752_v40 = vadd.f32 %v1867_v28, %v1720_v7 }
 0x1d5   : > { %v3720_v16 = vpop.eup %3719  ;;  %v5739_v19 = vmul.f32 %v3718_v23, %v5542_v25  ;;  %v2421_v25 = vsel %vm1284_vm3, %v2419_v36, %v2420_v3  ;;  %v7200_v13 = vrot.slane %v5566_v35, 1  ;;  %v1145_v7 = vmul.f32 %v7193_v15, %v5728_v17 }
 0x1d6   : > { %v5742_v27 = vpop.eup %3721  ;;  %v5745_v39 = vmul.f32 %v3720_v16, %v5545_v10  ;;  %v1228_v10 = vmul.f32 %v5158_v47, %v5736_v62  ;;  %v2522_v49 = vadd.f32 %v2421_v25, %v2277_v9  ;;  %v1146_v36 = vmul.f32 %v7193_v15, %v5736_v62 }
 0x1d7   : > { %7198 = vst [vmem:[#allocation47_spill] sm:$0xff] %v5739_v19  ;;  %3115 = vst.msk [vmem:[%s4948_s26 + $0xa0] sm:$0xff] %vm971_vm1, %v5739_v19  ;;  %v2423_v38 = vsel %vm1284_vm3, %v2420_v3, %v7200_v13  ;;  %v5760_v16 = vpop.eup %3723  ;;  %v2666_v35 = vsel %vm1530_vm4, %v2664_v61, %v2665_v46  ;;  %v7202_v28 = vrot.slane %v5569_v48, 2  ;;  %v1350_v23 = vrot.slane %v1227_v58, 1 }
 0x1d8   : > { %7199 = vst [vmem:[#allocation48_spill] sm:$0xff] %v5745_v39  ;;  %7201 = vst [vmem:[#allocation49_spill] sm:$0xff] %v5760_v16  ;;  %v2523_v63 = vadd.f32 %v2423_v38, %v2278_v1  ;;  %v1351_v18 = vrot.slane %v1228_v10, 1  ;;  %v5773_v56 = vadd.f32 %v1869_v53, %v1721_v29  ;;  %v2767_v9 = vadd.f32 %v2666_v35, %v2522_v49  ;;  %v5789_v53 = vld [vmem:[%s6988_s5] ss:$0 sm:$0xff] }
 0x1d9   : > { %3116 = vst.msk [vmem:[%s4948_s26 + $0xa8] sm:$0xff] %vm971_vm1, %v5745_v39  ;;  %v2668_v20 = vsel %vm1530_vm4, %v2665_v46, %v7202_v28  ;;  %v7203_v13 = vrot.slane %v5609_v24, 1  ;;  %v5782_v61 = vmul.f32 %v5166_v33, %v5728_v17  ;;  %v1785_v48 = vmul.f32 %v5202_v5, %v5728_v17 }
 0x1da   : > { %v2768_v1 = vadd.f32 %v2668_v20, %v2523_v63  ;;  %v1352_v25 = vsel %vm1284_vm3, %v1350_v23, %v1351_v18  ;;  %v2806_v29 = vmul.f32 %v5789_v53, %v2767_v9  ;;  %v5799_v10 = vmul.f32 %v5166_v33, %v5736_v62 }
 0x1db   : > { %v1354_v38 = vsel %vm1284_vm3, %v1351_v18, %v7203_v13  ;;  %v5793_v58 = vadd.f32 %v1352_v25, %v1145_v7  ;;  %v1704_v49 = vmul.f32 %v7195_v2, %v5728_v17  ;;  %v1786_v63 = vmul.f32 %v5202_v5, %v5736_v62  ;;  %v5809_v7 = vld [vmem:[%s6989_s6] ss:$0 sm:$0xff] }
 0x1dc   : > { %v2807_v46 = vmul.f32 %v5789_v53, %v2768_v1  ;;  %v5795_v24 = vadd.f32 %v1354_v38, %v1146_v36  ;;  %v1905_v35 = vrot.slane %v1785_v48, 1  ;;  %v5812_v36 = vadd.f32 %v5809_v7, %v2806_v29 }
 0x1dd   : > { %v1705_v23 = vmul.f32 %v7195_v2, %v5736_v62  ;;  %v1906_v18 = vrot.slane %v1786_v63, 1  ;;  %v2261_v9 = vmul.f32 %v7196_v59, %v5728_v17  ;;  %v2262_v1 = vmul.f32 %v7196_v59, %v5736_v62 }
 0x1de   : > { %v5815_v20 = vadd.f32 %v5809_v7, %v2807_v46  ;;  %v2341_v25 = vmul.f32 %v5360_v14, %v5728_v17  ;;  %v3411_v13 = vmul.f32 -1.442695, %v5812_v36  ;;  %v5829_v48 = vmul.f32 %v5414_v42, %v5728_v17 }
 0x1df   : > { %v5833_v29 = vmul.f32 %v5414_v42, %v5736_v62  ;;  %v1596_v46 = vrot.slane %v5782_v61, 2  ;;  %v1597_v63 = vrot.slane %v5799_v10, 2  ;;  %v1736_v3 = vadd.f32 %v1704_v49, %v5560_v11  ;;  %v1080_v10 = vld [vmem:[#allocation2 + $0xa0] sm:$0x3] }
 0x1e0   : > { %7204 = vst [vmem:[#allocation33_spill] sm:$0xff] %v5815_v20  ;;  %v3412_v38 = vmul.f32 -1.442695, %v5815_v20  ;;  %v1907_v28 = vsel %vm1284_vm3, %v1905_v35, %v1906_v18  ;;  %3725 = vpow2.f32 %v3411_v13  ;;  %v2293_v39 = vadd.f32 %v2261_v9, %v5602_v34 }
 0x1e1   : > { %v2294_v19 = vadd.f32 %v2262_v1, %v5604_v45  ;;  %v2342_v16 = vmul.f32 %v5360_v14, %v5736_v62  ;;  %v2459_v59 = vrot.slane %v2341_v25, 1  ;;  %v2586_v20 = vmul.f32 %v5373_v37, %v5728_v17 }
 0x1e2   : > { %3727 = vpow2.f32 %v3412_v38  ;;  %v2587_v61 = vmul.f32 %v5373_v37, %v5736_v62  ;;  %v1737_v11 = vadd.f32 %v1705_v23, %v5563_v12  ;;  %v2150_v49 = vrot.slane %v5829_v48, 2 }
 0x1e3   : > { %v2151_v34 = vrot.slane %v5833_v29, 2  ;;  %v2460_v35 = vrot.slane %v2342_v16, 1  ;;  %v7205_v45 = vrot.slane %v5615_v32, 1  ;;  %v1981_v1 = vadd.f32 %v1907_v28, %v1736_v3 }
 0x1e4   : > { %v2704_v25 = vrot.slane %v2586_v20, 2  ;;  %v2705_v13 = vrot.slane %v2587_v61, 2  ;;  %v7206_v38 = vrot.slane %v5629_v50, 1  ;;  %v5858_v12 = vmul.f32 %v5158_v47, %v1080_v10 }
 0x1e5   : > { %v1909_v9 = vsel %vm1284_vm3, %v1906_v18, %v7205_v45  ;;  %v2461_v17 = vsel %vm1284_vm3, %v2459_v59, %v2460_v35  ;;  %v5861_v23 = vmul.f32 %v5166_v33, %v1080_v10  ;;  %v7207_v3 = vrot.slane %v5632_v21, 2 }
 0x1e6   : > { %v2463_v62 = vsel %vm1284_vm3, %v2460_v35, %v7206_v38  ;;  %v2538_v16 = vadd.f32 %v2461_v17, %v2293_v39  ;;  %v2706_v32 = vsel %vm1530_vm4, %v2704_v25, %v2705_v13  ;;  %v1982_v20 = vadd.f32 %v1909_v9, %v1737_v11  ;;  %v7208_v39 = vld [vmem:[#allocation34_spill] sm:$0xff]  ;;  %v7209_v35 = vld [vmem:[#allocation13_spill] sm:$0xff] }
 0x1e7   : > { %v2539_v48 = vadd.f32 %v2463_v62, %v2294_v19  ;;  %v2708_v28 = vsel %vm1530_vm4, %v2705_v13, %v7207_v3  ;;  %v5868_v59 = vmul.f32 %v5202_v5, %v1080_v10  ;;  %v5871_v50 = vmul.f32 %v5414_v42, %v1080_v10 }
 0x1e8   : > { %v5874_v18 = vmul.f32 %v5360_v14, %v1080_v10  ;;  %v2783_v29 = vadd.f32 %v2706_v32, %v2538_v16  ;;  %v966_v19 = vmul.f32 %v5679_v54, %v7208_v39  ;;  %v949_v21 = vmul.f32 %v5686_v43, %v7209_v35  ;;  %v7214_v32 = vld [vmem:[#allocation35_spill] sm:$0xff] }
 0x1e9   : > { %v2784_v61 = vadd.f32 %v2708_v28, %v2539_v48  ;;  %v1318_v45 = vrot.slane %v5858_v12, 1  ;;  %v7210_v9 = vrot.slane %v5682_v60, 2  ;;  %v7211_v25 = vrot.slane %v5673_v8, 2 }
 0x1ea   : > { %v7212_v17 = vrot.slane %v5535_v30, 2  ;;  %v2822_v54 = vmul.f32 %v5789_v53, %v2783_v29  ;;  %1055 = vst.msk [vmem:[#allocation2 + $0x159] sm:$0xff] %vm971_vm1, %v966_v19  ;;  %1038 = vst.msk [vmem:[#allocation2 + $0x91] sm:$0xff] %vm971_vm1, %v949_v21  ;;  %v3726_v48 = vpop.eup %3725  ;;  %v1873_v30 = vrot.slane %v5868_v59, 1  ;;  %v965_v3 = vmul.f32 %v5692_v57, %v7214_v32 }
 0x1eb   : > { %v1558_v13 = vsel %vm1530_vm4, %v7211_v25, %v7210_v9  ;;  %v7213_v38 = vmov %v7210_v9  ;;  %v2823_v43 = vmul.f32 %v5789_v53, %v2784_v61  ;;  %v1598_v28 = vsel %vm1530_vm4, %v1596_v46, %v1597_v63 }
 0x1ec   : > { %v1560_v62 = vsel %vm1530_vm4, %v7213_v38, %v7212_v17  ;;  %v5897_v16 = vadd.f32 %v1558_v13, %v5706_v0  ;;  %v3728_v29 = vpop.eup %3727  ;;  %v2973_v61 = vadd.f32 1.0, %v3726_v48  ;;  %v5908_v39 = vadd.f32 %v5809_v7, %v2822_v54  ;;  %1054 = vst.msk [vmem:[#allocation2 + $0x151] sm:$0xff] %vm971_vm1, %v965_v3 }
 0x1ed   : > { %v5900_v8 = vadd.f32 %v1560_v62, %v5708_v55  ;;  %v5911_v0 = vadd.f32 %v5809_v7, %v2823_v43  ;;  %v5914_v55 = vmul.f32 %v5373_v37, %v1080_v10  ;;  %v2974_v19 = vadd.f32 1.0, %v3728_v29 }
 0x1ee   : > { %v7215_v35 = vrot.slane %v5612_v44, 2  ;;  %v5921_v46 = vadd.f32 %v1598_v28, %v5793_v58  ;;  %v2152_v21 = vsel %vm1530_vm4, %v2150_v49, %v2151_v34  ;;  %3729 = vrcp.f32 %v2973_v61 }
 0x1ef   : > { %v3427_v9 = vmul.f32 -1.442695, %v5908_v39  ;;  %v3428_v25 = vmul.f32 -1.442695, %v5911_v0  ;;  %3731 = vrcp.f32 %v2974_v19  ;;  %v2427_v13 = vrot.slane %v5874_v18, 1 }
 0x1f0   : > { %v1600_v57 = vsel %vm1530_vm4, %v1597_v63, %v7215_v35  ;;  %v7216_v44 = vrot.slane %v5719_v41, 2  ;;  %v7217_v63 = vrot.slane %v5716_v31, 2  ;;  %v7218_v17 = vrot.slane %v5626_v51, 2 }
 0x1f1   : > { %v5927_v10 = vadd.f32 %v1600_v57, %v5795_v24  ;;  %3733 = vpow2.f32 %v3427_v9  ;;  %v2672_v38 = vrot.slane %v5914_v55, 2  ;;  %v7219_v62 = vrot.slane %v5551_v4, 2  ;;  %v1104_v31 = vld [vmem:[#allocation2 + $0x160] sm:$0x3]  ;;  %v5947_v48 = vld [vmem:[#allocation2 + $0x90] sm:$0xff]  ;;  %v1079_v3 = vld [vmem:[#allocation2 + $0x98] sm:$0xff] }
 0x1f2   : > { %v2112_v58 = vsel %vm1530_vm4, %v7217_v63, %v7216_v44  ;;  %v2154_v49 = vsel %vm1530_vm4, %v2151_v34, %v7218_v17  ;;  %v7220_v24 = vmov %v7216_v44  ;;  %3735 = vpow2.f32 %v3428_v25 }
 0x1f3   : > { %v2114_v54 = vsel %vm1530_vm4, %v7220_v24, %v7219_v62  ;;  %v5945_v43 = vadd.f32 %v2112_v58, %v5752_v40  ;;  %v5952_v34 = vadd.f32 %v2152_v21, %v1981_v1  ;;  %v5955_v32 = vadd.f32 1.0, %v5696_v6  ;;  %v6011_v62 = vld [vmem:[%s6987_s4 + $0x2] ss:$0 sm:$0xff] }
 0x1f4   : > { %v5950_v51 = vadd.f32 %v2114_v54, %v5773_v56  ;;  %v5958_v4 = vmul.f32 %v5158_v47, %v1104_v31  ;;  %v5961_v41 = vmul.f32 %v5166_v33, %v1104_v31  ;;  %v5964_v40 = vmul.f32 %v5202_v5, %v1104_v31 }
 0x1f5   : > { %v5966_v28 = vadd.f32 %v2154_v49, %v1982_v20  ;;  %v5969_v56 = vadd.f32 1.0, %v5704_v22  ;;  %v5972_v1 = vadd.f32 1.0, %v5712_v52  ;;  %v5975_v6 = vadd.f32 1.0, %v5722_v26  ;;  %v7222_v52 = vld [vmem:[#allocation33_spill] sm:$0xff] }
 0x1f6   : > { %v5978_v29 = vadd.f32 1.0, %v5742_v27  ;;  %v5981_v61 = vmul.f32 %v5414_v42, %v1104_v31  ;;  %v5984_v19 = vmul.f32 %v5360_v14, %v1104_v31  ;;  %v5987_v20 = vmul.f32 %v5373_v37, %v1104_v31 }
 0x1f7   : > { %v1131_v22 = vmul.f32 %v7193_v15, %v5947_v48  ;;  %v1132_v26 = vmul.f32 %v7193_v15, %v1079_v3  ;;  %v1206_v27 = vmul.f32 %v5158_v47, %v5947_v48  ;;  %v1207_v35 = vmul.f32 %v5158_v47, %v1079_v3 }
 0x1f8   : > { %v6000_v9 = vmul.f32 %v5166_v33, %v5947_v48  ;;  %v1690_v25 = vmul.f32 %v7195_v2, %v5947_v48  ;;  %v1764_v58 = vmul.f32 %v5202_v5, %v5947_v48  ;;  %v1765_v17 = vmul.f32 %v5202_v5, %v1079_v3  ;;  %v3730_v49 = vpop.eup %3729 }
 0x1f9   : > { %v1315_v44 = vrot.slane %v1206_v27, 1  ;;  %v1316_v63 = vrot.slane %v1207_v35, 1  ;;  %v6014_v33 = vmul.f32 %v6011_v62, %v1079_v3  ;;  %v1691_v24 = vmul.f32 %v7195_v2, %v1079_v3  ;;  %v3732_v31 = vpop.eup %3731 }
 0x1fa   : > { %v1722_v54 = vadd.f32 %v1690_v25, %v5897_v16  ;;  %v6019_v5 = vmul.f32 %v3730_v49, %v5812_v36  ;;  %v1870_v47 = vrot.slane %v1764_v58, 1  ;;  %v6026_v60 = vmul.f32 %v3732_v31, %v7222_v52 }
 0x1fb   : > { %v1317_v27 = vsel %vm1284_vm3, %v1315_v44, %v1316_v63  ;;  %v1319_v35 = vsel %vm1284_vm3, %v1316_v63, %v1318_v45  ;;  %v3734_v57 = vpop.eup %3733  ;;  %v1871_v16 = vrot.slane %v1765_v17, 1  ;;  %v6045_v63 = vmul.f32 %v5414_v42, %v5947_v48  ;;  %v7224_v17 = vld [vmem:[#allocation54_spill] sm:$0xff] }
 0x1fc   : > { %7221 = vst [vmem:[#allocation46_spill] sm:$0xff] %v6019_v5  ;;  %7223 = vst [vmem:[#allocation52_spill] sm:$0xff] %v6026_v60  ;;  %v6028_v11 = vadd.f32 %v1317_v27, %v1131_v22  ;;  %v6030_v21 = vadd.f32 %v1319_v35, %v1132_v26  ;;  %v3736_v25 = vpop.eup %3735  ;;  %v2989_v36 = vadd.f32 1.0, %v3734_v57  ;;  %v1723_v26 = vadd.f32 %v1691_v24, %v5900_v8 }
 0x1fd   : > { %3101 = vst.msk [vmem:[%s4948_s26 + $0x30] sm:$0xff] %vm971_vm1, %v6019_v5  ;;  %3102 = vst.msk [vmem:[%s4948_s26 + $0x38] sm:$0xff] %vm971_vm1, %v6026_v60  ;;  %v2990_v52 = vadd.f32 1.0, %v3736_v25  ;;  %v1872_v57 = vsel %vm1284_vm3, %v1870_v47, %v1871_v16  ;;  %v6049_v58 = vmul.f32 %v5414_v42, %v1079_v3  ;;  %v2247_v49 = vmul.f32 %v7224_v17, %v5947_v48 }
 0x1fe   : > { %3737 = vrcp.f32 %v2989_v36  ;;  %v1874_v31 = vsel %vm1284_vm3, %v1871_v16, %v1873_v30  ;;  %v6056_v27 = vadd.f32 %v1872_v57, %v1722_v54  ;;  %v2248_v8 = vmul.f32 %v7224_v17, %v1079_v3  ;;  %v1102_v36 = vld [vmem:[#allocation2 + $0x150] sm:$0xff] }
 0x1ff   : > { %3739 = vrcp.f32 %v2990_v52  ;;  %v2320_v24 = vmul.f32 %v5360_v14, %v5947_v48  ;;  %v2321_v47 = vmul.f32 %v5360_v14, %v1079_v3  ;;  %v2565_v35 = vmul.f32 %v5373_v37, %v5947_v48  ;;  %v1103_v52 = vld [vmem:[#allocation2 + $0x158] sm:$0xff] }
 0x200   : > { %v2566_v25 = vmul.f32 %v5373_v37, %v1079_v3  ;;  %v6065_v12 = vadd.f32 %v1874_v31, %v1723_v26  ;;  %v2279_v30 = vadd.f32 %v2247_v49, %v5945_v43  ;;  %v2280_v54 = vadd.f32 %v2248_v8, %v5950_v51  ;;  %v6077_v3 = vld [vmem:[%s6987_s4 + $0x1] ss:$0 sm:$0xff] }
 0x201   : > { %v2424_v16 = vrot.slane %v2320_v24, 1  ;;  %v2425_v57 = vrot.slane %v2321_v47, 1  ;;  %v2669_v44 = vrot.slane %v2565_v35, 2  ;;  %v6072_v48 = vmul.f32 %v7193_v15, %v1102_v36 }
 0x202   : > { %v2670_v45 = vrot.slane %v2566_v25, 2  ;;  %v6080_v26 = vmul.f32 %v6077_v3, %v1102_v36  ;;  %v6083_v43 = vmul.f32 %v6077_v3, %v1103_v52  ;;  %v6090_v31 = vmul.f32 %v7193_v15, %v1103_v52  ;;  %v6104_v15 = vld [vmem:[%s6987_s4 + $0x4] ss:$0 sm:$0xff] }
 0x203   : > { %v2426_v51 = vsel %vm1284_vm3, %v2424_v16, %v2425_v57  ;;  %v2428_v49 = vsel %vm1284_vm3, %v2425_v57, %v2427_v13  ;;  %v6093_v8 = vmul.f32 %v6011_v62, %v1102_v36  ;;  %v1706_v16 = vmul.f32 %v7195_v2, %v1102_v36 }
 0x204   : > { %v2524_v24 = vadd.f32 %v2426_v51, %v2279_v30  ;;  %v2525_v47 = vadd.f32 %v2428_v49, %v2280_v54  ;;  %v2671_v35 = vsel %vm1530_vm4, %v2669_v44, %v2670_v45  ;;  %v2673_v25 = vsel %vm1530_vm4, %v2670_v45, %v2672_v38 }
 0x205   : > { %v1707_v18 = vmul.f32 %v7195_v2, %v1103_v52  ;;  %v1788_v13 = vmul.f32 %v6104_v15, %v1102_v36  ;;  %v1789_v30 = vmul.f32 %v6104_v15, %v1103_v52  ;;  %v6111_v45 = vmul.f32 %v6011_v62, %v1103_v52 }
 0x206   : > { %v2769_v54 = vadd.f32 %v2671_v35, %v2524_v24  ;;  %v2770_v57 = vadd.f32 %v2673_v25, %v2525_v47  ;;  %v6120_v35 = vmul.f32 %v5414_v42, %v1102_v36  ;;  %v1738_v44 = vadd.f32 %v1706_v16, %v5921_v46 }
 0x207   : > { %v1910_v51 = vrot.slane %v1788_v13, 1  ;;  %v1911_v49 = vrot.slane %v1789_v30, 1  ;;  %v1739_v13 = vadd.f32 %v1707_v18, %v5927_v10  ;;  %v6128_v30 = vmul.f32 %v5414_v42, %v1103_v52 }
 0x208   : > { %v3738_v38 = vpop.eup %3737  ;;  %v2808_v24 = vmul.f32 %v5789_v53, %v2769_v54  ;;  %v2809_v47 = vmul.f32 %v5789_v53, %v2770_v57  ;;  %v2263_v42 = vmul.f32 %v7224_v17, %v1102_v36  ;;  %v2264_v10 = vmul.f32 %v7224_v17, %v1103_v52 }
 0x209   : > { %v3740_v59 = vpop.eup %3739  ;;  %v6115_v22 = vmul.f32 %v3738_v38, %v5908_v39  ;;  %v1912_v57 = vsel %vm1284_vm3, %v1910_v51, %v1911_v49  ;;  %v2345_v16 = vmul.f32 %v5360_v14, %v1103_v52  ;;  %v2589_v51 = vmul.f32 %v5373_v37, %v1102_v36 }
 0x20a   : > { %v6123_v25 = vmul.f32 %v3740_v59, %v5911_v0  ;;  %v6134_v39 = vadd.f32 %v5809_v7, %v2808_v24  ;;  %v6137_v54 = vadd.f32 %v5809_v7, %v2809_v47  ;;  %v7227_v0 = vrot.slane %v5964_v40, 1 }
 0x20b   : > { %7225 = vst [vmem:[#allocation34_spill] sm:$0xff] %v6115_v22  ;;  %3117 = vst.msk [vmem:[%s4948_s26 + $0xb0] sm:$0xff] %vm971_vm1, %v6115_v22  ;;  %v2344_v59 = vmul.f32 %v5360_v14, %v1102_v36  ;;  %v2590_v40 = vmul.f32 %v5373_v37, %v1103_v52  ;;  %v2296_v24 = vadd.f32 %v2264_v10, %v5966_v28  ;;  %v2709_v17 = vrot.slane %v2589_v51, 2 }
 0x20c   : > { %7226 = vst [vmem:[#allocation13_spill] sm:$0xff] %v6123_v25  ;;  %v1914_v46 = vsel %vm1284_vm3, %v1911_v49, %v7227_v0  ;;  %3118 = vst.msk [vmem:[%s4948_s26 + $0xb8] sm:$0xff] %vm971_vm1, %v6123_v25  ;;  %v3413_v18 = vmul.f32 -1.442695, %v6134_v39  ;;  %v3414_v38 = vmul.f32 -1.442695, %v6137_v54  ;;  %v2295_v49 = vadd.f32 %v2263_v42, %v5952_v34 }
 0x20d   : > { %v2464_v47 = vrot.slane %v2344_v59, 1  ;;  %v2465_v0 = vrot.slane %v2345_v16, 1  ;;  %v2710_v2 = vrot.slane %v2590_v40, 2  ;;  %v7228_v55 = vrot.slane %v6014_v33, 2 }
 0x20e   : > { %3741 = vpow2.f32 %v3413_v18  ;;  %v7229_v14 = vrot.slane %v6000_v9, 2  ;;  %v7230_v37 = vrot.slane %v5984_v19, 1  ;;  %v7231_v28 = vrot.slane %v5861_v23, 2 }
 0x20f   : > { %3743 = vpow2.f32 %v3414_v38  ;;  %v2466_v36 = vsel %vm1284_vm3, %v2464_v47, %v2465_v0  ;;  %v7232_v52 = vmov %v7228_v55  ;;  %v2711_v16 = vsel %vm1530_vm4, %v2709_v17, %v2710_v2 }
 0x210   : > { %v1563_v25 = vsel %vm1530_vm4, %v7229_v14, %v7228_v55  ;;  %v2468_v34 = vsel %vm1284_vm3, %v2465_v0, %v7230_v37  ;;  %v1565_v42 = vsel %vm1530_vm4, %v7232_v52, %v7231_v28  ;;  %v2540_v10 = vadd.f32 %v2466_v36, %v2295_v49  ;;  %v7245_v36 = vld [vmem:[#allocation45_spill] sm:$0xff] }
 0x211   : > { %v2541_v59 = vadd.f32 %v2468_v34, %v2296_v24  ;;  %v7233_v9 = vrot.slane %v5987_v20, 2  ;;  %v1602_v18 = vrot.slane %v6111_v45, 2  ;;  %3745 = vrcp.f32 %v5955_v32  ;;  %v1111_v37 = vld [vmem:[#allocation2 + $0x198] sm:$0xff]  ;;  %v1113_v34 = vld [vmem:[#allocation2 + $0x1a8] sm:$0x3] }
 0x212   : > { %v6177_v19 = vadd.f32 %v1563_v25, %v6028_v11  ;;  %v6180_v23 = vadd.f32 %v1565_v42, %v6030_v21  ;;  %v2155_v33 = vrot.slane %v6120_v35, 2  ;;  %v2785_v38 = vadd.f32 %v2711_v16, %v2540_v10 }
 0x213   : > { %v2713_v55 = vsel %vm1530_vm4, %v2710_v2, %v7233_v9  ;;  %3747 = vrcp.f32 %v5969_v56  ;;  %v6184_v40 = vadd.f32 %v1912_v57, %v1738_v44  ;;  %v6186_v20 = vadd.f32 %v1914_v46, %v1739_v13  ;;  %v7238_v13 = vld [vmem:[#allocation49_spill] sm:$0xff] }
 0x214   : > { %v2786_v51 = vadd.f32 %v2713_v55, %v2541_v59  ;;  %v2156_v45 = vrot.slane %v6128_v30, 2  ;;  %3749 = vrcp.f32 %v5972_v1  ;;  %v2824_v11 = vmul.f32 %v5789_v53, %v2785_v38 }
 0x215   : > { %v7234_v21 = vrot.slane %v6049_v58, 2  ;;  %v7235_v2 = vrot.slane %v6045_v63, 2  ;;  %3751 = vrcp.f32 %v5975_v6  ;;  %v7236_v56 = vrot.slane %v5871_v50, 2  ;;  %v7239_v6 = vld [vmem:[#allocation10_spill] sm:$0xff] }
 0x216   : > { %v2825_v32 = vmul.f32 %v5789_v53, %v2786_v51  ;;  %3753 = vrcp.f32 %v5978_v29  ;;  %v857_v30 = vadd.f32 1.0, %v7238_v13  ;;  %v6209_v57 = vadd.f32 %v5809_v7, %v2824_v11  ;;  %v7247_v51 = vld [vmem:[#allocation16_spill] sm:$0xff] }
 0x217   : > { %v2117_v35 = vsel %vm1530_vm4, %v7235_v2, %v7234_v21  ;;  %v7237_v44 = vmov %v7234_v21  ;;  %3755 = vpow2.f32 %v7239_v6  ;;  %v7240_v50 = vrot.slane %v6083_v43, 1  ;;  %v7250_v6 = vld [vmem:[#allocation43_spill] sm:$0xff] }
 0x218   : > { %v2119_v25 = vsel %vm1530_vm4, %v7237_v44, %v7236_v56  ;;  %v6204_v1 = vadd.f32 %v2117_v35, %v6056_v27  ;;  %v6212_v63 = vadd.f32 %v5809_v7, %v2825_v32  ;;  %v7241_v58 = vrot.slane %v6080_v26, 1  ;;  %v3742_v17 = vpop.eup %3741  ;;  %v7248_v35 = vld [vmem:[#allocation18_spill] sm:$0xff] }
 0x219   : > { %3757 = vrcp.f32 %v857_v30  ;;  %v7242_v27 = vrot.slane %v5958_v4, 1  ;;  %v7243_v29 = vmov %v7240_v50  ;;  %v7244_v47 = vrot.slane %v6093_v8, 2  ;;  %v1112_v4 = vld [vmem:[#allocation2 + $0x1a0] sm:$0xff]  ;;  %v3744_v28 = vpop.eup %3743 }
 0x21a   : > { %v1357_v46 = vsel %vm1284_vm3, %v7241_v58, %v7240_v50  ;;  %v3429_v14 = vmul.f32 -1.442695, %v6209_v57  ;;  %v6231_v26 = vadd.f32 %v2119_v25, %v6065_v12  ;;  %3759 = vpow2.f32 %v7245_v36  ;;  %v7253_v36 = vld [vmem:[#allocation14_spill] sm:$0xff] }
 0x21b   : > { %v1359_v49 = vsel %vm1284_vm3, %v7243_v29, %v7242_v27  ;;  %v1425_v24 = vadd.f32 %v1357_v46, %v6072_v48  ;;  %v1603_v0 = vsel %vm1530_vm4, %v7244_v47, %v1602_v18  ;;  %v2975_v52 = vadd.f32 1.0, %v3742_v17  ;;  %v3746_v9 = vpop.eup %3745 }
 0x21c   : > { %v1426_v43 = vadd.f32 %v1359_v49, %v6090_v31  ;;  %v3430_v48 = vmul.f32 -1.442695, %v6212_v63  ;;  %v7246_v8 = vrot.slane %v5961_v41, 2  ;;  %v2976_v59 = vadd.f32 1.0, %v3744_v28  ;;  %v6247_v31 = vld [vmem:[%s6987_s4 + $0x7] ss:$0 sm:$0xff] }
 0x21d   : > { %v6239_v10 = vadd.f32 %v1603_v0, %v1425_v24  ;;  %3761 = vpow2.f32 %v3429_v14  ;;  %v2157_v12 = vsel %vm1530_vm4, %v2155_v33, %v2156_v45  ;;  %v2353_v55 = vmul.f32 %v6247_v31, %v1111_v37  ;;  %v3748_v38 = vpop.eup %3747  ;;  %v6256_v33 = vld [vmem:[%s6987_s4 + $0x8] ss:$0 sm:$0xff]  ;;  %v7251_v49 = vld [vmem:[#allocation44_spill] sm:$0xff] }
 0x21e   : > { %v1605_v42 = vsel %vm1530_vm4, %v1602_v18, %v7246_v8  ;;  %3763 = vrcp.f32 %v2975_v52  ;;  %v2354_v41 = vmul.f32 %v6247_v31, %v1112_v4  ;;  %v2355_v18 = vmul.f32 %v6247_v31, %v1113_v34  ;;  %v3750_v2 = vpop.eup %3749 }
 0x21f   : > { %v6242_v16 = vadd.f32 %v1605_v42, %v1426_v43  ;;  %3765 = vrcp.f32 %v2976_v59  ;;  %v952_v11 = vmul.f32 %v3746_v9, %v7247_v51  ;;  %v2598_v32 = vmul.f32 %v6256_v33, %v1111_v37  ;;  %v3752_v30 = vpop.eup %3751  ;;  %v7255_v9 = vld [vmem:[#allocation11_spill] sm:$0xff] }
 0x220   : > { %v2599_v21 = vmul.f32 %v6256_v33, %v1112_v4  ;;  %3767 = vpow2.f32 %v3430_v48  ;;  %v968_v56 = vmul.f32 %v3748_v38, %v7248_v35  ;;  %v7249_v44 = vrot.slane %v5981_v61, 2  ;;  %v3754_v29 = vpop.eup %3753  ;;  %v7252_v61 = vld [vmem:[#allocation17_spill] sm:$0xff] }
 0x221   : > { %v2479_v13 = vrot.slane %v2353_v55, 1  ;;  %1041 = vst.msk [vmem:[#allocation2 + $0xb1] sm:$0xff] %vm971_vm1, %v952_v11  ;;  %v951_v50 = vmul.f32 %v3750_v2, %v7250_v6  ;;  %v2480_v58 = vrot.slane %v2354_v41, 1  ;;  %v2482_v46 = vrot.slane %v2355_v18, 1  ;;  %v3756_v17 = vpop.eup %3755  ;;  %v6289_v18 = vld [vmem:[%s6987_s4 + $0x6] ss:$0 sm:$0xff] }
 0x222   : > { %v2159_v25 = vsel %vm1530_vm4, %v2156_v45, %v7249_v44  ;;  %v2600_v27 = vmul.f32 %v6256_v33, %v1113_v34  ;;  %1057 = vst.msk [vmem:[#allocation2 + $0x171] sm:$0xff] %vm971_vm1, %v968_v56  ;;  %v967_v24 = vmul.f32 %v3752_v30, %v7251_v49  ;;  %v2724_v47 = vrot.slane %v2598_v32, 2  ;;  %v7254_v34 = vld [vmem:[#allocation42_spill] sm:$0xff]  ;;  %v7262_v44 = vld [vmem:[#allocation15_spill] sm:$0xff] }
 0x223   : > { %v2725_v0 = vrot.slane %v2599_v21, 2  ;;  %v3127_v45 = vsel %vm971_vm1, %v7252_v61, 0.0  ;;  %1040 = vst.msk [vmem:[#allocation2 + $0xa9] sm:$0xff] %vm971_vm1, %v951_v50  ;;  %v6273_v14 = vadd.f32 %v2157_v12, %v6184_v40  ;;  %v954_v43 = vmul.f32 %v3754_v29, %v7253_v36  ;;  %v3758_v48 = vpop.eup %3757  ;;  %v7256_v40 = vld [vmem:[#allocation50_spill] sm:$0xff] }
 0x224   : > { %v2727_v28 = vrot.slane %v2600_v27, 2  ;;  %v3128_v52 = vsel %vm971_vm1, %v7254_v34, 0.0  ;;  %1056 = vst.msk [vmem:[#allocation2 + $0x169] sm:$0xff] %vm971_vm1, %v967_v24  ;;  %v6280_v8 = vadd.f32 %v2159_v25, %v6186_v20  ;;  %v874_v42 = vadd.f32 1.0, %v3756_v17  ;;  %v3760_v41 = vpop.eup %3759 }
 0x225   : > { %v3129_v59 = vadd.f32 %v3128_v52, %v3127_v45  ;;  %v3130_v55 = vsel %vm971_vm1, %v7255_v9, 0.0  ;;  %1043 = vst.msk [vmem:[#allocation2 + $0xc9] sm:$0xff] %vm971_vm1, %v954_v43  ;;  %v953_v12 = vmul.f32 %v3758_v48, %v7256_v40  ;;  %v6292_v38 = vmul.f32 %v6289_v18, %v1111_v37 }
 0x226   : > { %v6295_v20 = vmul.f32 %v6289_v18, %v1112_v4  ;;  %v6298_v51 = vsel %vm1284_vm3, %v2479_v13, %v2480_v58  ;;  %v873_v11 = vadd.f32 1.0, %v3760_v41  ;;  %v6301_v32 = vsel %vm1284_vm3, %v2480_v58, %v2482_v46  ;;  %v7261_v4 = vld [vmem:[#allocation12_spill] sm:$0xff]  ;;  %v7265_v58 = vld [vmem:[#allocation9_spill] sm:$0xff] }
 0x227   : > { %7257 = vst [vmem:[#allocation35_spill] sm:$0xff] %v6298_v51  ;;  %7258 = vst [vmem:[#allocation33_spill] sm:$0xff] %v6301_v32  ;;  %v6304_v21 = vsel %vm1530_vm4, %v2724_v47, %v2725_v0  ;;  %v3131_v2 = vadd.f32 %v3130_v55, %v3129_v59  ;;  %v3762_v35 = vpop.eup %3761  ;;  %3769 = vrcp.f32 %v874_v42  ;;  %v6308_v37 = vsel %vm1530_vm4, %v2725_v0, %v2727_v28 }
 0x228   : > { %7259 = vst [vmem:[#allocation54_spill] sm:$0xff] %v6304_v21  ;;  %1042 = vst.msk [vmem:[#allocation2 + $0xc1] sm:$0xff] %vm971_vm1, %v953_v12  ;;  %v3132_v56 = vsel %vm971_vm1, %v7261_v4, 0.0  ;;  %v6314_v25 = vsel %vm971_vm1, %v7262_v44, 0.0  ;;  %v3764_v13 = vpop.eup %3763  ;;  %v2991_v30 = vadd.f32 1.0, %v3762_v35  ;;  %3771 = vrcp.f32 %v873_v11 }
 0x229   : > { %7260 = vst [vmem:[#allocation49_spill] sm:$0xff] %v6308_v37  ;;  %7263 = vst [vmem:[#allocation10_spill] sm:$0xff] %v6314_v25  ;;  %v1083_v6 = vld [vmem:[#allocation2 + $0xb8] sm:$0x3]  ;;  %v6316_v50 = vadd.f32 %v3132_v56, %v3131_v2  ;;  %v6320_v46 = vsel %vm971_vm1, %v7265_v58, 0.0  ;;  %v3766_v27 = vpop.eup %3765  ;;  %v6323_v29 = vmul.f32 %v3764_v13, %v6134_v39 }
 0x22a   : > { %7266 = vst [vmem:[#allocation16_spill] sm:$0xff] %v6320_v46  ;;  %v6326_v49 = vmul.f32 %v6077_v3, %v1083_v6  ;;  %v6329_v24 = vmul.f32 %v6011_v62, %v1083_v6  ;;  %v6332_v47 = vmul.f32 %v6104_v15, %v1083_v6  ;;  %v1107_v0 = vld [vmem:[#allocation2 + $0x178] sm:$0x3]  ;;  %v3768_v61 = vpop.eup %3767  ;;  %v6335_v45 = vmul.f32 %v3766_v27, %v6137_v54  ;;  %v6340_v39 = vld [vmem:[%s6987_s4 + $0x5] ss:$0 sm:$0xff]  ;;  %v1081_v9 = vld [vmem:[#allocation2 + $0xa8] sm:$0xff] }
 0x22b   : > { %7264 = vst [vmem:[#allocation45_spill] sm:$0xff] %v6316_v50  ;;  %7267 = vst [vmem:[#allocation18_spill] sm:$0xff] %v6323_v29  ;;  %3773 = vrcp.f32 %v2991_v30  ;;  %v6343_v17 = vmul.f32 %v6340_v39, %v1083_v6  ;;  %v6346_v36 = vmul.f32 %v6247_v31, %v1083_v6  ;;  %v2992_v43 = vadd.f32 1.0, %v3768_v61  ;;  %v1082_v12 = vld [vmem:[#allocation2 + $0xb0] sm:$0xff]  ;;  %v6388_v30 = vld [vmem:[%s6987_s4] ss:$0 sm:$0xff] }
 0x22c   : > { %7268 = vst [vmem:[#allocation43_spill] sm:$0xff] %v6335_v45  ;;  %3103 = vst.msk [vmem:[%s4948_s26 + $0x40] sm:$0xff] %vm971_vm1, %v6323_v29  ;;  %v1323_v28 = vrot.slane %v6326_v49, 1  ;;  %v1878_v34 = vrot.slane %v6332_v47, 1  ;;  %v6360_v42 = vmul.f32 %v6256_v33, %v1083_v6  ;;  %v6363_v59 = vmul.f32 %v6077_v3, %v1107_v0  ;;  %v6407_v44 = vld [vmem:[%s6987_s4 + $0x3] ss:$0 sm:$0xff] }
 0x22d   : > { %3104 = vst.msk [vmem:[%s4948_s26 + $0x48] sm:$0xff] %vm971_vm1, %v6335_v45  ;;  %3775 = vrcp.f32 %v2992_v43  ;;  %v6366_v55 = vmul.f32 %v6011_v62, %v1107_v0  ;;  %v6369_v41 = vmul.f32 %v6104_v15, %v1107_v0  ;;  %v6372_v40 = vmul.f32 %v6340_v39, %v1107_v0 }
 0x22e   : > { %v6377_v35 = vmul.f32 %v6247_v31, %v1107_v0  ;;  %v6380_v4 = vmul.f32 %v6256_v33, %v1107_v0  ;;  %v1133_v6 = vmul.f32 %v6388_v30, %v1081_v9  ;;  %v1134_v49 = vmul.f32 %v6388_v30, %v1082_v12 }
 0x22f   : > { %v1209_v47 = vmul.f32 %v6077_v3, %v1081_v9  ;;  %v1210_v61 = vmul.f32 %v6077_v3, %v1082_v12  ;;  %v6399_v43 = vmul.f32 %v6011_v62, %v1081_v9  ;;  %v6402_v13 = vmul.f32 %v6011_v62, %v1082_v12 }
 0x230   : > { %v1692_v56 = vmul.f32 %v6407_v44, %v1081_v9  ;;  %v1693_v54 = vmul.f32 %v6407_v44, %v1082_v12  ;;  %v1767_v27 = vmul.f32 %v6104_v15, %v1081_v9  ;;  %v1768_v58 = vmul.f32 %v6104_v15, %v1082_v12 }
 0x231   : > { %v6395_v0 = vpop.eup %3769  ;;  %v1320_v52 = vrot.slane %v1209_v47, 1  ;;  %v1321_v11 = vrot.slane %v1210_v61, 1  ;;  %v6420_v47 = vmul.f32 %v6340_v39, %v1081_v9  ;;  %v6428_v22 = vmul.f32 %v6340_v39, %v1082_v12 }
 0x232   : > { %v6410_v2 = vpop.eup %3771  ;;  %v1724_v45 = vadd.f32 %v1692_v56, %v6177_v19  ;;  %v1725_v60 = vadd.f32 %v1693_v54, %v6180_v23  ;;  %v1875_v46 = vrot.slane %v1767_v27, 1  ;;  %v1876_v37 = vrot.slane %v1768_v58, 1  ;;  %v6436_v58 = vld [vmem:[#allocation2 + $0x168] sm:$0xff] }
 0x233   : > { %v1322_v61 = vsel %vm1284_vm3, %v1320_v52, %v1321_v11  ;;  %v1324_v48 = vsel %vm1284_vm3, %v1321_v11, %v1323_v28  ;;  %v6447_v11 = vld [vmem:[#allocation2 + $0x170] sm:$0xff]  ;;  %v2569_v27 = vmul.f32 %v6256_v33, %v1082_v12 }
 0x234   : > { %v6430_v19 = vadd.f32 %v1322_v61, %v1133_v6  ;;  %v6432_v56 = vadd.f32 %v1324_v48, %v1134_v49  ;;  %v1877_v23 = vsel %vm1284_vm3, %v1875_v46, %v1876_v37  ;;  %v1879_v54 = vsel %vm1284_vm3, %v1876_v37, %v1878_v34 }
 0x235   : > { %v3774_v29 = vpop.eup %3773  ;;  %v6443_v28 = vadd.f32 %v1879_v54, %v1725_v60  ;;  %v2249_v37 = vmul.f32 %v6289_v18, %v1081_v9  ;;  %v2250_v34 = vmul.f32 %v6289_v18, %v1082_v12  ;;  %v2323_v6 = vmul.f32 %v6247_v31, %v1081_v9 }
 0x236   : > { %v6423_v21 = vmul.f32 %v3774_v29, %v6209_v57  ;;  %v6441_v29 = vadd.f32 %v1877_v23, %v1724_v45  ;;  %v2324_v45 = vmul.f32 %v6247_v31, %v1082_v12  ;;  %v2568_v60 = vmul.f32 %v6256_v33, %v1081_v9 }
 0x237   : > { %v3776_v57 = vpop.eup %3775  ;;  %v6460_v49 = vmul.f32 %v6077_v3, %v6436_v58  ;;  %v2282_v61 = vadd.f32 %v2250_v34, %v6231_v26  ;;  %v2429_v23 = vrot.slane %v2323_v6, 1  ;;  %v6469_v54 = vmul.f32 %v6077_v3, %v6447_v11 }
 0x238   : > { %7269 = vst [vmem:[#allocation44_spill] sm:$0xff] %v6423_v21  ;;  %3119 = vst.msk [vmem:[%s4948_s26 + $0xc0] sm:$0xff] %vm971_vm1, %v6423_v21  ;;  %v6450_v46 = vmul.f32 %v3776_v57, %v6212_v63  ;;  %v2281_v63 = vadd.f32 %v2249_v37, %v6204_v1  ;;  %v2430_v57 = vrot.slane %v2324_v45, 1  ;;  %v2674_v9 = vrot.slane %v2568_v60, 2  ;;  %v1086_v21 = vld [vmem:[#allocation2 + $0xd0] sm:$0x3] }
 0x239   : > { %v2675_v52 = vrot.slane %v2569_v27, 2  ;;  %v6473_v12 = vmul.f32 %v6104_v15, %v6436_v58  ;;  %v6477_v48 = vmul.f32 %v6104_v15, %v6447_v11  ;;  %v2265_v1 = vmul.f32 %v6289_v18, %v6436_v58 }
 0x23a   : > { %7270 = vst [vmem:[#allocation17_spill] sm:$0xff] %v6450_v46  ;;  %3120 = vst.msk [vmem:[%s4948_s26 + $0xc8] sm:$0xff] %vm971_vm1, %v6450_v46  ;;  %v2266_v26 = vmul.f32 %v6289_v18, %v6447_v11  ;;  %v2347_v37 = vmul.f32 %v6247_v31, %v6436_v58  ;;  %v2431_v34 = vsel %vm1284_vm3, %v2429_v23, %v2430_v57  ;;  %v7271_v6 = vrot.slane %v6346_v36, 1 }
 0x23b   : > { %v2676_v60 = vsel %vm1530_vm4, %v2674_v9, %v2675_v52  ;;  %v7272_v27 = vrot.slane %v6360_v42, 2  ;;  %v2526_v5 = vadd.f32 %v2431_v34, %v2281_v63  ;;  %v2297_v50 = vadd.f32 %v2265_v1, %v6273_v14 }
 0x23c   : > { %v2433_v45 = vsel %vm1284_vm3, %v2430_v57, %v7271_v6  ;;  %v2298_v32 = vadd.f32 %v2266_v26, %v6280_v8  ;;  %v2348_v23 = vmul.f32 %v6247_v31, %v6447_v11  ;;  %v2469_v51 = vrot.slane %v2347_v37, 1 }
 0x23d   : > { %v2678_v46 = vsel %vm1530_vm4, %v2675_v52, %v7272_v27  ;;  %v2527_v25 = vadd.f32 %v2433_v45, %v2282_v61  ;;  %v2592_v36 = vmul.f32 %v6256_v33, %v6436_v58  ;;  %v2593_v57 = vmul.f32 %v6256_v33, %v6447_v11 }
 0x23e   : > { %v2771_v42 = vadd.f32 %v2676_v60, %v2526_v5  ;;  %v1214_v52 = vmul.f32 %v6077_v3, %v1086_v21  ;;  %v1460_v63 = vmul.f32 %v6011_v62, %v1086_v21  ;;  %v2470_v61 = vrot.slane %v2348_v23, 1 }
 0x23f   : > { %v2772_v9 = vadd.f32 %v2678_v46, %v2527_v25  ;;  %v2714_v14 = vrot.slane %v2592_v36, 2  ;;  %v2715_v1 = vrot.slane %v2593_v57, 2  ;;  %v6504_v8 = vmul.f32 %v6104_v15, %v1086_v21 }
 0x240   : > { %v2810_v26 = vmul.f32 %v5789_v53, %v2771_v42  ;;  %v1328_v34 = vrot.slane %v1214_v52, 1  ;;  %v1574_v6 = vrot.slane %v1460_v63, 2  ;;  %v2471_v45 = vsel %vm1284_vm3, %v2469_v51, %v2470_v61  ;;  %v6534_v63 = vld [vmem:[#allocation2 + $0xc8] sm:$0xff] }
 0x241   : > { %v2811_v37 = vmul.f32 %v5789_v53, %v2772_v9  ;;  %v7273_v5 = vrot.slane %v6377_v35, 1  ;;  %v2716_v46 = vsel %vm1530_vm4, %v2714_v14, %v2715_v1  ;;  %v7274_v60 = vrot.slane %v6380_v4, 2  ;;  %v6522_v9 = vld [vmem:[#allocation2 + $0xc0] sm:$0xff] }
 0x242   : > { %v6517_v23 = vadd.f32 %v5809_v7, %v2810_v26  ;;  %v2542_v57 = vadd.f32 %v2471_v45, %v2297_v50  ;;  %v6526_v35 = vmul.f32 %v6340_v39, %v1086_v21  ;;  %v6529_v52 = vmul.f32 %v6247_v31, %v1086_v21 }
 0x243   : > { %v2473_v25 = vsel %vm1284_vm3, %v2470_v61, %v7273_v5  ;;  %v2718_v27 = vsel %vm1530_vm4, %v2715_v1, %v7274_v60  ;;  %v6520_v36 = vadd.f32 %v5809_v7, %v2811_v37  ;;  %v6532_v4 = vmul.f32 %v6256_v33, %v1086_v21 }
 0x244   : > { %v2543_v42 = vadd.f32 %v2473_v25, %v2298_v32  ;;  %v3415_v61 = vmul.f32 -1.442695, %v6517_v23  ;;  %v2787_v32 = vadd.f32 %v2716_v46, %v2542_v57  ;;  %v1135_v45 = vmul.f32 %v6388_v30, %v6522_v9 }
 0x245   : > { %v3416_v50 = vmul.f32 -1.442695, %v6520_v36  ;;  %v1136_v25 = vmul.f32 %v6388_v30, %v6534_v63  ;;  %v1212_v46 = vmul.f32 %v6077_v3, %v6522_v9  ;;  %v1213_v60 = vmul.f32 %v6077_v3, %v6534_v63 }
 0x246   : > { %v2788_v14 = vadd.f32 %v2718_v27, %v2543_v42  ;;  %3777 = vpow2.f32 %v3415_v61  ;;  %v2826_v21 = vmul.f32 %v5789_v53, %v2787_v32  ;;  %v1458_v27 = vmul.f32 %v6011_v62, %v6522_v9 }
 0x247   : > { %3779 = vpow2.f32 %v3416_v50  ;;  %v7275_v61 = vrot.slane %v6402_v13, 2  ;;  %v7276_v50 = vrot.slane %v6399_v43, 2  ;;  %v1326_v3 = vrot.slane %v1213_v60, 1 }
 0x248   : > { %v2827_v5 = vmul.f32 %v5789_v53, %v2788_v14  ;;  %v6554_v57 = vadd.f32 %v5809_v7, %v2826_v21  ;;  %v1459_v53 = vmul.f32 %v6011_v62, %v6534_v63  ;;  %v1325_v14 = vrot.slane %v1212_v46, 1 }
 0x249   : > { %v1568_v32 = vsel %vm1530_vm4, %v7276_v50, %v7275_v61  ;;  %v7277_v37 = vrot.slane %v6329_v24, 2  ;;  %v7278_v26 = vmov %v7275_v61  ;;  %v1571_v1 = vrot.slane %v1458_v27, 2 }
 0x24a   : > { %v6557_v42 = vadd.f32 %v5809_v7, %v2827_v5  ;;  %v3431_v7 = vmul.f32 -1.442695, %v6554_v57  ;;  %v1572_v62 = vrot.slane %v1459_v53, 2  ;;  %v1657_v51 = vadd.f32 %v1568_v32, %v6430_v19 }
 0x24b   : > { %v1570_v21 = vsel %vm1530_vm4, %v7278_v26, %v7277_v37  ;;  %v1327_v43 = vsel %vm1284_vm3, %v1325_v14, %v1326_v3  ;;  %v1329_v61 = vsel %vm1284_vm3, %v1326_v3, %v1328_v34  ;;  %v1694_v24 = vmul.f32 %v6407_v44, %v6522_v9  ;;  %v7281_v3 = vld [vmem:[#allocation29_spill] sm:$0xff] }
 0x24c   : > { %v3432_v5 = vmul.f32 -1.442695, %v6557_v42  ;;  %v1658_v46 = vadd.f32 %v1570_v21, %v6432_v56  ;;  %3781 = vpow2.f32 %v3431_v7  ;;  %v1413_v13 = vadd.f32 %v1327_v43, %v1135_v45  ;;  %v7282_v7 = vld [vmem:[#allocation30_spill] sm:$0xff] }
 0x24d   : > { %v1414_v26 = vadd.f32 %v1329_v61, %v1136_v25  ;;  %v1573_v37 = vsel %vm1530_vm4, %v1571_v1, %v1572_v62  ;;  %v1575_v60 = vsel %vm1530_vm4, %v1572_v62, %v1574_v6  ;;  %v1695_v19 = vmul.f32 %v6407_v44, %v6534_v63 }
 0x24e   : > { %3783 = vpow2.f32 %v3432_v5  ;;  %v1726_v27 = vadd.f32 %v1694_v24, %v1657_v51  ;;  %v1659_v53 = vadd.f32 %v1573_v37, %v1413_v13  ;;  %v1770_v56 = vmul.f32 %v6104_v15, %v6522_v9 }
 0x24f   : > { %v1660_v50 = vadd.f32 %v1575_v60, %v1414_v26  ;;  %v1771_v34 = vmul.f32 %v6104_v15, %v6534_v63  ;;  %v1727_v32 = vadd.f32 %v1695_v19, %v1658_v46  ;;  %v2015_v45 = vmul.f32 %v6340_v39, %v6522_v9 }
 0x250   : > { %v2016_v1 = vmul.f32 %v6340_v39, %v6534_v63  ;;  %v7279_v6 = vrot.slane %v6428_v22, 2  ;;  %v7280_v25 = vrot.slane %v6420_v47, 2  ;;  %v3778_v14 = vpop.eup %3777  ;;  %v1728_v21 = vadd.f32 %v7281_v3, %v1659_v53 }
 0x251   : > { %v1729_v5 = vadd.f32 %v7282_v7, %v1660_v50  ;;  %v1880_v62 = vrot.slane %v1770_v56, 1  ;;  %v1881_v43 = vrot.slane %v1771_v34, 1  ;;  %v3780_v61 = vpop.eup %3779  ;;  %v2977_v46 = vadd.f32 1.0, %v3778_v14  ;;  %v7286_v50 = vld [vmem:[#allocation20_spill] sm:$0xff]  ;;  %v7287_v14 = vld [vmem:[#allocation21_spill] sm:$0xff] }
 0x252   : > { %v2122_v51 = vsel %vm1530_vm4, %v7280_v25, %v7279_v6  ;;  %v7283_v24 = vrot.slane %v6343_v17, 2  ;;  %v7284_v13 = vmov %v7279_v6  ;;  %v2125_v37 = vrot.slane %v2015_v45, 2 }
 0x253   : > { %v2126_v60 = vrot.slane %v2016_v1, 2  ;;  %v2978_v47 = vadd.f32 1.0, %v3780_v61  ;;  %v1882_v19 = vsel %vm1284_vm3, %v1880_v62, %v1881_v43  ;;  %v7285_v6 = vrot.slane %v6504_v8, 1 }
 0x254   : > { %v2124_v26 = vsel %vm1530_vm4, %v7284_v13, %v7283_v24  ;;  %v1973_v56 = vadd.f32 %v7286_v50, %v1728_v21  ;;  %3785 = vrcp.f32 %v2977_v46  ;;  %v1971_v34 = vadd.f32 %v1882_v19, %v1726_v27  ;;  %v7290_v27 = vld [vmem:[#allocation23_spill] sm:$0xff]  ;;  %v7292_v13 = vld [vmem:[#allocation32_spill] sm:$0xff] }
 0x255   : > { %v1884_v53 = vsel %vm1284_vm3, %v1881_v43, %v7285_v6  ;;  %v1974_v17 = vadd.f32 %v7287_v14, %v1729_v5  ;;  %3787 = vrcp.f32 %v2978_v47  ;;  %v2127_v22 = vsel %vm1530_vm4, %v2125_v37, %v2126_v60  ;;  %v7289_v43 = vld [vmem:[#allocation22_spill] sm:$0xff]  ;;  %v7293_v37 = vld [vmem:[#allocation40_spill] sm:$0xff] }
 0x256   : > { %v1972_v25 = vadd.f32 %v1884_v53, %v1727_v32  ;;  %v7288_v45 = vrot.slane %v6526_v35, 2  ;;  %v2214_v3 = vadd.f32 %v2122_v51, %v6441_v29  ;;  %v2215_v8 = vadd.f32 %v2124_v26, %v6443_v28  ;;  %v3782_v61 = vpop.eup %3781  ;;  %v7291_v51 = vld [vmem:[#allocation31_spill] sm:$0xff]  ;;  %v7294_v53 = vld [vmem:[#allocation41_spill] sm:$0xff] }
 0x257   : > { %v2216_v7 = vadd.f32 %v2127_v22, %v1971_v34  ;;  %v2218_v21 = vadd.f32 %v7289_v43, %v1973_v56  ;;  %v2219_v32 = vadd.f32 %v7290_v27, %v1974_v17  ;;  %v2251_v5 = vmul.f32 %v6289_v18, %v6522_v9  ;;  %v7296_v17 = vld [vmem:[#allocation25_spill] sm:$0xff]  ;;  %v7300_v27 = vld [vmem:[#allocation28_spill] sm:$0xff] }
 0x258   : > { %v2129_v1 = vsel %vm1530_vm4, %v2126_v60, %v7288_v45  ;;  %v2252_v46 = vmul.f32 %v6289_v18, %v6534_v63  ;;  %v2326_v35 = vmul.f32 %v6247_v31, %v6522_v9  ;;  %v3784_v24 = vpop.eup %3783  ;;  %v2993_v29 = vadd.f32 1.0, %v3782_v61  ;;  %v7297_v45 = vld [vmem:[#allocation36_spill] sm:$0xff] }
 0x259   : > { %v2217_v62 = vadd.f32 %v2129_v1, %v1972_v25  ;;  %v2285_v28 = vadd.f32 %v7291_v51, %v2216_v7  ;;  %v2287_v60 = vadd.f32 %v7293_v37, %v2218_v21  ;;  %v2994_v47 = vadd.f32 1.0, %v3784_v24  ;;  %v7295_v25 = vld [vmem:[#allocation24_spill] sm:$0xff]  ;;  %v7298_v7 = vld [vmem:[#allocation37_spill] sm:$0xff]  ;;  %v7299_v21 = vld [vmem:[#allocation27_spill] sm:$0xff] }
 0x25a   : > { %v2283_v19 = vadd.f32 %v2251_v5, %v2214_v3  ;;  %v2284_v6 = vadd.f32 %v2252_v46, %v2215_v8  ;;  %v2288_v50 = vadd.f32 %v7294_v53, %v2219_v32  ;;  %3789 = vrcp.f32 %v2993_v29  ;;  %v7301_v5 = vld [vmem:[#allocation38_spill] sm:$0xff]  ;;  %v7303_v29 = vld [vmem:[#allocation19_spill] sm:$0xff] }
 0x25b   : > { %v2286_v26 = vadd.f32 %v7292_v13, %v2217_v62  ;;  %v2327_v56 = vmul.f32 %v6247_v31, %v6534_v63  ;;  %v2434_v34 = vrot.slane %v2326_v35, 1  ;;  %v2530_v14 = vadd.f32 %v7295_v25, %v2285_v28  ;;  %v7302_v35 = vld [vmem:[#allocation39_spill] sm:$0xff] }
 0x25c   : > { %3791 = vrcp.f32 %v2994_v47  ;;  %v2532_v1 = vadd.f32 %v7297_v45, %v2287_v60  ;;  %v2533_v62 = vadd.f32 %v7298_v7, %v2288_v50  ;;  %v2571_v3 = vmul.f32 %v6256_v33, %v6522_v9 }
 0x25d   : > { %v2531_v22 = vadd.f32 %v7296_v17, %v2286_v26  ;;  %v2435_v43 = vrot.slane %v2327_v56, 1  ;;  %v2572_v8 = vmul.f32 %v6256_v33, %v6534_v63  ;;  %v2775_v61 = vadd.f32 %v7299_v21, %v2530_v14 }
 0x25e   : > { %v2777_v46 = vadd.f32 %v7301_v5, %v2532_v1  ;;  %v2778_v24 = vadd.f32 %v7302_v35, %v2533_v62  ;;  %v970_v51 = vmul.f32 %v6395_v0, %v7303_v29  ;;  %v3786_v28 = vpop.eup %3785  ;;  %v7304_v9 = vrot.slane %v6529_v52, 1  ;;  %v6653_v0 = vld [vmem:[%s6988_s5] ss:$0 sm:$0xff]  ;;  %v7306_v1 = vld [vmem:[#allocation51_spill] sm:$0xff] }
 0x25f   : > { %v2776_v32 = vadd.f32 %v7300_v27, %v2531_v22  ;;  %v2436_v13 = vsel %vm1284_vm3, %v2434_v34, %v2435_v43  ;;  %v2679_v63 = vrot.slane %v2571_v3, 2  ;;  %v2680_v37 = vrot.slane %v2572_v8, 2  ;;  %v3788_v60 = vpop.eup %3787 }
 0x260   : > { %v2438_v26 = vsel %vm1284_vm3, %v2435_v43, %v7304_v9  ;;  %v6648_v47 = vmul.f32 %v3786_v28, %v6517_v23  ;;  %v2528_v53 = vadd.f32 %v2436_v13, %v2283_v19  ;;  %v2814_v56 = vmul.f32 %v6653_v0, %v2775_v61  ;;  %1059 = vst.msk [vmem:[#allocation2 + $0x189] sm:$0xff] %vm971_vm1, %v970_v51 }
 0x261   : > { %v2529_v50 = vadd.f32 %v2438_v26, %v2284_v6  ;;  %v6658_v52 = vmul.f32 %v3788_v60, %v6520_v36  ;;  %v2681_v34 = vsel %vm1530_vm4, %v2679_v63, %v2680_v37  ;;  %v7305_v25 = vrot.slane %v6532_v4, 2  ;;  %v6676_v36 = vld [vmem:[%s6989_s6] ss:$0 sm:$0xff] }
 0x262   : > { %v2815_v19 = vmul.f32 %v6653_v0, %v2776_v32  ;;  %3105 = vst.msk [vmem:[%s4948_s26 + $0x50] sm:$0xff] %vm971_vm1, %v6648_v47  ;;  %v2773_v6 = vadd.f32 %v2681_v34, %v2528_v53  ;;  %v2816_v17 = vmul.f32 %v6653_v0, %v2777_v46  ;;  %v2817_v22 = vmul.f32 %v6653_v0, %v2778_v24 }
 0x263   : > { %v2683_v23 = vsel %vm1530_vm4, %v2680_v37, %v7305_v25  ;;  %3106 = vst.msk [vmem:[%s4948_s26 + $0x58] sm:$0xff] %vm971_vm1, %v6658_v52  ;;  %v6679_v4 = vadd.f32 %v6676_v36, %v2814_v56  ;;  %v969_v7 = vmul.f32 %v6410_v2, %v7306_v1  ;;  %v1149_v62 = vmul.f32 %v6388_v30, %v6436_v58 }
 0x264   : > { %v2774_v14 = vadd.f32 %v2683_v23, %v2529_v50  ;;  %v6682_v45 = vadd.f32 %v6676_v36, %v2815_v19  ;;  %v2812_v43 = vmul.f32 %v6653_v0, %v2773_v6  ;;  %v6691_v8 = vadd.f32 %v6676_v36, %v2816_v17  ;;  %v3790_v61 = vpop.eup %3789 }
 0x265   : > { %v6694_v21 = vadd.f32 %v6676_v36, %v2817_v22  ;;  %v3419_v27 = vmul.f32 -1.442695, %v6679_v4  ;;  %1058 = vst.msk [vmem:[#allocation2 + $0x181] sm:$0xff] %vm971_vm1, %v969_v7  ;;  %v1150_v2 = vmul.f32 %v6388_v30, %v6447_v11  ;;  %v1360_v5 = vrot.slane %v6460_v49, 1 }
 0x266   : > { %v2813_v3 = vmul.f32 %v6653_v0, %v2774_v14  ;;  %v3420_v32 = vmul.f32 -1.442695, %v6682_v45  ;;  %v3792_v46 = vpop.eup %3791  ;;  %v6703_v35 = vmul.f32 %v3790_v61, %v6554_v57  ;;  %v6706_v24 = vadd.f32 %v6676_v36, %v2812_v43 }
 0x267   : > { %v3421_v51 = vmul.f32 -1.442695, %v6691_v8  ;;  %v6713_v28 = vmul.f32 %v3792_v46, %v6557_v42  ;;  %3793 = vpow2.f32 %v3419_v27  ;;  %v3422_v30 = vmul.f32 -1.442695, %v6694_v21  ;;  %v1110_v49 = vld [vmem:[#allocation2 + $0x190] sm:$0x3] }
 0x268   : > { %v6709_v29 = vadd.f32 %v6676_v36, %v2813_v3  ;;  %v1361_v13 = vrot.slane %v6469_v54, 1  ;;  %3121 = vst.msk [vmem:[%s4948_s26 + $0xd0] sm:$0xff] %vm971_vm1, %v6703_v35  ;;  %v3417_v57 = vmul.f32 -1.442695, %v6706_v24  ;;  %3795 = vpow2.f32 %v3420_v32 }
 0x269   : > { %v1796_v26 = vmul.f32 %v6104_v15, %v1110_v49  ;;  %3122 = vst.msk [vmem:[%s4948_s26 + $0xd8] sm:$0xff] %vm971_vm1, %v6713_v28  ;;  %3797 = vpow2.f32 %v3421_v51  ;;  %v6727_v42 = vmul.f32 %v6340_v39, %v1110_v49  ;;  %v6730_v63 = vmul.f32 %v6247_v31, %v1110_v49 }
 0x26a   : > { %v3418_v9 = vmul.f32 -1.442695, %v6709_v29  ;;  %v6733_v54 = vmul.f32 %v6256_v33, %v1110_v49  ;;  %3799 = vpow2.f32 %v3417_v57  ;;  %v1362_v60 = vsel %vm1284_vm3, %v1360_v5, %v1361_v13 }
 0x26b   : > { %v1923_v37 = vrot.slane %v1796_v26, 1  ;;  %v7307_v53 = vrot.slane %v6363_v59, 1  ;;  %v2168_v56 = vrot.slane %v6727_v42, 2  ;;  %v2477_v34 = vrot.slane %v6730_v63, 1  ;;  %v3857_v59 = vld [vmem:[%s6987_s4 + $0x2] ss:$0 sm:$0xff] }
 0x26c   : > { %3801 = vpow2.f32 %v3418_v9  ;;  %v2722_v25 = vrot.slane %v6733_v54, 2  ;;  %v6742_v23 = vld [vmem:[#allocation2 + $0x180] sm:$0xff]  ;;  %v6744_v19 = vld [vmem:[#allocation2 + $0x188] sm:$0xff]  ;;  %v1427_v6 = vadd.f32 %v1362_v60, %v1149_v62  ;;  %v1479_v17 = vmul.f32 %v3857_v59, %v6436_v58 }
 0x26d   : > { %v1364_v50 = vsel %vm1284_vm3, %v1361_v13, %v7307_v53  ;;  %3803 = vpow2.f32 %v3422_v30  ;;  %v1480_v22 = vmul.f32 %v3857_v59, %v6447_v11  ;;  %v1708_v1 = vmul.f32 %v6407_v44, %v6436_v58 }
 0x26e   : > { %v1428_v14 = vadd.f32 %v1364_v50, %v1150_v2  ;;  %v1709_v7 = vmul.f32 %v6407_v44, %v6447_v11  ;;  %v1710_v43 = vmul.f32 %v6407_v44, %v6742_v23  ;;  %v1606_v3 = vrot.slane %v1479_v17, 2 }
 0x26f   : > { %v1711_v62 = vmul.f32 %v6407_v44, %v6744_v19  ;;  %v1794_v61 = vmul.f32 %v6104_v15, %v6742_v23  ;;  %v1795_v27 = vmul.f32 %v6104_v15, %v6744_v19  ;;  %v1607_v32 = vrot.slane %v1480_v22, 2 }
 0x270   : > { %v1740_v2 = vadd.f32 %v1708_v1, %v6239_v10  ;;  %v1741_v5 = vadd.f32 %v1709_v7, %v6242_v16  ;;  %v1915_v46 = vrot.slane %v6473_v12, 1  ;;  %v1916_v51 = vrot.slane %v6477_v48, 1 }
 0x271   : > { %v1920_v30 = vrot.slane %v1794_v61, 1  ;;  %v1921_v49 = vrot.slane %v1795_v27, 1  ;;  %v2036_v44 = vmul.f32 %v6340_v39, %v6436_v58  ;;  %v3794_v13 = vpop.eup %3793  ;;  %v1608_v57 = vsel %vm1530_vm4, %v1606_v3, %v1607_v32 }
 0x272   : > { %v7308_v9 = vrot.slane %v6366_v55, 2  ;;  %v2037_v10 = vmul.f32 %v6340_v39, %v6447_v11  ;;  %v2039_v16 = vmul.f32 %v6340_v39, %v6742_v23  ;;  %v3796_v12 = vpop.eup %3795  ;;  %v2981_v48 = vadd.f32 1.0, %v3794_v13 }
 0x273   : > { %v1673_v26 = vadd.f32 %v1608_v57, %v1427_v6  ;;  %v1917_v53 = vsel %vm1284_vm3, %v1915_v46, %v1916_v51  ;;  %v3798_v58 = vpop.eup %3797  ;;  %v2982_v50 = vadd.f32 1.0, %v3796_v12  ;;  %v7309_v59 = vrot.slane %v6369_v41, 1 }
 0x274   : > { %v1610_v15 = vsel %vm1530_vm4, %v1607_v32, %v7308_v9  ;;  %v1922_v17 = vsel %vm1284_vm3, %v1920_v30, %v1921_v49  ;;  %v1924_v22 = vsel %vm1284_vm3, %v1921_v49, %v1923_v37  ;;  %v3800_v11 = vpop.eup %3799  ;;  %v2983_v1 = vadd.f32 1.0, %v3798_v58 }
 0x275   : > { %v1674_v60 = vadd.f32 %v1610_v15, %v1428_v14  ;;  %v1919_v55 = vsel %vm1284_vm3, %v1916_v51, %v7309_v59  ;;  %3805 = vrcp.f32 %v2981_v48  ;;  %v1742_v7 = vadd.f32 %v1710_v43, %v1673_v26 }
 0x276   : > { %v3802_v61 = vpop.eup %3801  ;;  %v2979_v6 = vadd.f32 1.0, %v3800_v11  ;;  %3807 = vrcp.f32 %v2982_v50  ;;  %v1985_v14 = vadd.f32 %v1917_v53, %v1740_v2  ;;  %v1986_v27 = vadd.f32 %v1919_v55, %v1741_v5 }
 0x277   : > { %v1743_v3 = vadd.f32 %v1711_v62, %v1674_v60  ;;  %v3804_v32 = vpop.eup %3803  ;;  %v2980_v46 = vadd.f32 1.0, %v3802_v61  ;;  %3809 = vrcp.f32 %v2983_v1  ;;  %v1987_v41 = vadd.f32 %v1922_v17, %v1742_v7 }
 0x278   : > { %v2984_v51 = vadd.f32 1.0, %v3804_v32  ;;  %3811 = vrcp.f32 %v2979_v6  ;;  %v2040_v37 = vmul.f32 %v6340_v39, %v6744_v19  ;;  %v2160_v30 = vrot.slane %v2036_v44, 2 }
 0x279   : > { %v1988_v13 = vadd.f32 %v1924_v22, %v1743_v3  ;;  %3813 = vrcp.f32 %v2980_v46  ;;  %v2161_v49 = vrot.slane %v2037_v10, 2  ;;  %v2165_v43 = vrot.slane %v2039_v16, 2  ;;  %v7315_v46 = vld [vmem:[#allocation46_spill] sm:$0xff] }
 0x27a   : > { %v2267_v62 = vmul.f32 %v6289_v18, %v6742_v23  ;;  %3815 = vrcp.f32 %v2984_v51  ;;  %v2166_v2 = vrot.slane %v2040_v37, 2  ;;  %v2268_v5 = vmul.f32 %v6289_v18, %v6744_v19 }
 0x27b   : > { %v2350_v57 = vmul.f32 %v6247_v31, %v6742_v23  ;;  %v2162_v9 = vsel %vm1530_vm4, %v2160_v30, %v2161_v49  ;;  %v7310_v15 = vrot.slane %v6372_v40, 2  ;;  %v2351_v44 = vmul.f32 %v6247_v31, %v6744_v19  ;;  %v7316_v30 = vld [vmem:[#allocation54_spill] sm:$0xff] }
 0x27c   : > { %v2595_v10 = vmul.f32 %v6256_v33, %v6742_v23  ;;  %v2167_v16 = vsel %vm1530_vm4, %v2165_v43, %v2166_v2  ;;  %v2169_v18 = vsel %vm1530_vm4, %v2166_v2, %v2168_v56  ;;  %v2230_v12 = vadd.f32 %v2162_v9, %v1985_v14  ;;  %v7313_v14 = vld [vmem:[#allocation45_spill] sm:$0xff]  ;;  %v7318_v2 = vld [vmem:[#allocation16_spill] sm:$0xff] }
 0x27d   : > { %v2164_v39 = vsel %vm1530_vm4, %v2161_v49, %v7310_v15  ;;  %v2232_v26 = vadd.f32 %v2167_v16, %v1987_v41  ;;  %v2233_v60 = vadd.f32 %v2169_v18, %v1988_v13  ;;  %v2474_v53 = vrot.slane %v2350_v57, 1 }
 0x27e   : > { %v2231_v48 = vadd.f32 %v2164_v39, %v1986_v27  ;;  %v2475_v40 = vrot.slane %v2351_v44, 1  ;;  %v2299_v58 = vadd.f32 %v2267_v62, %v2230_v12  ;;  %v2596_v31 = vmul.f32 %v6256_v33, %v6744_v19  ;;  %v7314_v27 = vld [vmem:[#allocation10_spill] sm:$0xff]  ;;  %v7319_v44 = vld [vmem:[#allocation52_spill] sm:$0xff] }
 0x27f   : > { %v2719_v59 = vrot.slane %v2595_v10, 2  ;;  %v3806_v55 = vpop.eup %3805  ;;  %v2301_v23 = vadd.f32 %v6292_v38, %v2232_v26  ;;  %v2302_v42 = vadd.f32 %v6295_v20, %v2233_v60  ;;  %v7311_v38 = vld [vmem:[#allocation35_spill] sm:$0xff]  ;;  %v7312_v20 = vld [vmem:[#allocation33_spill] sm:$0xff]  ;;  %v3135_v63 = vadd.f32 %v7314_v27, %v7313_v14  ;;  %v7320_v12 = vld [vmem:[#allocation18_spill] sm:$0xff] }
 0x280   : > { %v2300_v50 = vadd.f32 %v2268_v5, %v2231_v48  ;;  %v2476_v56 = vsel %vm1284_vm3, %v2474_v53, %v2475_v40  ;;  %v2478_v17 = vsel %vm1284_vm3, %v2475_v40, %v2477_v34  ;;  %v3808_v22 = vpop.eup %3807  ;;  %v3077_v11 = vmul.f32 %v3806_v55, %v6679_v4 }
 0x281   : > { %v2544_v1 = vadd.f32 %v2476_v56, %v2299_v58  ;;  %v2720_v33 = vrot.slane %v2596_v31, 2  ;;  %v3810_v19 = vpop.eup %3809  ;;  %v6813_v3 = vmul.f32 %v3808_v22, %v6682_v45  ;;  %v2546_v61 = vadd.f32 %v7311_v38, %v2301_v23  ;;  %v7321_v31 = vld [vmem:[#allocation43_spill] sm:$0xff] }
 0x282   : > { %v2545_v7 = vadd.f32 %v2478_v17, %v2300_v50  ;;  %v2547_v6 = vadd.f32 %v7312_v20, %v2302_v42  ;;  %v3812_v34 = vpop.eup %3811  ;;  %v3079_v32 = vmul.f32 %v3810_v19, %v6691_v8  ;;  %3109 = vst.msk [vmem:[%s4948_s26 + $0x70] sm:$0xff] %vm971_vm1, %v3077_v11  ;;  %v3138_v41 = vsel %vm971_vm1, %v7315_v46, 0.0 }
 0x283   : > { %v2721_v4 = vsel %vm1530_vm4, %v2719_v59, %v2720_v33  ;;  %v2723_v45 = vsel %vm1530_vm4, %v2720_v33, %v2722_v25  ;;  %v3814_v13 = vpop.eup %3813  ;;  %v3075_v51 = vmul.f32 %v3812_v34, %v6706_v24  ;;  %3110 = vst.msk [vmem:[%s4948_s26 + $0x78] sm:$0xff] %vm971_vm1, %v6813_v3  ;;  %v2791_v49 = vadd.f32 %v7316_v30, %v2546_v61  ;;  %v7317_v25 = vld [vmem:[#allocation49_spill] sm:$0xff] }
 0x284   : > { %v2789_v8 = vadd.f32 %v2721_v4, %v2544_v1  ;;  %v2790_v37 = vadd.f32 %v2723_v45, %v2545_v7  ;;  %v3816_v43 = vpop.eup %3815  ;;  %v3076_v54 = vmul.f32 %v3814_v13, %v6709_v29  ;;  %3111 = vst.msk [vmem:[%s4948_s26 + $0x80] sm:$0xff] %vm971_vm1, %v3079_v32  ;;  %v2792_v62 = vadd.f32 %v7317_v25, %v2547_v6 }
 0x285   : > { %v3137_v5 = vadd.f32 %v7318_v2, %v3135_v63  ;;  %v3080_v57 = vmul.f32 %v3816_v43, %v6694_v21  ;;  %3107 = vst.msk [vmem:[%s4948_s26 + $0x60] sm:$0xff] %vm971_vm1, %v3075_v51  ;;  %v2830_v15 = vmul.f32 %v6653_v0, %v2791_v49  ;;  %v3140_v10 = vsel %vm971_vm1, %v7319_v44, 0.0 }
 0x286   : > { %v2828_v24 = vmul.f32 %v6653_v0, %v2789_v8  ;;  %v2829_v9 = vmul.f32 %v6653_v0, %v2790_v37  ;;  %3108 = vst.msk [vmem:[%s4948_s26 + $0x68] sm:$0xff] %vm971_vm1, %v3076_v54  ;;  %v2831_v29 = vmul.f32 %v6653_v0, %v2792_v62  ;;  %v3142_v48 = vsel %vm971_vm1, %v7320_v12, 0.0  ;;  %v7324_v37 = vld [vmem:[#allocation47_spill] sm:$0xff]  ;;  %v7325_v62 = vld [vmem:[#allocation48_spill] sm:$0xff] }
 0x287   : > { %v3139_v39 = vadd.f32 %v3138_v41, %v3137_v5  ;;  %3112 = vst.msk [vmem:[%s4948_s26 + $0x88] sm:$0xff] %vm971_vm1, %v3080_v57  ;;  %v2869_v18 = vadd.f32 %v6676_v36, %v2830_v15  ;;  %v3144_v59 = vsel %vm971_vm1, %v7321_v31, 0.0  ;;  %v3146_v55 = vsel %vm971_vm1, %v6648_v47, 0.0  ;;  %v7322_v41 = vld [vmem:[#allocation26_spill] sm:$0xff] }
 0x288   : > { %v2867_v21 = vadd.f32 %v6676_v36, %v2828_v24  ;;  %v2868_v16 = vadd.f32 %v6676_v36, %v2829_v9  ;;  %v2870_v26 = vadd.f32 %v6676_v36, %v2831_v29  ;;  %v3148_v36 = vsel %vm971_vm1, %v6658_v52, 0.0  ;;  %v7326_v29 = vld [vmem:[#allocation34_spill] sm:$0xff] }
 0x289   : > { %v3141_v60 = vadd.f32 %v3140_v10, %v3139_v39  ;;  %v3435_v40 = vmul.f32 -1.442695, %v2869_v18  ;;  %v3150_v56 = vsel %vm971_vm1, %v3075_v51, 0.0  ;;  %v3152_v1 = vsel %vm971_vm1, %v3076_v54, 0.0  ;;  %v7323_v51 = vld [vmem:[#allocation53_spill] sm:$0xff] }
 0x28a   : > { %v3433_v53 = vmul.f32 -1.442695, %v2867_v21  ;;  %v3434_v0 = vmul.f32 -1.442695, %v2868_v16  ;;  %v3436_v58 = vmul.f32 -1.442695, %v2870_v26 }
 0x28b   : > { %v3143_v50 = vadd.f32 %v3142_v48, %v3141_v60  ;;  %v3154_v7 = vsel %vm971_vm1, %v3077_v11, 0.0  ;;  %v3156_v14 = vsel %vm971_vm1, %v6813_v3, 0.0  ;;  %v3158_v52 = vsel %vm971_vm1, %v3079_v32, 0.0 }
 0x28c   : > { %3817 = vpow2.f32 %v3433_v53  ;;  %v3160_v45 = vsel %vm971_vm1, %v3080_v57, 0.0  ;;  %v3162_v13 = vsel %vm971_vm1, %v7322_v41, 0.0  ;;  %v3164_v32 = vsel %vm971_vm1, %v7323_v51, 0.0 }
 0x28d   : > { %3819 = vpow2.f32 %v3434_v0  ;;  %v3145_v23 = vadd.f32 %v3144_v59, %v3143_v50  ;;  %v3166_v30 = vsel %vm971_vm1, %v7324_v37, 0.0  ;;  %v3168_v2 = vsel %vm971_vm1, %v7325_v62, 0.0 }
 0x28e   : > { %3821 = vpow2.f32 %v3435_v40  ;;  %v3170_v39 = vsel %vm971_vm1, %v7326_v29, 0.0 }
 0x28f   : > { %3823 = vpow2.f32 %v3436_v58  ;;  %v3147_v42 = vadd.f32 %v3146_v55, %v3145_v23 }
 0x291   : > { %v3149_v17 = vadd.f32 %v3148_v36, %v3147_v42 }
 0x293   : > { %v3151_v22 = vadd.f32 %v3150_v56, %v3149_v17 }
 0x295   : > { %v3153_v33 = vadd.f32 %v3152_v1, %v3151_v22 }
 0x296   : > { %v3818_v19 = vpop.eup %3817 }
 0x297   : > { %v3820_v38 = vpop.eup %3819  ;;  %v2995_v47 = vadd.f32 1.0, %v3818_v19  ;;  %v3155_v61 = vadd.f32 %v3154_v7, %v3153_v33 }
 0x298   : > { %v3822_v20 = vpop.eup %3821  ;;  %v2996_v6 = vadd.f32 1.0, %v3820_v38 }
 0x299   : > { %v3824_v27 = vpop.eup %3823  ;;  %v2997_v63 = vadd.f32 1.0, %v3822_v20  ;;  %3825 = vrcp.f32 %v2995_v47  ;;  %v3157_v34 = vadd.f32 %v3156_v14, %v3155_v61 }
 0x29a   : > { %v2998_v4 = vadd.f32 1.0, %v3824_v27  ;;  %3827 = vrcp.f32 %v2996_v6 }
 0x29b   : > { %3829 = vrcp.f32 %v2997_v63  ;;  %v3159_v11 = vadd.f32 %v3158_v52, %v3157_v34 }
 0x29c   : > { %3831 = vrcp.f32 %v2998_v4 }
 0x29d   : > { %v3161_v46 = vadd.f32 %v3160_v45, %v3159_v11 }
 0x29f   : > { %v3163_v3 = vadd.f32 %v3162_v13, %v3161_v46 }
 0x2a1   : > { %v3165_v8 = vadd.f32 %v3164_v32, %v3163_v3 }
 0x2a3   : > { %v3826_v49 = vpop.eup %3825  ;;  %v3167_v43 = vadd.f32 %v3166_v30, %v3165_v8 }
 0x2a4   : > { %v3828_v54 = vpop.eup %3827  ;;  %v3091_v25 = vmul.f32 %v3826_v49, %v2867_v21  ;;  %v7327_v21 = vld [vmem:[#allocation13_spill] sm:$0xff] }
 0x2a5   : > { %v3830_v5 = vpop.eup %3829  ;;  %v3092_v57 = vmul.f32 %v3828_v54, %v2868_v16  ;;  %v3169_v24 = vadd.f32 %v3168_v2, %v3167_v43  ;;  %v3172_v16 = vsel %vm971_vm1, %v7327_v21, 0.0 }
 0x2a6   : > { %v3832_v9 = vpop.eup %3831  ;;  %v3093_v15 = vmul.f32 %v3830_v5, %v2869_v18  ;;  %3123 = vst.msk [vmem:[%s4948_s26 + $0xe0] sm:$0xff] %vm971_vm1, %v3091_v25 }
 0x2a7   : > { %v3094_v44 = vmul.f32 %v3832_v9, %v2870_v26  ;;  %3124 = vst.msk [vmem:[%s4948_s26 + $0xe8] sm:$0xff] %vm971_vm1, %v3092_v57  ;;  %v3171_v10 = vadd.f32 %v3170_v39, %v3169_v24 }
 0x2a8   : > { %3125 = vst.msk [vmem:[%s4948_s26 + $0xf0] sm:$0xff] %vm971_vm1, %v3093_v15 }
 0x2a9   : > { %3126 = vst.msk [vmem:[%s4948_s26 + $0xf8] sm:$0xff] %vm971_vm1, %v3094_v44  ;;  %v3173_v18 = vadd.f32 %v3172_v16, %v3171_v10 }
 0x2aa   : > { %3871 = shalt.err (!%p3868_p3)
}
 0x2ab   : > { %s3872_s26 = scalar_lea.hbm %s6885_s25, 4096  ;;  %s3876_s22 = scalar_lea.hbm %s6990_s7, 8192 }
 0x2ac   : > { %p3873_p4 = scmp.ne.s32.totalorder %s6885_s25, %s3872_s26  ;;  %p3877_p9 = scmp.lt.u32.totalorder %s6885_s25, %s6990_s7 }
 0x2ad   : > { %p3878_p10 = scmp.lt.u32.totalorder %s3876_s22, %s3872_s26  ;;  %p3880_p12 = scmp.lt.u32.totalorder %s3872_s26, %s6885_s25 }
 0x2ae   : > { %p3874_p7 = pnand %p3873_p4, %p4042_p5 }
 0x2af   : > { %p3879_p11 = por %p3878_p10, %p3877_p9 }
 0x2b0   : > { %p3875_p8 = pneg %p3874_p7 }
 0x2b1   : > { %p3881_p13 = por %p3880_p12, %p3879_p11 }
 0x2b3   : > { %p3882_p0 = pnand %p3881_p13, %p3875_p8 }
 0x2b5   : > { %3885 = shalt.err (!%p3882_p0)
}
 0x2b6   : > { %s3956_s12 = smov 128   ;;  %s3957_s17 = smov 8   ;;  %v7328_v12 = vld [vmem:[#allocation44_spill] sm:$0xff]  ;;  %v7329_v60 = vld [vmem:[#allocation17_spill] sm:$0xff]  ;;  %v3178_v40 = vsel %vm971_vm1, %v6703_v35, 0.0  ;;  %v3180_v50 = vsel %vm971_vm1, %v6713_v28, 0.0 }
 0x2b7   : > { %3530 = dma.vmem_to_hbm [thread:$0]  (%p4042_p5), %s6887_s21, 4096, %s6885_s25, %s3201_s10, %s3956_s12, %s3956_s12, %s3957_s17   ;;  %v3174_v48 = vsel %vm971_vm1, %v7328_v12, 0.0  ;;  %v3176_v53 = vsel %vm971_vm1, %v7329_v60, 0.0  ;;  %v3182_v59 = vsel %vm971_vm1, %v3091_v25, 0.0  ;;  %v3184_v23 = vsel %vm971_vm1, %v3092_v57, 0.0 }
 0x2b8   : > { %v3175_v26 = vadd.f32 %v3174_v48, %v3173_v18  ;;  %v3186_v36 = vsel %vm971_vm1, %v3093_v15, 0.0  ;;  %v3188_v17 = vsel %vm971_vm1, %v3094_v44, 0.0  ;;  %s3440_s21 = sshll.u32 %s4025_s9, 4  ;;  %s308_s25 = scalar_lea.vmem [#allocation5], %s4857_s24  ;;  %vm3198_vm5 = vcmask 253952  }
 0x2b9   : > { %s3234_s10 = sshll.u32 %s308_s25, 4  ;;  %s6940_s19 = scalar_lea.hbm %s6991_s8, %s3440_s21  ;;  %s6942_s10 = int_to_ptr.vmem [resolvable:$true] %s3234_s10 }
 0x2ba   : > { %v3177_v0 = vadd.f32 %v3176_v53, %v3175_v26  ;;  %s3206_s20 = scalar_lea.sflag [#allocation6], %s4857_s24  ;;  %s3886_s22 = scalar_lea.vmem %s6942_s10, 16 }
 0x2bb   : > { %p3887_p1 = scmp.ne.s32.totalorder %s6942_s10, %s3886_s22  ;;  %s3958_s9 = smov [#allocation5]  }
 0x2bc   : > { %v3179_v58 = vadd.f32 %v3178_v40, %v3177_v0  ;;  %s3890_s23 = sshll.u32 %s3958_s9, 4  ;;  %s3891_s23 = int_to_ptr.vmem [resolvable:$false] %s3890_s23 }
 0x2bd   : > { %p3888_p2 = pnand %p3887_p1, %p4042_p5  ;;  %s3892_s13 = scalar_lea.vmem %s3891_s23, 32 }
 0x2be   : > { %v3181_v31 = vadd.f32 %v3180_v50, %v3179_v58  ;;  %p3893_p4 = scmp.lt.s32.totalorder %s6942_s10, %s3891_s23  ;;  %p3894_p7 = scmp.lt.s32.totalorder %s3892_s13, %s3886_s22 }
 0x2bf   : > { %p3889_p3 = pneg %p3888_p2 }
 0x2c0   : > { %v3183_v55 = vadd.f32 %v3182_v59, %v3181_v31  ;;  %p3895_p8 = por %p3894_p7, %p3893_p4 }
 0x2c2   : > { %v3185_v42 = vadd.f32 %v3184_v23, %v3183_v55  ;;  %p3896_p9 = pnand %p3895_p8, %p3889_p3 }
 0x2c4   : > { %v3187_v56 = vadd.f32 %v3186_v36, %v3185_v42 }
 0x2c6   : > { %v3189_v35 = vadd.f32 %v3188_v17, %v3187_v56 }
 0x2c8   : > { %v3190_v22 = vrot.slane %v3189_v35, 4 }
 0x2ca   : > { %v3191_v1 = vadd.f32 %v3190_v22, %v3189_v35 }
 0x2cc   : > { %v3192_v7 = vrot.slane %v3191_v1, 2 }
 0x2ce   : > { %v3193_v28 = vadd.f32 %v3192_v7, %v3191_v1 }
 0x2d0   : > { %v3194_v33 = vrot.slane %v3193_v28, 1 }
 0x2d2   : > { %v3195_v19 = vadd.f32 %v3194_v33, %v3193_v28 }
 0x2d4   : > { %v3197_v38 = vmul.f32 0.00390625, %v3195_v19 }
 0x2d6   : > { %3199 = vst.msk [vmem:[%s308_s25] sm:$0x1] %vm3198_vm5, %v3197_v38 }
 0x2d7   : > { %3899 = shalt.err (!%p3896_p9)
}
 0x2d8   : > { %s3900_s24 = scalar_lea.hbm %s6940_s19, 16  ;;  %s3904_s21 = scalar_lea.hbm %s6991_s8, 32 }
 0x2d9   : > { %p3901_p10 = scmp.ne.s32.totalorder %s6940_s19, %s3900_s24  ;;  %p3905_p13 = scmp.lt.u32.totalorder %s6940_s19, %s6991_s8 }
 0x2da   : > { %p3906_p0 = scmp.lt.u32.totalorder %s3904_s21, %s3900_s24  ;;  %p3908_p2 = scmp.lt.u32.totalorder %s3900_s24, %s6940_s19 }
 0x2db   : > { %p3902_p11 = pnand %p3901_p10, %p4042_p5 }
 0x2dc   : > { %p3907_p1 = por %p3906_p0, %p3905_p13 }
 0x2dd   : > { %p3903_p12 = pneg %p3902_p11 }
 0x2de   : > { %p3909_p3 = por %p3908_p2, %p3907_p1 }
 0x2e0   : > { %p3910_p4 = pnand %p3909_p3, %p3903_p12 }
 0x2e2   : > { %3913 = shalt.err (!%p3910_p4)
}
 0x2e3   : > { %3531 = dma.vmem_to_hbm [thread:$0]  (%p4042_p5), %s6942_s10, 16, %s6940_s19, %s3206_s20  }
 0x2e4 PF: > { %p3541_p7 = scmp.ge.s32.totalorder %s3952_s30, 2  ;;  %s3246_s26 = sand.u32 1, %s3940_s27  }
 0x2e5   : > { %s3247_s22 = scalar_lea.sflag [#allocation4], %s3246_s26 }
 0x2e6   : > { %p3535_p8 = pnand %p3541_p7, %p4046_p6 }
 0x2e8   : > { %3931 = dma.done.wait (!%p3535_p8), %s3247_s22, 4096  }
 0x2e9   : > { %3933 = vsyncadd (!%p3535_p8), %s3247_s22, 4294963200  ;;  %s3256_s9 = scalar_lea.sflag [#allocation6], %s3246_s26 }
 0x2ea   : > { %3935 = dma.done.wait (!%p3535_p8), %s3256_s9, 16  }
 0x2eb   : > { %3937 = vsyncadd (!%p3535_p8), %s3256_s9, 4294967280  ;;  %p22_p5 = scmp.ge.s32.totalorder %s4029_s11, 4   ;;  %s7330_s27 = smov %s3944_s28 }
 0x2ec   : > { %s7331_s28 = smov %s3948_s29  ;;  %s7332_s29 = smov %s4040_s14 }
 0x2ed   : > { %s7333_s30 = smov %s4029_s11  ;;  %24 = sbr.rel (!%p22_p5) target bundleno = 5 (0x5), region = 101 }
 0x2f4   :  { %3260 = vsyncpa [#allocation4], 1 }
 0x2f5   :  { %3262 = vsyncpa [#allocation4 + $0x1], 1 }
 0x2f6   :  { %3263 = vsyncpa [#allocation6], 1 }
 0x2f7   :  { %3265 = vsyncpa [#allocation6 + $0x1], 1 }

</bundles_post_ra>
